<compile_context>
chip_gen: v5e
topology: v5e:2x2
jax: 0.10.0
libtpu: 0.0.40
codegen_flags: <defaults>
</compile_context>

<pallas_src>
import functools

import jax
import jax.numpy as jnp
from jax.experimental import pallas as pl
from jax.experimental.pallas import tpu as pltpu

VMEM_LIMIT = 32 * 1024 * 1024  # explicit, safe on v5e/v6e (128 MiB) and v7x (64 MiB)


def _round_up(x, m):
    return (x + m - 1) // m * m


def _apply_act(y, activation):
    if activation == "silu":
        return jax.nn.silu(y)
    if activation == "gelu":
        return jax.nn.gelu(y, approximate=True)
    return y


# ----------------------------------------------------------------------------
# Kernel 1: tiled linear  y = act(pre_act(x) @ w + b)
# ----------------------------------------------------------------------------

def _linear_kernel(x_ref, w_ref, b_ref, o_ref, acc_ref, *, pre_activation, activation):
    @pl.when(pl.program_id(2) == 0)
    def _():
        acc_ref[...] = jnp.zeros_like(acc_ref)

    x = x_ref[...].astype(jnp.float32)
    if pre_activation is not None:
        x = _apply_act(x, pre_activation)
    acc_ref[...] += jnp.dot(
        x.astype(jnp.bfloat16),
        w_ref[...].astype(jnp.bfloat16),
        preferred_element_type=jnp.float32,
    )

    @pl.when(pl.program_id(2) == pl.num_programs(2) - 1)
    def _():
        y = acc_ref[...] + b_ref[...]
        y = _apply_act(y, activation)
        o_ref[...] = y.astype(o_ref.dtype)


def pallas_linear(x, w, b=None, pre_activation=None, activation=None):
    """y = act(pre_act(x) @ w + b).  x: (..., K), w: (K, N)."""
    *lead, K = x.shape
    N = w.shape[1]
    x2 = x.reshape(-1, K)
    M = x2.shape[0]

    # Tile sizes capped so 2x(TM*TK + TK*TN + TM*TN)*4B stays far below VMEM
    # on every generation (v7x has only 64 MiB physical).
    TM = 256 if M > 256 else M
    TN = 256 if N > 256 else N
    TK = 512 if K > 512 else K
    Mp, Np, Kp = _round_up(M, TM), _round_up(N, TN), _round_up(K, TK)

    if (Mp, Kp) != (M, K):
        x2 = jnp.pad(x2, ((0, Mp - M), (0, Kp - K)))
    wp = w if (Kp, Np) == (K, N) else jnp.pad(w, ((0, Kp - K), (0, Np - N)))
    if b is None:
        bias = jnp.zeros((1, Np), jnp.float32)
    else:
        bias = jnp.pad(b.astype(jnp.float32).reshape(1, N), ((0, 0), (0, Np - N)))

    grid = (Mp // TM, Np // TN, Kp // TK)
    kern = functools.partial(
        _linear_kernel, pre_activation=pre_activation, activation=activation
    )
    out = pl.pallas_call(
        kern,
        out_shape=jax.ShapeDtypeStruct((Mp, Np), jnp.float32),
        grid=grid,
        in_specs=[
            pl.BlockSpec((TM, TK), lambda i, j, k: (i, k)),
            pl.BlockSpec((TK, TN), lambda i, j, k: (k, j)),
            pl.BlockSpec((1, TN), lambda i, j, k: (0, j)),
        ],
        out_specs=pl.BlockSpec((TM, TN), lambda i, j, k: (i, j)),
        scratch_shapes=[pltpu.VMEM((TM, TN), jnp.float32)],
        compiler_params=pltpu.CompilerParams(
            dimension_semantics=("parallel", "parallel", "arbitrary"),
            vmem_limit_bytes=VMEM_LIMIT,
        ),
        cost_estimate=pl.CostEstimate(
            flops=2 * Mp * Np * Kp,
            transcendentals=0,
            bytes_accessed=4 * (Mp * Kp + Kp * Np + Mp * Np),
        ),
    )(x2, wp, bias)
    out = out[:M, :N]
    return out.reshape(*lead, N)


# ----------------------------------------------------------------------------
# Kernel 2: fused adaLN (LayerNorm + per-frame scale/shift) -> projection
# ----------------------------------------------------------------------------

def _adaln_proj_kernel(x_ref, sc_ref, sh_ref, w_ref, b_ref, o_ref, *, activation):
    x = x_ref[0].astype(jnp.float32)                          # (F, D)
    mu = jnp.mean(x, axis=-1, keepdims=True)
    var = jnp.mean(jnp.square(x - mu), axis=-1, keepdims=True)
    xn = (x - mu) * jax.lax.rsqrt(var + 1e-6)
    xm = xn * (1.0 + sc_ref[0]) + sh_ref[0]                   # (1,D) broadcast over F
    y = jnp.dot(
        xm.astype(jnp.bfloat16),
        w_ref[...].astype(jnp.bfloat16),
        preferred_element_type=jnp.float32,
    ) + b_ref[...]
    y = _apply_act(y, activation)
    o_ref[0] = y.astype(o_ref.dtype)


def pallas_adaln_proj(x, scale, shift, w, b=None, activation=None, pad_n_to=None):
    """act(adaLN(x; scale, shift) @ w + b).
    x: (G, F, D); scale/shift: (G, D) (one row per frame); w: (D, N)."""
    G, F, D = x.shape
    N = w.shape[1]
    Np = _round_up(N, pad_n_to) if pad_n_to else N           # lane-dense stores
    TN = 256 if Np > 256 else Np
    Np = _round_up(Np, TN)

    wp = w if Np == N else jnp.pad(w, ((0, 0), (0, Np - N)))
    if b is None:
        bias = jnp.zeros((1, Np), jnp.float32)
    else:
        bias = jnp.pad(b.astype(jnp.float32).reshape(1, N), ((0, 0), (0, Np - N)))

    out = pl.pallas_call(
        functools.partial(_adaln_proj_kernel, activation=activation),
        out_shape=jax.ShapeDtypeStruct((G, F, Np), jnp.float32),
        grid=(G, Np // TN),
        in_specs=[
            pl.BlockSpec((1, F, D), lambda g, j: (g, 0, 0)),
            pl.BlockSpec((1, 1, D), lambda g, j: (g, 0, 0)),
            pl.BlockSpec((1, 1, D), lambda g, j: (g, 0, 0)),
            pl.BlockSpec((D, TN), lambda g, j: (0, j)),
            pl.BlockSpec((1, TN), lambda g, j: (0, j)),
        ],
        out_specs=pl.BlockSpec((1, F, TN), lambda g, j: (g, 0, j)),
        compiler_params=pltpu.CompilerParams(
            dimension_semantics=("parallel", "parallel"),
            vmem_limit_bytes=VMEM_LIMIT,
        ),
        cost_estimate=pl.CostEstimate(
            flops=2 * G * F * D * Np,
            transcendentals=0,
            bytes_accessed=4 * (G * F * D + 2 * G * D + D * Np + G * F * Np),
        ),
    )(x, scale.reshape(G, 1, D), shift.reshape(G, 1, D), wp, bias)
    return out[..., :N] if Np != N else out


# ----------------------------------------------------------------------------
# Kernel 3: fused gated residual projection   out = resid + gate * (h @ w + b)
# ----------------------------------------------------------------------------

def _res_gate_proj_kernel(h_ref, w_ref, b_ref, g_ref, r_ref, o_ref, acc_ref):
    @pl.when(pl.program_id(1) == 0)
    def _():
        acc_ref[...] = jnp.zeros_like(acc_ref)

    acc_ref[...] += jnp.dot(
        h_ref[0].astype(jnp.bfloat16),
        w_ref[...].astype(jnp.bfloat16),
        preferred_element_type=jnp.float32,
    )

    @pl.when(pl.program_id(1) == pl.num_programs(1) - 1)
    def _():
        o_ref[0] = (
            r_ref[0].astype(jnp.float32) + g_ref[0] * (acc_ref[...] + b_ref[...])
        ).astype(o_ref.dtype)


def pallas_residual_gated_proj(h, w, b, gate, resid):
    """resid + gate * (h @ w + b).
    h: (G, F, K); w: (K, D); b: (D,); gate: (G, D); resid: (G, F, D)."""
    G, F, K = h.shape
    D = w.shape[1]
    TK = 512 if K > 512 else K
    Kp = _round_up(K, TK)
    if Kp != K:
        h = jnp.pad(h, ((0, 0), (0, 0), (0, Kp - K)))
        w = jnp.pad(w, ((0, Kp - K), (0, 0)))

    out = pl.pallas_call(
        _res_gate_proj_kernel,
        out_shape=jax.ShapeDtypeStruct((G, F, D), jnp.float32),
        grid=(G, Kp // TK),
        in_specs=[
            pl.BlockSpec((1, F, TK), lambda g, k: (g, 0, k)),
            pl.BlockSpec((TK, D), lambda g, k: (k, 0)),
            pl.BlockSpec((1, D), lambda g, k: (0, 0)),
            pl.BlockSpec((1, 1, D), lambda g, k: (g, 0, 0)),
            pl.BlockSpec((1, F, D), lambda g, k: (g, 0, 0)),
        ],
        out_specs=pl.BlockSpec((1, F, D), lambda g, k: (g, 0, 0)),
        scratch_shapes=[pltpu.VMEM((F, D), jnp.float32)],
        compiler_params=pltpu.CompilerParams(
            dimension_semantics=("parallel", "arbitrary"),
            vmem_limit_bytes=VMEM_LIMIT,
        ),
        cost_estimate=pl.CostEstimate(
            flops=2 * G * F * Kp * D,
            transcendentals=0,
            bytes_accessed=4 * (G * F * Kp + Kp * D + G * D + 2 * G * F * D),
        ),
    )(h, w, b.astype(jnp.float32).reshape(1, D), gate.reshape(G, 1, D), resid)
    return out


# ----------------------------------------------------------------------------
# Kernel 4: multi-head attention (all heads per grid step, no k.T transpose)
# ----------------------------------------------------------------------------

def _attn_kernel(q_ref, k_ref, v_ref, o_ref, *, scale):
    q = q_ref[0].astype(jnp.float32) * scale                  # (H, S, Dh)
    k = k_ref[0]
    v = v_ref[0]
    # scores via batched dot_general, contracting the last axis of both
    s = jax.lax.dot_general(
        q.astype(jnp.bfloat16), k.astype(jnp.bfloat16),
        (((2,), (2,)), ((0,), (0,))),
        preferred_element_type=jnp.float32,
    )                                                         # (H, S, S)
    m = jnp.max(s, axis=-1, keepdims=True)
    p = jnp.exp(s - m)
    l = jnp.sum(p, axis=-1, keepdims=True)
    p = p * pl.reciprocal(l, approx=True)
    o = jax.lax.dot_general(
        p.astype(jnp.bfloat16), v.astype(jnp.bfloat16),
        (((2,), (1,)), ((0,), (0,))),
        preferred_element_type=jnp.float32,
    )                                                         # (H, S, Dh)
    o_ref[0] = o.astype(o_ref.dtype)


def pallas_attention(q, k, v):
    """Full (non-causal) softmax attention.  q,k,v: (B, H, S, Dh)."""
    # TODO(synk): for long sequences convert to flash-style online softmax with
    # a KV-tile grid axis (VMEM-bounded), and fold heads into the lane dim.
    B, H, S, Dh = q.shape
    kern = functools.partial(_attn_kernel, scale=1.0 / (Dh ** 0.5))
    return pl.pallas_call(
        kern,
        out_shape=jax.ShapeDtypeStruct((B, H, S, Dh), jnp.float32),
        grid=(B,),
        in_specs=[
            pl.BlockSpec((1, H, S, Dh), lambda i: (i, 0, 0, 0)),
            pl.BlockSpec((1, H, S, Dh), lambda i: (i, 0, 0, 0)),
            pl.BlockSpec((1, H, S, Dh), lambda i: (i, 0, 0, 0)),
        ],
        out_specs=pl.BlockSpec((1, H, S, Dh), lambda i: (i, 0, 0, 0)),
        compiler_params=pltpu.CompilerParams(
            dimension_semantics=("parallel",),
            vmem_limit_bytes=VMEM_LIMIT,
        ),
        cost_estimate=pl.CostEstimate(
            flops=4 * B * H * S * S * Dh,
            transcendentals=B * H * S * S,
            bytes_accessed=4 * 4 * B * H * S * Dh,
        ),
    )(q, k, v)


# ----------------------------------------------------------------------------
# Model components (thin glue around the Pallas kernels)
# ----------------------------------------------------------------------------

def timestep_embedding(t, dim, max_period=10000.0):
    half = dim // 2
    freqs = jnp.exp(
        -jnp.log(max_period) * jnp.arange(half, dtype=jnp.float32) / half
    )
    args = t[..., None].astype(jnp.float32) * freqs
    return jnp.concatenate([jnp.cos(args), jnp.sin(args)], axis=-1)


def dit_block(p, xg, cond, cfg, b, n, f):
    """One adaLN DiT block.  xg: (G=b*n, f, d), cond: (G, d)."""
    G, F, d = xg.shape
    H = cfg["n_heads"]
    dh = d // H
    T = n * f

    # per-frame modulation params (SiLU fused as pre-activation in the matmul)
    mod = pallas_linear(cond, p["mod_w"], p["mod_b"], pre_activation="silu")  # (G, 6d)
    sh_a, sc_a, g_a, sh_m, sc_m, g_m = jnp.split(mod, 6, axis=-1)

    # --- attention branch: fused adaLN -> QKV projection ---
    qkv = pallas_adaln_proj(xg, sc_a, sh_a, p["qkv_w"], p["qkv_b"])           # (G, F, 3d)
    qkv = qkv.reshape(b, T, 3, H, dh)
    q = jnp.transpose(qkv[:, :, 0], (0, 2, 1, 3))
    k = jnp.transpose(qkv[:, :, 1], (0, 2, 1, 3))
    v = jnp.transpose(qkv[:, :, 2], (0, 2, 1, 3))
    attn = pallas_attention(q, k, v)                                          # (b, H, T, dh)
    attn = jnp.transpose(attn, (0, 2, 1, 3)).reshape(G, F, d)
    # fused: x = x + gate * (attn @ W_o + b_o)
    xg = pallas_residual_gated_proj(attn, p["attn_out_w"], p["attn_out_b"], g_a, xg)

    # --- MLP branch: fused adaLN -> MLP1 + GeLU, then MLP2 + gate + residual ---
    h2 = pallas_adaln_proj(xg, sc_m, sh_m, p["mlp1_w"], p["mlp1_b"], activation="gelu")
    xg = pallas_residual_gated_proj(h2, p["mlp2_w"], p["mlp2_b"], g_m, xg)
    return xg


def final_layer(p, xg, cond, out_dim):
    """FinalLayer: adaLN(shift,scale) -> LN -> Linear.  xg: (G, F, d)."""
    G, F, d = xg.shape
    mod = pallas_linear(cond, p["mod_w"], p["mod_b"], pre_activation="silu")  # (G, 2d)
    shift, scale = jnp.split(mod, 2, axis=-1)
    # pad the tiny output projection to 128 lanes for dense stores, slice back
    out = pallas_adaln_proj(xg, scale, shift, p["out_w"], p["out_b"], pad_n_to=128)
    return out[..., :out_dim]


def core_forward(params, cfg, x, audio, t, mouse, btn):
    """GameRFTAudioCore.forward"""
    b, n, c, h, w = x.shape
    d = cfg["d_model"]
    f_vid = h * w
    f = f_vid + 1                       # + one audio token per frame
    G = b * n

    # control embedding (mouse & btn fused into one matmul) + timestep embedding
    ctrl_in = jnp.concatenate([mouse, btn], axis=-1)                 # (b, n, 2+nb)
    ctrl = pallas_linear(ctrl_in, params["ctrl_w"], params["ctrl_b"], activation="silu")
    te = timestep_embedding(t, d)
    te = pallas_linear(te, params["t_mlp1_w"], params["t_mlp1_b"], activation="silu")
    te = pallas_linear(te, params["t_mlp2_w"], params["t_mlp2_b"])
    cond = (ctrl + te).reshape(G, d)                                 # (G, d)

    # video tokens:  b n c h w -> b (n h w) c -> proj_in
    xv = jnp.transpose(x, (0, 1, 3, 4, 2)).reshape(b * n * f_vid, c)
    xv = pallas_linear(xv, params["proj_in_w"]).reshape(G, f_vid, d)
    # audio tokens
    xa = pallas_linear(audio, params["audio_proj_in_w"]).reshape(G, 1, d)

    tokens = jnp.concatenate([xv, xa], axis=1)                       # (G, f, d)
    # learned positional encoding over (n*f) tokens
    tokens = (tokens.reshape(b, n * f, d) + params["pos_enc"][None]).reshape(G, f, d)

    # DiT transformer
    for blk in params["blocks"]:
        tokens = dit_block(blk, tokens, cond, cfg, b, n, f)

    video_tokens = tokens[:, :f_vid, :]                              # (G, f_vid, d)
    audio_tokens = tokens[:, f_vid:, :]                              # (G, 1, d)

    video = final_layer(params["final_video"], video_tokens, cond, c)
    video = video.reshape(b, n, h, w, c).transpose(0, 1, 4, 2, 3)    # (b, n, c, h, w)
    aud = final_layer(params["final_audio"], audio_tokens, cond, cfg["audio_channels"])
    aud = aud.reshape(b, n, cfg["audio_channels"])
    return video, aud


def gamerft_audio_forward(params, cfg, x, audio, mouse, btn, key, cfg_prob=None):
    """GameRFTAudio.forward -> scalar diffusion loss."""
    b, n, c, h, w = x.shape
    if cfg_prob is None:
        cfg_prob = cfg["cfg_prob"]

    k_mask, k_ts, k_zv, k_za = jax.random.split(key, 4)

    if cfg_prob > 0.0:
        # NOTE: reference compares against self.cfg_prob (not the passed cfg_prob)
        mask = jax.random.uniform(k_mask, (b,)) <= cfg["cfg_prob"]
        mouse = jnp.where(mask[:, None, None], jnp.zeros_like(mouse), mouse)
        btn = jnp.where(mask[:, None, None], jnp.zeros_like(btn), btn)

    ts = jax.nn.sigmoid(jax.random.normal(k_ts, (b, n), dtype=x.dtype))
    ts_exp = ts[:, :, None, None, None]
    z_video = jax.random.normal(k_zv, x.shape, x.dtype)
    lerpd_video = x * (1.0 - ts_exp) + z_video * ts_exp
    target_video = z_video - x

    ts_exp_audio = ts[:, :, None]
    z_audio = jax.random.normal(k_za, audio.shape, audio.dtype)
    lerpd_audio = audio * (1.0 - ts_exp_audio) + z_audio * ts_exp_audio
    target_audio = z_audio - audio

    pred_video, pred_audio = core_forward(
        params, cfg, lerpd_video, lerpd_audio, ts, mouse, btn
    )

    video_loss = jnp.mean(jnp.square(pred_video - target_video))
    audio_loss = jnp.mean(jnp.square(pred_audio - target_audio))
    return video_loss + audio_loss


# ----------------------------------------------------------------------------
# Deterministic parameter init
# ----------------------------------------------------------------------------

def init_params(key, cfg):
    d = cfg["d_model"]
    keys = iter(jax.random.split(key, 128))

    def w(shape, scale=0.02):
        return jax.random.normal(next(keys), shape, jnp.float32) * scale

    def zeros(shape):
        return jnp.zeros(shape, jnp.float32)

    params = {
        "ctrl_w": w((2 + cfg["n_buttons"], d)), "ctrl_b": zeros((d,)),
        "t_mlp1_w": w((d, d)), "t_mlp1_b": zeros((d,)),
        "t_mlp2_w": w((d, d)), "t_mlp2_b": zeros((d,)),
        "proj_in_w": w((cfg["channels"], d)),               # bias=False
        "audio_proj_in_w": w((cfg["audio_channels"], d)),   # bias=False
        "pos_enc": w((cfg["tokens_per_frame"] * cfg["n_frames"], d)),
        "blocks": [],
        "final_video": {
            "mod_w": w((d, 2 * d)), "mod_b": zeros((2 * d,)),
            "out_w": w((d, cfg["channels"])), "out_b": zeros((cfg["channels"],)),
        },
        "final_audio": {
            "mod_w": w((d, 2 * d)), "mod_b": zeros((2 * d,)),
            "out_w": w((d, cfg["audio_channels"])),
            "out_b": zeros((cfg["audio_channels"],)),
        },
    }
    for _ in range(cfg["n_layers"]):
        params["blocks"].append({
            "mod_w": w((d, 6 * d)), "mod_b": zeros((6 * d,)),
            "qkv_w": w((d, 3 * d)), "qkv_b": zeros((3 * d,)),
            "attn_out_w": w((d, d)), "attn_out_b": zeros((d,)),
            "mlp1_w": w((d, 4 * d)), "mlp1_b": zeros((4 * d,)),
            "mlp2_w": w((4 * d, d)), "mlp2_b": zeros((d,)),
        })
    return params


# ----------------------------------------------------------------------------
# Main
# ----------------------------------------------------------------------------

if __name__ == "__main__":
    h = w = 4
    cfg = dict(
        d_model=32,
        n_heads=2,
        n_layers=2,
        channels=4,
        audio_channels=8,
        n_buttons=4,
        sample_size=h,
        n_frames=2,
        tokens_per_frame=h * w + 1,   # video patches + 1 audio token per frame
        cfg_prob=0.1,
    )

    key = jax.random.PRNGKey(0)
    kp, kx, ka, km, kb, kfwd = jax.random.split(key, 6)

    b, n, c = 2, cfg["n_frames"], cfg["channels"]
    x = jax.random.normal(kx, (b, n, c, h, w), jnp.float32)
    audio = jax.random.normal(ka, (b, n, cfg["audio_channels"]), jnp.float32)
    mouse = jax.random.normal(km, (b, n, 2), jnp.float32)
    btn = (jax.random.uniform(kb, (b, n, cfg["n_buttons"])) > 0.5).astype(jnp.float32)

    params = init_params(kp, cfg)

    @jax.jit
    def loss_fn(params, x, audio, mouse, btn, key):
        return gamerft_audio_forward(params, cfg, x, audio, mouse, btn, key)

    loss = loss_fn(params, x, audio, mouse, btn, kfwd)
    loss = jax.block_until_ready(loss)
    assert loss.shape == () and bool(jnp.isfinite(loss))
    print("KERNEL_OK")
</pallas_src>

<mosaic_0001>
module attributes {stable_mosaic.version = 11 : i64} {
  func.func @_linear_kernel(%arg0: i32, %arg1: i32, %arg2: i32, %arg3: memref<4x32xf32, #tpu.memory_space<vmem>>, %arg4: memref<32x32xf32, #tpu.memory_space<vmem>>, %arg5: memref<1x32xf32, #tpu.memory_space<vmem>>, %arg6: memref<4x32xf32, #tpu.memory_space<vmem>>, %arg7: memref<4x32xf32, #tpu.memory_space<vmem>>) attributes {dimension_semantics = [#tpu.dimension_semantics<parallel>, #tpu.dimension_semantics<parallel>, #tpu.dimension_semantics<arbitrary>], iteration_bounds = array<i64: 1, 1, 1>, scalar_prefetch = 0 : i64, scratch_operands = 1 : i64, tpu.core_type = #tpu.core_type<tc>, window_params = [{transform_indices = @transform_0, window_bounds = array<i64: 4, 32>}, {transform_indices = @transform_1, window_bounds = array<i64: 32, 32>}, {transform_indices = @transform_2, window_bounds = array<i64: 1, 32>}, {transform_indices = @transform_3, window_bounds = array<i64: 4, 32>}]} {
    %c0_i32 = arith.constant 0 : i32
    %0 = arith.cmpi eq, %arg2, %c0_i32 : i32
    %1 = arith.extui %0 : i1 to i32
    %c0_i32_0 = arith.constant 0 : i32
    %2 = arith.cmpi ne, %1, %c0_i32_0 : i32
    scf.if %2 {
      %cst_10 = arith.constant 0.000000e+00 : f32
      %14 = vector.broadcast %cst_10 : f32 to vector<4x32xf32>
      %c0_11 = arith.constant 0 : index
      %c0_12 = arith.constant 0 : index
      %15 = vector.load %arg7[%c0_11, %c0_12] : memref<4x32xf32, #tpu.memory_space<vmem>>, vector<4x32xf32>
      tpu.vector_store %arg7[%c0_11, %c0_12], %14 {strides = array<i32>} : memref<4x32xf32, #tpu.memory_space<vmem>>, vector<4x32xf32>,
    } else {
    }
    %c0 = arith.constant 0 : index
    %c0_1 = arith.constant 0 : index
    %3 = vector.load %arg3[%c0, %c0_1] : memref<4x32xf32, #tpu.memory_space<vmem>>, vector<4x32xf32>
    %c0_2 = arith.constant 0 : index
    %c0_3 = arith.constant 0 : index
    %4 = vector.load %arg7[%c0_2, %c0_3] : memref<4x32xf32, #tpu.memory_space<vmem>>, vector<4x32xf32>
    %5 = arith.truncf %3 : vector<4x32xf32> to vector<4x32xbf16>
    %c0_4 = arith.constant 0 : index
    %c0_5 = arith.constant 0 : index
    %6 = vector.load %arg4[%c0_4, %c0_5] : memref<32x32xf32, #tpu.memory_space<vmem>>, vector<32x32xf32>
    %7 = arith.truncf %6 : vector<32x32xf32> to vector<32x32xbf16>
    %cst = arith.constant dense<0.000000e+00> : vector<4x32xf32>
    %8 = tpu.matmul %5, %7, %cst {dimension_numbers = #tpu.dot_dimension_numbers<[1], [0], [0], [1], [0, 0, 1, 1], [], []>} : vector<4x32xbf16>, vector<32x32xbf16>, vector<4x32xf32> -> vector<4x32xf32>
    %9 = arith.addf %4, %8 : vector<4x32xf32>
    %c0_6 = arith.constant 0 : index
    %c0_7 = arith.constant 0 : index
    %10 = vector.load %arg7[%c0_6, %c0_7] : memref<4x32xf32, #tpu.memory_space<vmem>>, vector<4x32xf32>
    tpu.vector_store %arg7[%c0_6, %c0_7], %9 {strides = array<i32>} : memref<4x32xf32, #tpu.memory_space<vmem>>, vector<4x32xf32>,
    %c0_i32_8 = arith.constant 0 : i32
    %11 = arith.cmpi eq, %arg2, %c0_i32_8 : i32
    %12 = arith.extui %11 : i1 to i32
    %c0_i32_9 = arith.constant 0 : i32
    %13 = arith.cmpi ne, %12, %c0_i32_9 : i32
    scf.if %13 {
      %c0_10 = arith.constant 0 : index
      %c0_11 = arith.constant 0 : index
      %14 = vector.load %arg7[%c0_10, %c0_11] : memref<4x32xf32, #tpu.memory_space<vmem>>, vector<4x32xf32>
      %c0_12 = arith.constant 0 : index
      %c0_13 = arith.constant 0 : index
      %15 = vector.load %arg5[%c0_12, %c0_13] : memref<1x32xf32, #tpu.memory_space<vmem>>, vector<1x32xf32>
      %16 = vector.broadcast %15 : vector<1x32xf32> to vector<4x32xf32>
      %17 = arith.addf %14, %16 : vector<4x32xf32>
      %18 = arith.negf %17 : vector<4x32xf32>
      %19 = math.exp %18 : vector<4x32xf32>
      %cst_14 = arith.constant 1.000000e+00 : f32
      %20 = vector.broadcast %cst_14 : f32 to vector<4x32xf32>
      %21 = arith.addf %20, %19 : vector<4x32xf32>
      %22 = arith.divf %20, %21 : vector<4x32xf32>
      %23 = arith.mulf %17, %22 : vector<4x32xf32>
      %c0_15 = arith.constant 0 : index
      %c0_16 = arith.constant 0 : index
      %24 = vector.load %arg6[%c0_15, %c0_16] : memref<4x32xf32, #tpu.memory_space<vmem>>, vector<4x32xf32>
      tpu.vector_store %arg6[%c0_15, %c0_16], %23 {strides = array<i32>} : memref<4x32xf32, #tpu.memory_space<vmem>>, vector<4x32xf32>,
    } else {
    }
    return
  }
  func.func @transform_0(%arg0: i32, %arg1: i32, %arg2: i32) -> (i32, i32) {
    %c0_i32 = arith.constant 0 : i32
    return %arg0, %arg2 : i32, i32
  }
  func.func @transform_1(%arg0: i32, %arg1: i32, %arg2: i32) -> (i32, i32) {
    %c0_i32 = arith.constant 0 : i32
    return %arg2, %arg1 : i32, i32
  }
  func.func @transform_2(%arg0: i32, %arg1: i32, %arg2: i32) -> (i32, i32) {
    %c0_i32 = arith.constant 0 : i32
    %c0_i32_0 = arith.constant 0 : i32
    return %c0_i32, %arg1 : i32, i32
  }
  func.func @transform_3(%arg0: i32, %arg1: i32, %arg2: i32) -> (i32, i32) {
    %c0_i32 = arith.constant 0 : i32
    return %arg0, %arg1 : i32, i32
  }
}

module attributes {stable_mosaic.version = 11 : i64} {
  func.func @_linear_kernel(%arg0: i32, %arg1: i32, %arg2: i32, %arg3: memref<4x32xf32, #tpu.memory_space<vmem>>, %arg4: memref<32x32xf32, #tpu.memory_space<vmem>>, %arg5: memref<1x32xf32, #tpu.memory_space<vmem>>, %arg6: memref<4x32xf32, #tpu.memory_space<vmem>>, %arg7: memref<4x32xf32, #tpu.memory_space<vmem>>) attributes {dimension_semantics = [#tpu.dimension_semantics<parallel>, #tpu.dimension_semantics<parallel>, #tpu.dimension_semantics<arbitrary>], iteration_bounds = array<i64: 1, 1, 1>, scalar_prefetch = 0 : i64, scratch_operands = 1 : i64, tpu.core_type = #tpu.core_type<tc>, window_params = [{transform_indices = @transform_0, window_bounds = array<i64: 4, 32>}, {transform_indices = @transform_1, window_bounds = array<i64: 32, 32>}, {transform_indices = @transform_2, window_bounds = array<i64: 1, 32>}, {transform_indices = @transform_3, window_bounds = array<i64: 4, 32>}]} {
    %c0_i32 = arith.constant 0 : i32
    %0 = arith.cmpi eq, %arg2, %c0_i32 : i32
    %1 = arith.extui %0 : i1 to i32
    %c0_i32_0 = arith.constant 0 : i32
    %2 = arith.cmpi ne, %1, %c0_i32_0 : i32
    scf.if %2 {
      %cst_10 = arith.constant 0.000000e+00 : f32
      %14 = vector.broadcast %cst_10 : f32 to vector<4x32xf32>
      %c0_11 = arith.constant 0 : index
      %c0_12 = arith.constant 0 : index
      %15 = vector.load %arg7[%c0_11, %c0_12] : memref<4x32xf32, #tpu.memory_space<vmem>>, vector<4x32xf32>
      tpu.vector_store %arg7[%c0_11, %c0_12], %14 {strides = array<i32>} : memref<4x32xf32, #tpu.memory_space<vmem>>, vector<4x32xf32>,
    } else {
    }
    %c0 = arith.constant 0 : index
    %c0_1 = arith.constant 0 : index
    %3 = vector.load %arg3[%c0, %c0_1] : memref<4x32xf32, #tpu.memory_space<vmem>>, vector<4x32xf32>
    %c0_2 = arith.constant 0 : index
    %c0_3 = arith.constant 0 : index
    %4 = vector.load %arg7[%c0_2, %c0_3] : memref<4x32xf32, #tpu.memory_space<vmem>>, vector<4x32xf32>
    %5 = arith.truncf %3 : vector<4x32xf32> to vector<4x32xbf16>
    %c0_4 = arith.constant 0 : index
    %c0_5 = arith.constant 0 : index
    %6 = vector.load %arg4[%c0_4, %c0_5] : memref<32x32xf32, #tpu.memory_space<vmem>>, vector<32x32xf32>
    %7 = arith.truncf %6 : vector<32x32xf32> to vector<32x32xbf16>
    %cst = arith.constant dense<0.000000e+00> : vector<4x32xf32>
    %8 = tpu.matmul %5, %7, %cst {dimension_numbers = #tpu.dot_dimension_numbers<[1], [0], [0], [1], [0, 0, 1, 1], [], []>} : vector<4x32xbf16>, vector<32x32xbf16>, vector<4x32xf32> -> vector<4x32xf32>
    %9 = arith.addf %4, %8 : vector<4x32xf32>
    %c0_6 = arith.constant 0 : index
    %c0_7 = arith.constant 0 : index
    %10 = vector.load %arg7[%c0_6, %c0_7] : memref<4x32xf32, #tpu.memory_space<vmem>>, vector<4x32xf32>
    tpu.vector_store %arg7[%c0_6, %c0_7], %9 {strides = array<i32>} : memref<4x32xf32, #tpu.memory_space<vmem>>, vector<4x32xf32>,
    %c0_i32_8 = arith.constant 0 : i32
    %11 = arith.cmpi eq, %arg2, %c0_i32_8 : i32
    %12 = arith.extui %11 : i1 to i32
    %c0_i32_9 = arith.constant 0 : i32
    %13 = arith.cmpi ne, %12, %c0_i32_9 : i32
    scf.if %13 {
      %c0_10 = arith.constant 0 : index
      %c0_11 = arith.constant 0 : index
      %14 = vector.load %arg7[%c0_10, %c0_11] : memref<4x32xf32, #tpu.memory_space<vmem>>, vector<4x32xf32>
      %c0_12 = arith.constant 0 : index
      %c0_13 = arith.constant 0 : index
      %15 = vector.load %arg5[%c0_12, %c0_13] : memref<1x32xf32, #tpu.memory_space<vmem>>, vector<1x32xf32>
      %16 = vector.broadcast %15 : vector<1x32xf32> to vector<4x32xf32>
      %17 = arith.addf %14, %16 : vector<4x32xf32>
      %c0_14 = arith.constant 0 : index
      %c0_15 = arith.constant 0 : index
      %18 = vector.load %arg6[%c0_14, %c0_15] : memref<4x32xf32, #tpu.memory_space<vmem>>, vector<4x32xf32>
      tpu.vector_store %arg6[%c0_14, %c0_15], %17 {strides = array<i32>} : memref<4x32xf32, #tpu.memory_space<vmem>>, vector<4x32xf32>,
    } else {
    }
    return
  }
  func.func @transform_0(%arg0: i32, %arg1: i32, %arg2: i32) -> (i32, i32) {
    %c0_i32 = arith.constant 0 : i32
    return %arg0, %arg2 : i32, i32
  }
  func.func @transform_1(%arg0: i32, %arg1: i32, %arg2: i32) -> (i32, i32) {
    %c0_i32 = arith.constant 0 : i32
    return %arg2, %arg1 : i32, i32
  }
  func.func @transform_2(%arg0: i32, %arg1: i32, %arg2: i32) -> (i32, i32) {
    %c0_i32 = arith.constant 0 : i32
    %c0_i32_0 = arith.constant 0 : i32
    return %c0_i32, %arg1 : i32, i32
  }
  func.func @transform_3(%arg0: i32, %arg1: i32, %arg2: i32) -> (i32, i32) {
    %c0_i32 = arith.constant 0 : i32
    return %arg0, %arg1 : i32, i32
  }
}

module attributes {stable_mosaic.version = 11 : i64} {
  func.func @_linear_kernel(%arg0: i32, %arg1: i32, %arg2: i32, %arg3: memref<4x32xf32, #tpu.memory_space<vmem>>, %arg4: memref<32x192xf32, #tpu.memory_space<vmem>>, %arg5: memref<1x192xf32, #tpu.memory_space<vmem>>, %arg6: memref<4x192xf32, #tpu.memory_space<vmem>>, %arg7: memref<4x192xf32, #tpu.memory_space<vmem>>) attributes {dimension_semantics = [#tpu.dimension_semantics<parallel>, #tpu.dimension_semantics<parallel>, #tpu.dimension_semantics<arbitrary>], iteration_bounds = array<i64: 1, 1, 1>, scalar_prefetch = 0 : i64, scratch_operands = 1 : i64, tpu.core_type = #tpu.core_type<tc>, window_params = [{transform_indices = @transform_0, window_bounds = array<i64: 4, 32>}, {transform_indices = @transform_1, window_bounds = array<i64: 32, 192>}, {transform_indices = @transform_2, window_bounds = array<i64: 1, 192>}, {transform_indices = @transform_3, window_bounds = array<i64: 4, 192>}]} {
    %c0_i32 = arith.constant 0 : i32
    %0 = arith.cmpi eq, %arg2, %c0_i32 : i32
    %1 = arith.extui %0 : i1 to i32
    %c0_i32_0 = arith.constant 0 : i32
    %2 = arith.cmpi ne, %1, %c0_i32_0 : i32
    scf.if %2 {
      %cst_11 = arith.constant 0.000000e+00 : f32
      %20 = vector.broadcast %cst_11 : f32 to vector<4x192xf32>
      %c0_12 = arith.constant 0 : index
      %c0_13 = arith.constant 0 : index
      %21 = vector.load %arg7[%c0_12, %c0_13] : memref<4x192xf32, #tpu.memory_space<vmem>>, vector<4x192xf32>
      tpu.vector_store %arg7[%c0_12, %c0_13], %20 {strides = array<i32>} : memref<4x192xf32, #tpu.memory_space<vmem>>, vector<4x192xf32>,
    } else {
    }
    %c0 = arith.constant 0 : index
    %c0_1 = arith.constant 0 : index
    %3 = vector.load %arg3[%c0, %c0_1] : memref<4x32xf32, #tpu.memory_space<vmem>>, vector<4x32xf32>
    %4 = arith.negf %3 : vector<4x32xf32>
    %5 = math.exp %4 : vector<4x32xf32>
    %cst = arith.constant 1.000000e+00 : f32
    %6 = vector.broadcast %cst : f32 to vector<4x32xf32>
    %7 = arith.addf %6, %5 : vector<4x32xf32>
    %8 = arith.divf %6, %7 : vector<4x32xf32>
    %9 = arith.mulf %3, %8 : vector<4x32xf32>
    %c0_2 = arith.constant 0 : index
    %c0_3 = arith.constant 0 : index
    %10 = vector.load %arg7[%c0_2, %c0_3] : memref<4x192xf32, #tpu.memory_space<vmem>>, vector<4x192xf32>
    %11 = arith.truncf %9 : vector<4x32xf32> to vector<4x32xbf16>
    %c0_4 = arith.constant 0 : index
    %c0_5 = arith.constant 0 : index
    %12 = vector.load %arg4[%c0_4, %c0_5] : memref<32x192xf32, #tpu.memory_space<vmem>>, vector<32x192xf32>
    %13 = arith.truncf %12 : vector<32x192xf32> to vector<32x192xbf16>
    %cst_6 = arith.constant dense<0.000000e+00> : vector<4x192xf32>
    %14 = tpu.matmul %11, %13, %cst_6 {dimension_numbers = #tpu.dot_dimension_numbers<[1], [0], [0], [1], [0, 0, 1, 1], [], []>} : vector<4x32xbf16>, vector<32x192xbf16>, vector<4x192xf32> -> vector<4x192xf32>
    %15 = arith.addf %10, %14 : vector<4x192xf32>
    %c0_7 = arith.constant 0 : index
    %c0_8 = arith.constant 0 : index
    %16 = vector.load %arg7[%c0_7, %c0_8] : memref<4x192xf32, #tpu.memory_space<vmem>>, vector<4x192xf32>
    tpu.vector_store %arg7[%c0_7, %c0_8], %15 {strides = array<i32>} : memref<4x192xf32, #tpu.memory_space<vmem>>, vector<4x192xf32>,
    %c0_i32_9 = arith.constant 0 : i32
    %17 = arith.cmpi eq, %arg2, %c0_i32_9 : i32
    %18 = arith.extui %17 : i1 to i32
    %c0_i32_10 = arith.constant 0 : i32
    %19 = arith.cmpi ne, %18, %c0_i32_10 : i32
    scf.if %19 {
      %c0_11 = arith.constant 0 : index
      %c0_12 = arith.constant 0 : index
      %20 = vector.load %arg7[%c0_11, %c0_12] : memref<4x192xf32, #tpu.memory_space<vmem>>, vector<4x192xf32>
      %c0_13 = arith.constant 0 : index
      %c0_14 = arith.constant 0 : index
      %21 = vector.load %arg5[%c0_13, %c0_14] : memref<1x192xf32, #tpu.memory_space<vmem>>, vector<1x192xf32>
      %22 = vector.broadcast %21 : vector<1x192xf32> to vector<4x192xf32>
      %23 = arith.addf %20, %22 : vector<4x192xf32>
      %c0_15 = arith.constant 0 : index
      %c0_16 = arith.constant 0 : index
      %24 = vector.load %arg6[%c0_15, %c0_16] : memref<4x192xf32, #tpu.memory_space<vmem>>, vector<4x192xf32>
      tpu.vector_store %arg6[%c0_15, %c0_16], %23 {strides = array<i32>} : memref<4x192xf32, #tpu.memory_space<vmem>>, vector<4x192xf32>,
    } else {
    }
    return
  }
  func.func @transform_0(%arg0: i32, %arg1: i32, %arg2: i32) -> (i32, i32) {
    %c0_i32 = arith.constant 0 : i32
    return %arg0, %arg2 : i32, i32
  }
  func.func @transform_1(%arg0: i32, %arg1: i32, %arg2: i32) -> (i32, i32) {
    %c0_i32 = arith.constant 0 : i32
    return %arg2, %arg1 : i32, i32
  }
  func.func @transform_2(%arg0: i32, %arg1: i32, %arg2: i32) -> (i32, i32) {
    %c0_i32 = arith.constant 0 : i32
    %c0_i32_0 = arith.constant 0 : i32
    return %c0_i32, %arg1 : i32, i32
  }
  func.func @transform_3(%arg0: i32, %arg1: i32, %arg2: i32) -> (i32, i32) {
    %c0_i32 = arith.constant 0 : i32
    return %arg0, %arg1 : i32, i32
  }
}

module attributes {stable_mosaic.version = 11 : i64} {
  func.func @_linear_kernel(%arg0: i32, %arg1: i32, %arg2: i32, %arg3: memref<4x6xf32, #tpu.memory_space<vmem>>, %arg4: memref<6x32xf32, #tpu.memory_space<vmem>>, %arg5: memref<1x32xf32, #tpu.memory_space<vmem>>, %arg6: memref<4x32xf32, #tpu.memory_space<vmem>>, %arg7: memref<4x32xf32, #tpu.memory_space<vmem>>) attributes {dimension_semantics = [#tpu.dimension_semantics<parallel>, #tpu.dimension_semantics<parallel>, #tpu.dimension_semantics<arbitrary>], iteration_bounds = array<i64: 1, 1, 1>, scalar_prefetch = 0 : i64, scratch_operands = 1 : i64, tpu.core_type = #tpu.core_type<tc>, window_params = [{transform_indices = @transform_0, window_bounds = array<i64: 4, 6>}, {transform_indices = @transform_1, window_bounds = array<i64: 6, 32>}, {transform_indices = @transform_2, window_bounds = array<i64: 1, 32>}, {transform_indices = @transform_3, window_bounds = array<i64: 4, 32>}]} {
    %c0_i32 = arith.constant 0 : i32
    %0 = arith.cmpi eq, %arg2, %c0_i32 : i32
    %1 = arith.extui %0 : i1 to i32
    %c0_i32_0 = arith.constant 0 : i32
    %2 = arith.cmpi ne, %1, %c0_i32_0 : i32
    scf.if %2 {
      %cst_10 = arith.constant 0.000000e+00 : f32
      %14 = vector.broadcast %cst_10 : f32 to vector<4x32xf32>
      %c0_11 = arith.constant 0 : index
      %c0_12 = arith.constant 0 : index
      %15 = vector.load %arg7[%c0_11, %c0_12] : memref<4x32xf32, #tpu.memory_space<vmem>>, vector<4x32xf32>
      tpu.vector_store %arg7[%c0_11, %c0_12], %14 {strides = array<i32>} : memref<4x32xf32, #tpu.memory_space<vmem>>, vector<4x32xf32>,
    } else {
    }
    %c0 = arith.constant 0 : index
    %c0_1 = arith.constant 0 : index
    %3 = vector.load %arg3[%c0, %c0_1] : memref<4x6xf32, #tpu.memory_space<vmem>>, vector<4x6xf32>
    %c0_2 = arith.constant 0 : index
    %c0_3 = arith.constant 0 : index
    %4 = vector.load %arg7[%c0_2, %c0_3] : memref<4x32xf32, #tpu.memory_space<vmem>>, vector<4x32xf32>
    %5 = arith.truncf %3 : vector<4x6xf32> to vector<4x6xbf16>
    %c0_4 = arith.constant 0 : index
    %c0_5 = arith.constant 0 : index
    %6 = vector.load %arg4[%c0_4, %c0_5] : memref<6x32xf32, #tpu.memory_space<vmem>>, vector<6x32xf32>
    %7 = arith.truncf %6 : vector<6x32xf32> to vector<6x32xbf16>
    %cst = arith.constant dense<0.000000e+00> : vector<4x32xf32>
    %8 = tpu.matmul %5, %7, %cst {dimension_numbers = #tpu.dot_dimension_numbers<[1], [0], [0], [1], [0, 0, 1, 1], [], []>} : vector<4x6xbf16>, vector<6x32xbf16>, vector<4x32xf32> -> vector<4x32xf32>
    %9 = arith.addf %4, %8 : vector<4x32xf32>
    %c0_6 = arith.constant 0 : index
    %c0_7 = arith.constant 0 : index
    %10 = vector.load %arg7[%c0_6, %c0_7] : memref<4x32xf32, #tpu.memory_space<vmem>>, vector<4x32xf32>
    tpu.vector_store %arg7[%c0_6, %c0_7], %9 {strides = array<i32>} : memref<4x32xf32, #tpu.memory_space<vmem>>, vector<4x32xf32>,
    %c0_i32_8 = arith.constant 0 : i32
    %11 = arith.cmpi eq, %arg2, %c0_i32_8 : i32
    %12 = arith.extui %11 : i1 to i32
    %c0_i32_9 = arith.constant 0 : i32
    %13 = arith.cmpi ne, %12, %c0_i32_9 : i32
    scf.if %13 {
      %c0_10 = arith.constant 0 : index
      %c0_11 = arith.constant 0 : index
      %14 = vector.load %arg7[%c0_10, %c0_11] : memref<4x32xf32, #tpu.memory_space<vmem>>, vector<4x32xf32>
      %c0_12 = arith.constant 0 : index
      %c0_13 = arith.constant 0 : index
      %15 = vector.load %arg5[%c0_12, %c0_13] : memref<1x32xf32, #tpu.memory_space<vmem>>, vector<1x32xf32>
      %16 = vector.broadcast %15 : vector<1x32xf32> to vector<4x32xf32>
      %17 = arith.addf %14, %16 : vector<4x32xf32>
      %18 = arith.negf %17 : vector<4x32xf32>
      %19 = math.exp %18 : vector<4x32xf32>
      %cst_14 = arith.constant 1.000000e+00 : f32
      %20 = vector.broadcast %cst_14 : f32 to vector<4x32xf32>
      %21 = arith.addf %20, %19 : vector<4x32xf32>
      %22 = arith.divf %20, %21 : vector<4x32xf32>
      %23 = arith.mulf %17, %22 : vector<4x32xf32>
      %c0_15 = arith.constant 0 : index
      %c0_16 = arith.constant 0 : index
      %24 = vector.load %arg6[%c0_15, %c0_16] : memref<4x32xf32, #tpu.memory_space<vmem>>, vector<4x32xf32>
      tpu.vector_store %arg6[%c0_15, %c0_16], %23 {strides = array<i32>} : memref<4x32xf32, #tpu.memory_space<vmem>>, vector<4x32xf32>,
    } else {
    }
    return
  }
  func.func @transform_0(%arg0: i32, %arg1: i32, %arg2: i32) -> (i32, i32) {
    %c0_i32 = arith.constant 0 : i32
    return %arg0, %arg2 : i32, i32
  }
  func.func @transform_1(%arg0: i32, %arg1: i32, %arg2: i32) -> (i32, i32) {
    %c0_i32 = arith.constant 0 : i32
    return %arg2, %arg1 : i32, i32
  }
  func.func @transform_2(%arg0: i32, %arg1: i32, %arg2: i32) -> (i32, i32) {
    %c0_i32 = arith.constant 0 : i32
    %c0_i32_0 = arith.constant 0 : i32
    return %c0_i32, %arg1 : i32, i32
  }
  func.func @transform_3(%arg0: i32, %arg1: i32, %arg2: i32) -> (i32, i32) {
    %c0_i32 = arith.constant 0 : i32
    return %arg0, %arg1 : i32, i32
  }
}

module attributes {stable_mosaic.version = 11 : i64} {
  func.func @_linear_kernel(%arg0: i32, %arg1: i32, %arg2: i32, %arg3: memref<64x4xf32, #tpu.memory_space<vmem>>, %arg4: memref<4x32xf32, #tpu.memory_space<vmem>>, %arg5: memref<1x32xf32, #tpu.memory_space<vmem>>, %arg6: memref<64x32xf32, #tpu.memory_space<vmem>>, %arg7: memref<64x32xf32, #tpu.memory_space<vmem>>) attributes {dimension_semantics = [#tpu.dimension_semantics<parallel>, #tpu.dimension_semantics<parallel>, #tpu.dimension_semantics<arbitrary>], iteration_bounds = array<i64: 1, 1, 1>, scalar_prefetch = 0 : i64, scratch_operands = 1 : i64, tpu.core_type = #tpu.core_type<tc>, window_params = [{transform_indices = @transform_0, window_bounds = array<i64: 64, 4>}, {transform_indices = @transform_1, window_bounds = array<i64: 4, 32>}, {transform_indices = @transform_2, window_bounds = array<i64: 1, 32>}, {transform_indices = @transform_3, window_bounds = array<i64: 64, 32>}]} {
    %c0_i32 = arith.constant 0 : i32
    %0 = arith.cmpi eq, %arg2, %c0_i32 : i32
    %1 = arith.extui %0 : i1 to i32
    %c0_i32_0 = arith.constant 0 : i32
    %2 = arith.cmpi ne, %1, %c0_i32_0 : i32
    scf.if %2 {
      %cst_10 = arith.constant 0.000000e+00 : f32
      %14 = vector.broadcast %cst_10 : f32 to vector<64x32xf32>
      %c0_11 = arith.constant 0 : index
      %c0_12 = arith.constant 0 : index
      %15 = vector.load %arg7[%c0_11, %c0_12] : memref<64x32xf32, #tpu.memory_space<vmem>>, vector<64x32xf32>
      tpu.vector_store %arg7[%c0_11, %c0_12], %14 {strides = array<i32>} : memref<64x32xf32, #tpu.memory_space<vmem>>, vector<64x32xf32>,
    } else {
    }
    %c0 = arith.constant 0 : index
    %c0_1 = arith.constant 0 : index
    %3 = vector.load %arg3[%c0, %c0_1] : memref<64x4xf32, #tpu.memory_space<vmem>>, vector<64x4xf32>
    %c0_2 = arith.constant 0 : index
    %c0_3 = arith.constant 0 : index
    %4 = vector.load %arg7[%c0_2, %c0_3] : memref<64x32xf32, #tpu.memory_space<vmem>>, vector<64x32xf32>
    %5 = arith.truncf %3 : vector<64x4xf32> to vector<64x4xbf16>
    %c0_4 = arith.constant 0 : index
    %c0_5 = arith.constant 0 : index
    %6 = vector.load %arg4[%c0_4, %c0_5] : memref<4x32xf32, #tpu.memory_space<vmem>>, vector<4x32xf32>
    %7 = arith.truncf %6 : vector<4x32xf32> to vector<4x32xbf16>
    %cst = arith.constant dense<0.000000e+00> : vector<64x32xf32>
    %8 = tpu.matmul %5, %7, %cst {dimension_numbers = #tpu.dot_dimension_numbers<[1], [0], [0], [1], [0, 0, 1, 1], [], []>} : vector<64x4xbf16>, vector<4x32xbf16>, vector<64x32xf32> -> vector<64x32xf32>
    %9 = arith.addf %4, %8 : vector<64x32xf32>
    %c0_6 = arith.constant 0 : index
    %c0_7 = arith.constant 0 : index
    %10 = vector.load %arg7[%c0_6, %c0_7] : memref<64x32xf32, #tpu.memory_space<vmem>>, vector<64x32xf32>
    tpu.vector_store %arg7[%c0_6, %c0_7], %9 {strides = array<i32>} : memref<64x32xf32, #tpu.memory_space<vmem>>, vector<64x32xf32>,
    %c0_i32_8 = arith.constant 0 : i32
    %11 = arith.cmpi eq, %arg2, %c0_i32_8 : i32
    %12 = arith.extui %11 : i1 to i32
    %c0_i32_9 = arith.constant 0 : i32
    %13 = arith.cmpi ne, %12, %c0_i32_9 : i32
    scf.if %13 {
      %c0_10 = arith.constant 0 : index
      %c0_11 = arith.constant 0 : index
      %14 = vector.load %arg7[%c0_10, %c0_11] : memref<64x32xf32, #tpu.memory_space<vmem>>, vector<64x32xf32>
      %c0_12 = arith.constant 0 : index
      %c0_13 = arith.constant 0 : index
      %15 = vector.load %arg5[%c0_12, %c0_13] : memref<1x32xf32, #tpu.memory_space<vmem>>, vector<1x32xf32>
      %16 = vector.broadcast %15 : vector<1x32xf32> to vector<64x32xf32>
      %17 = arith.addf %14, %16 : vector<64x32xf32>
      %c0_14 = arith.constant 0 : index
      %c0_15 = arith.constant 0 : index
      %18 = vector.load %arg6[%c0_14, %c0_15] : memref<64x32xf32, #tpu.memory_space<vmem>>, vector<64x32xf32>
      tpu.vector_store %arg6[%c0_14, %c0_15], %17 {strides = array<i32>} : memref<64x32xf32, #tpu.memory_space<vmem>>, vector<64x32xf32>,
    } else {
    }
    return
  }
  func.func @transform_0(%arg0: i32, %arg1: i32, %arg2: i32) -> (i32, i32) {
    %c0_i32 = arith.constant 0 : i32
    return %arg0, %arg2 : i32, i32
  }
  func.func @transform_1(%arg0: i32, %arg1: i32, %arg2: i32) -> (i32, i32) {
    %c0_i32 = arith.constant 0 : i32
    return %arg2, %arg1 : i32, i32
  }
  func.func @transform_2(%arg0: i32, %arg1: i32, %arg2: i32) -> (i32, i32) {
    %c0_i32 = arith.constant 0 : i32
    %c0_i32_0 = arith.constant 0 : i32
    return %c0_i32, %arg1 : i32, i32
  }
  func.func @transform_3(%arg0: i32, %arg1: i32, %arg2: i32) -> (i32, i32) {
    %c0_i32 = arith.constant 0 : i32
    return %arg0, %arg1 : i32, i32
  }
}

module attributes {stable_mosaic.version = 11 : i64} {
  func.func @_linear_kernel(%arg0: i32, %arg1: i32, %arg2: i32, %arg3: memref<4x8xf32, #tpu.memory_space<vmem>>, %arg4: memref<8x32xf32, #tpu.memory_space<vmem>>, %arg5: memref<1x32xf32, #tpu.memory_space<vmem>>, %arg6: memref<4x32xf32, #tpu.memory_space<vmem>>, %arg7: memref<4x32xf32, #tpu.memory_space<vmem>>) attributes {dimension_semantics = [#tpu.dimension_semantics<parallel>, #tpu.dimension_semantics<parallel>, #tpu.dimension_semantics<arbitrary>], iteration_bounds = array<i64: 1, 1, 1>, scalar_prefetch = 0 : i64, scratch_operands = 1 : i64, tpu.core_type = #tpu.core_type<tc>, window_params = [{transform_indices = @transform_0, window_bounds = array<i64: 4, 8>}, {transform_indices = @transform_1, window_bounds = array<i64: 8, 32>}, {transform_indices = @transform_2, window_bounds = array<i64: 1, 32>}, {transform_indices = @transform_3, window_bounds = array<i64: 4, 32>}]} {
    %c0_i32 = arith.constant 0 : i32
    %0 = arith.cmpi eq, %arg2, %c0_i32 : i32
    %1 = arith.extui %0 : i1 to i32
    %c0_i32_0 = arith.constant 0 : i32
    %2 = arith.cmpi ne, %1, %c0_i32_0 : i32
    scf.if %2 {
      %cst_10 = arith.constant 0.000000e+00 : f32
      %14 = vector.broadcast %cst_10 : f32 to vector<4x32xf32>
      %c0_11 = arith.constant 0 : index
      %c0_12 = arith.constant 0 : index
      %15 = vector.load %arg7[%c0_11, %c0_12] : memref<4x32xf32, #tpu.memory_space<vmem>>, vector<4x32xf32>
      tpu.vector_store %arg7[%c0_11, %c0_12], %14 {strides = array<i32>} : memref<4x32xf32, #tpu.memory_space<vmem>>, vector<4x32xf32>,
    } else {
    }
    %c0 = arith.constant 0 : index
    %c0_1 = arith.constant 0 : index
    %3 = vector.load %arg3[%c0, %c0_1] : memref<4x8xf32, #tpu.memory_space<vmem>>, vector<4x8xf32>
    %c0_2 = arith.constant 0 : index
    %c0_3 = arith.constant 0 : index
    %4 = vector.load %arg7[%c0_2, %c0_3] : memref<4x32xf32, #tpu.memory_space<vmem>>, vector<4x32xf32>
    %5 = arith.truncf %3 : vector<4x8xf32> to vector<4x8xbf16>
    %c0_4 = arith.constant 0 : index
    %c0_5 = arith.constant 0 : index
    %6 = vector.load %arg4[%c0_4, %c0_5] : memref<8x32xf32, #tpu.memory_space<vmem>>, vector<8x32xf32>
    %7 = arith.truncf %6 : vector<8x32xf32> to vector<8x32xbf16>
    %cst = arith.constant dense<0.000000e+00> : vector<4x32xf32>
    %8 = tpu.matmul %5, %7, %cst {dimension_numbers = #tpu.dot_dimension_numbers<[1], [0], [0], [1], [0, 0, 1, 1], [], []>} : vector<4x8xbf16>, vector<8x32xbf16>, vector<4x32xf32> -> vector<4x32xf32>
    %9 = arith.addf %4, %8 : vector<4x32xf32>
    %c0_6 = arith.constant 0 : index
    %c0_7 = arith.constant 0 : index
    %10 = vector.load %arg7[%c0_6, %c0_7] : memref<4x32xf32, #tpu.memory_space<vmem>>, vector<4x32xf32>
    tpu.vector_store %arg7[%c0_6, %c0_7], %9 {strides = array<i32>} : memref<4x32xf32, #tpu.memory_space<vmem>>, vector<4x32xf32>,
    %c0_i32_8 = arith.constant 0 : i32
    %11 = arith.cmpi eq, %arg2, %c0_i32_8 : i32
    %12 = arith.extui %11 : i1 to i32
    %c0_i32_9 = arith.constant 0 : i32
    %13 = arith.cmpi ne, %12, %c0_i32_9 : i32
    scf.if %13 {
      %c0_10 = arith.constant 0 : index
      %c0_11 = arith.constant 0 : index
      %14 = vector.load %arg7[%c0_10, %c0_11] : memref<4x32xf32, #tpu.memory_space<vmem>>, vector<4x32xf32>
      %c0_12 = arith.constant 0 : index
      %c0_13 = arith.constant 0 : index
      %15 = vector.load %arg5[%c0_12, %c0_13] : memref<1x32xf32, #tpu.memory_space<vmem>>, vector<1x32xf32>
      %16 = vector.broadcast %15 : vector<1x32xf32> to vector<4x32xf32>
      %17 = arith.addf %14, %16 : vector<4x32xf32>
      %c0_14 = arith.constant 0 : index
      %c0_15 = arith.constant 0 : index
      %18 = vector.load %arg6[%c0_14, %c0_15] : memref<4x32xf32, #tpu.memory_space<vmem>>, vector<4x32xf32>
      tpu.vector_store %arg6[%c0_14, %c0_15], %17 {strides = array<i32>} : memref<4x32xf32, #tpu.memory_space<vmem>>, vector<4x32xf32>,
    } else {
    }
    return
  }
  func.func @transform_0(%arg0: i32, %arg1: i32, %arg2: i32) -> (i32, i32) {
    %c0_i32 = arith.constant 0 : i32
    return %arg0, %arg2 : i32, i32
  }
  func.func @transform_1(%arg0: i32, %arg1: i32, %arg2: i32) -> (i32, i32) {
    %c0_i32 = arith.constant 0 : i32
    return %arg2, %arg1 : i32, i32
  }
  func.func @transform_2(%arg0: i32, %arg1: i32, %arg2: i32) -> (i32, i32) {
    %c0_i32 = arith.constant 0 : i32
    %c0_i32_0 = arith.constant 0 : i32
    return %c0_i32, %arg1 : i32, i32
  }
  func.func @transform_3(%arg0: i32, %arg1: i32, %arg2: i32) -> (i32, i32) {
    %c0_i32 = arith.constant 0 : i32
    return %arg0, %arg1 : i32, i32
  }
}

module attributes {stable_mosaic.version = 11 : i64} {
  func.func @_adaln_proj_kernel(%arg0: i32, %arg1: i32, %arg2: memref<1x17x32xf32, #tpu.memory_space<vmem>>, %arg3: memref<1x1x32xf32, #tpu.memory_space<vmem>>, %arg4: memref<1x1x32xf32, #tpu.memory_space<vmem>>, %arg5: memref<32x96xf32, #tpu.memory_space<vmem>>, %arg6: memref<1x96xf32, #tpu.memory_space<vmem>>, %arg7: memref<1x17x96xf32, #tpu.memory_space<vmem>>) attributes {dimension_semantics = [#tpu.dimension_semantics<parallel>, #tpu.dimension_semantics<parallel>], iteration_bounds = array<i64: 4, 1>, scalar_prefetch = 0 : i64, scratch_operands = 0 : i64, tpu.core_type = #tpu.core_type<tc>, window_params = [{transform_indices = @transform_0, window_bounds = array<i64: 1, 17, 32>}, {transform_indices = @transform_1, window_bounds = array<i64: 1, 1, 32>}, {transform_indices = @transform_2, window_bounds = array<i64: 1, 1, 32>}, {transform_indices = @transform_3, window_bounds = array<i64: 32, 96>}, {transform_indices = @transform_4, window_bounds = array<i64: 1, 96>}, {transform_indices = @transform_5, window_bounds = array<i64: 1, 17, 96>}]} {
    %c0 = arith.constant 0 : index
    %c0_0 = arith.constant 0 : index
    %c0_1 = arith.constant 0 : index
    %0 = vector.load %arg2[%c0, %c0_0, %c0_1] : memref<1x17x32xf32, #tpu.memory_space<vmem>>, vector<1x17x32xf32>
    %1 = vector.shape_cast %0 : vector<1x17x32xf32> to vector<17x32xf32>
    %cst = arith.constant dense<0.000000e+00> : vector<17xf32>
    %2 = vector.multi_reduction <add>, %1, %cst [1] : vector<17x32xf32> to vector<17xf32>
    %3 = vector.shape_cast %2 : vector<17xf32> to vector<17x1xf32>
    %cst_2 = arith.constant 3.200000e+01 : f32
    %4 = vector.broadcast %cst_2 : f32 to vector<17x1xf32>
    %5 = arith.divf %3, %4 : vector<17x1xf32>
    %6 = vector.broadcast %5 : vector<17x1xf32> to vector<17x32xf32>
    %7 = arith.subf %1, %6 : vector<17x32xf32>
    %8 = arith.mulf %7, %7 : vector<17x32xf32>
    %cst_3 = arith.constant dense<0.000000e+00> : vector<17xf32>
    %9 = vector.multi_reduction <add>, %8, %cst_3 [1] : vector<17x32xf32> to vector<17xf32>
    %10 = vector.shape_cast %9 : vector<17xf32> to vector<17x1xf32>
    %cst_4 = arith.constant 3.200000e+01 : f32
    %11 = vector.broadcast %cst_4 : f32 to vector<17x1xf32>
    %12 = arith.divf %10, %11 : vector<17x1xf32>
    %13 = vector.broadcast %5 : vector<17x1xf32> to vector<17x32xf32>
    %14 = arith.subf %1, %13 : vector<17x32xf32>
    %cst_5 = arith.constant 9.99999997E-7 : f32
    %15 = vector.broadcast %cst_5 : f32 to vector<17x1xf32>
    %16 = arith.addf %12, %15 : vector<17x1xf32>
    %17 = math.rsqrt %16 : vector<17x1xf32>
    %18 = vector.broadcast %17 : vector<17x1xf32> to vector<17x32xf32>
    %19 = arith.mulf %14, %18 : vector<17x32xf32>
    %c0_6 = arith.constant 0 : index
    %c0_7 = arith.constant 0 : index
    %c0_8 = arith.constant 0 : index
    %20 = vector.load %arg3[%c0_6, %c0_7, %c0_8] : memref<1x1x32xf32, #tpu.memory_space<vmem>>, vector<1x1x32xf32>
    %21 = vector.shape_cast %20 : vector<1x1x32xf32> to vector<1x32xf32>
    %cst_9 = arith.constant 1.000000e+00 : f32
    %22 = vector.broadcast %cst_9 : f32 to vector<1x32xf32>
    %23 = arith.addf %22, %21 : vector<1x32xf32>
    %24 = vector.broadcast %23 : vector<1x32xf32> to vector<17x32xf32>
    %25 = arith.mulf %19, %24 : vector<17x32xf32>
    %c0_10 = arith.constant 0 : index
    %c0_11 = arith.constant 0 : index
    %c0_12 = arith.constant 0 : index
    %26 = vector.load %arg4[%c0_10, %c0_11, %c0_12] : memref<1x1x32xf32, #tpu.memory_space<vmem>>, vector<1x1x32xf32>
    %27 = vector.shape_cast %26 : vector<1x1x32xf32> to vector<1x32xf32>
    %28 = vector.broadcast %27 : vector<1x32xf32> to vector<17x32xf32>
    %29 = arith.addf %25, %28 : vector<17x32xf32>
    %30 = arith.truncf %29 : vector<17x32xf32> to vector<17x32xbf16>
    %c0_13 = arith.constant 0 : index
    %c0_14 = arith.constant 0 : index
    %31 = vector.load %arg5[%c0_13, %c0_14] : memref<32x96xf32, #tpu.memory_space<vmem>>, vector<32x96xf32>
    %32 = arith.truncf %31 : vector<32x96xf32> to vector<32x96xbf16>
    %cst_15 = arith.constant dense<0.000000e+00> : vector<17x96xf32>
    %33 = tpu.matmul %30, %32, %cst_15 {dimension_numbers = #tpu.dot_dimension_numbers<[1], [0], [0], [1], [0, 0, 1, 1], [], []>} : vector<17x32xbf16>, vector<32x96xbf16>, vector<17x96xf32> -> vector<17x96xf32>
    %c0_16 = arith.constant 0 : index
    %c0_17 = arith.constant 0 : index
    %34 = vector.load %arg6[%c0_16, %c0_17] : memref<1x96xf32, #tpu.memory_space<vmem>>, vector<1x96xf32>
    %35 = vector.broadcast %34 : vector<1x96xf32> to vector<17x96xf32>
    %36 = arith.addf %33, %35 : vector<17x96xf32>
    %c0_18 = arith.constant 0 : index
    %c0_19 = arith.constant 0 : index
    %c0_20 = arith.constant 0 : index
    %37 = vector.load %arg7[%c0_18, %c0_19, %c0_20] : memref<1x17x96xf32, #tpu.memory_space<vmem>>, vector<1x17x96xf32>
    %38 = vector.shape_cast %37 : vector<1x17x96xf32> to vector<17x96xf32>
    %39 = vector.shape_cast %36 : vector<17x96xf32> to vector<1x17x96xf32>
    tpu.vector_store %arg7[%c0_18, %c0_19, %c0_20], %39 {strides = array<i32>} : memref<1x17x96xf32, #tpu.memory_space<vmem>>, vector<1x17x96xf32>,
    return
  }
  func.func @transform_0(%arg0: i32, %arg1: i32) -> (i32, i32, i32) {
    %c0_i32 = arith.constant 0 : i32
    %c0_i32_0 = arith.constant 0 : i32
    %c0_i32_1 = arith.constant 0 : i32
    return %arg0, %c0_i32, %c0_i32_0 : i32, i32, i32
  }
  func.func @transform_1(%arg0: i32, %arg1: i32) -> (i32, i32, i32) {
    %c0_i32 = arith.constant 0 : i32
    %c0_i32_0 = arith.constant 0 : i32
    %c0_i32_1 = arith.constant 0 : i32
    return %arg0, %c0_i32, %c0_i32_0 : i32, i32, i32
  }
  func.func @transform_2(%arg0: i32, %arg1: i32) -> (i32, i32, i32) {
    %c0_i32 = arith.constant 0 : i32
    %c0_i32_0 = arith.constant 0 : i32
    %c0_i32_1 = arith.constant 0 : i32
    return %arg0, %c0_i32, %c0_i32_0 : i32, i32, i32
  }
  func.func @transform_3(%arg0: i32, %arg1: i32) -> (i32, i32) {
    %c0_i32 = arith.constant 0 : i32
    %c0_i32_0 = arith.constant 0 : i32
    return %c0_i32, %arg1 : i32, i32
  }
  func.func @transform_4(%arg0: i32, %arg1: i32) -> (i32, i32) {
    %c0_i32 = arith.constant 0 : i32
    %c0_i32_0 = arith.constant 0 : i32
    return %c0_i32, %arg1 : i32, i32
  }
  func.func @transform_5(%arg0: i32, %arg1: i32) -> (i32, i32, i32) {
    %c0_i32 = arith.constant 0 : i32
    %c0_i32_0 = arith.constant 0 : i32
    return %arg0, %c0_i32, %arg1 : i32, i32, i32
  }
}

module attributes {stable_mosaic.version = 11 : i64} {
  func.func @_attn_kernel(%arg0: i32, %arg1: memref<1x2x34x16xf32, #tpu.memory_space<vmem>>, %arg2: memref<1x2x34x16xf32, #tpu.memory_space<vmem>>, %arg3: memref<1x2x34x16xf32, #tpu.memory_space<vmem>>, %arg4: memref<1x2x34x16xf32, #tpu.memory_space<vmem>>) attributes {dimension_semantics = [#tpu.dimension_semantics<parallel>], iteration_bounds = array<i64: 2>, scalar_prefetch = 0 : i64, scratch_operands = 0 : i64, tpu.core_type = #tpu.core_type<tc>, window_params = [{transform_indices = @transform_0, window_bounds = array<i64: 1, 2, 34, 16>}, {transform_indices = @transform_1, window_bounds = array<i64: 1, 2, 34, 16>}, {transform_indices = @transform_2, window_bounds = array<i64: 1, 2, 34, 16>}, {transform_indices = @transform_3, window_bounds = array<i64: 1, 2, 34, 16>}]} {
    %c0 = arith.constant 0 : index
    %c0_0 = arith.constant 0 : index
    %c0_1 = arith.constant 0 : index
    %c0_2 = arith.constant 0 : index
    %0 = vector.load %arg1[%c0, %c0_0, %c0_1, %c0_2] : memref<1x2x34x16xf32, #tpu.memory_space<vmem>>, vector<1x2x34x16xf32>
    %1 = vector.shape_cast %0 : vector<1x2x34x16xf32> to vector<2x34x16xf32>
    %cst = arith.constant 2.500000e-01 : f32
    %2 = vector.broadcast %cst : f32 to vector<2x34x16xf32>
    %3 = arith.mulf %1, %2 : vector<2x34x16xf32>
    %c0_3 = arith.constant 0 : index
    %c0_4 = arith.constant 0 : index
    %c0_5 = arith.constant 0 : index
    %c0_6 = arith.constant 0 : index
    %4 = vector.load %arg2[%c0_3, %c0_4, %c0_5, %c0_6] : memref<1x2x34x16xf32, #tpu.memory_space<vmem>>, vector<1x2x34x16xf32>
    %5 = vector.shape_cast %4 : vector<1x2x34x16xf32> to vector<2x34x16xf32>
    %c0_7 = arith.constant 0 : index
    %c0_8 = arith.constant 0 : index
    %c0_9 = arith.constant 0 : index
    %c0_10 = arith.constant 0 : index
    %6 = vector.load %arg3[%c0_7, %c0_8, %c0_9, %c0_10] : memref<1x2x34x16xf32, #tpu.memory_space<vmem>>, vector<1x2x34x16xf32>
    %7 = vector.shape_cast %6 : vector<1x2x34x16xf32> to vector<2x34x16xf32>
    %8 = arith.truncf %3 : vector<2x34x16xf32> to vector<2x34x16xbf16>
    %9 = arith.truncf %5 : vector<2x34x16xf32> to vector<2x34x16xbf16>
    %cst_11 = arith.constant dense<0.000000e+00> : vector<2x34x34xf32>
    %10 = tpu.matmul %8, %9, %cst_11 {dimension_numbers = #tpu.dot_dimension_numbers<[2], [2], [1], [1], [0, 0, 0, 1, 1, 1], [0], [0]>} : vector<2x34x16xbf16>, vector<2x34x16xbf16>, vector<2x34x34xf32> -> vector<2x34x34xf32>
    %cst_12 = arith.constant dense<0xFF800000> : vector<2x34xf32>
    %11 = vector.multi_reduction <maximumf>, %10, %cst_12 [2] : vector<2x34x34xf32> to vector<2x34xf32>
    %12 = vector.shape_cast %11 : vector<2x34xf32> to vector<2x34x1xf32>
    %13 = vector.broadcast %12 : vector<2x34x1xf32> to vector<2x34x34xf32>
    %14 = arith.subf %10, %13 : vector<2x34x34xf32>
    %15 = math.exp %14 : vector<2x34x34xf32>
    %cst_13 = arith.constant dense<0.000000e+00> : vector<2x34xf32>
    %16 = vector.multi_reduction <add>, %15, %cst_13 [2] : vector<2x34x34xf32> to vector<2x34xf32>
    %17 = vector.shape_cast %16 : vector<2x34xf32> to vector<2x34x1xf32>
    %18 = tpu.reciprocal %17 {approx = true} : vector<2x34x1xf32> -> vector<2x34x1xf32>
    %19 = vector.broadcast %18 : vector<2x34x1xf32> to vector<2x34x34xf32>
    %20 = arith.mulf %15, %19 : vector<2x34x34xf32>
    %21 = arith.truncf %20 : vector<2x34x34xf32> to vector<2x34x34xbf16>
    %22 = arith.truncf %7 : vector<2x34x16xf32> to vector<2x34x16xbf16>
    %cst_14 = arith.constant dense<0.000000e+00> : vector<2x34x16xf32>
    %23 = tpu.matmul %21, %22, %cst_14 {dimension_numbers = #tpu.dot_dimension_numbers<[2], [1], [1], [2], [0, 0, 0, 1, 1, 2], [0], [0]>} : vector<2x34x34xbf16>, vector<2x34x16xbf16>, vector<2x34x16xf32> -> vector<2x34x16xf32>
    %c0_15 = arith.constant 0 : index
    %c0_16 = arith.constant 0 : index
    %c0_17 = arith.constant 0 : index
    %c0_18 = arith.constant 0 : index
    %24 = vector.load %arg4[%c0_15, %c0_16, %c0_17, %c0_18] : memref<1x2x34x16xf32, #tpu.memory_space<vmem>>, vector<1x2x34x16xf32>
    %25 = vector.shape_cast %24 : vector<1x2x34x16xf32> to vector<2x34x16xf32>
    %26 = vector.shape_cast %23 : vector<2x34x16xf32> to vector<1x2x34x16xf32>
    tpu.vector_store %arg4[%c0_15, %c0_16, %c0_17, %c0_18], %26 {strides = array<i32>} : memref<1x2x34x16xf32, #tpu.memory_space<vmem>>, vector<1x2x34x16xf32>,
    return
  }
  func.func @transform_0(%arg0: i32) -> (i32, i32, i32, i32) {
    %c0_i32 = arith.constant 0 : i32
    %c0_i32_0 = arith.constant 0 : i32
    %c0_i32_1 = arith.constant 0 : i32
    %c0_i32_2 = arith.constant 0 : i32
    return %arg0, %c0_i32, %c0_i32_0, %c0_i32_1 : i32, i32, i32, i32
  }
  func.func @transform_1(%arg0: i32) -> (i32, i32, i32, i32) {
    %c0_i32 = arith.constant 0 : i32
    %c0_i32_0 = arith.constant 0 : i32
    %c0_i32_1 = arith.constant 0 : i32
    %c0_i32_2 = arith.constant 0 : i32
    return %arg0, %c0_i32, %c0_i32_0, %c0_i32_1 : i32, i32, i32, i32
  }
  func.func @transform_2(%arg0: i32) -> (i32, i32, i32, i32) {
    %c0_i32 = arith.constant 0 : i32
    %c0_i32_0 = arith.constant 0 : i32
    %c0_i32_1 = arith.constant 0 : i32
    %c0_i32_2 = arith.constant 0 : i32
    return %arg0, %c0_i32, %c0_i32_0, %c0_i32_1 : i32, i32, i32, i32
  }
  func.func @transform_3(%arg0: i32) -> (i32, i32, i32, i32) {
    %c0_i32 = arith.constant 0 : i32
    %c0_i32_0 = arith.constant 0 : i32
    %c0_i32_1 = arith.constant 0 : i32
    %c0_i32_2 = arith.constant 0 : i32
    return %arg0, %c0_i32, %c0_i32_0, %c0_i32_1 : i32, i32, i32, i32
  }
}

module attributes {stable_mosaic.version = 11 : i64} {
  func.func @_res_gate_proj_kernel(%arg0: i32, %arg1: i32, %arg2: memref<1x17x32xf32, #tpu.memory_space<vmem>>, %arg3: memref<32x32xf32, #tpu.memory_space<vmem>>, %arg4: memref<1x32xf32, #tpu.memory_space<vmem>>, %arg5: memref<1x1x32xf32, #tpu.memory_space<vmem>>, %arg6: memref<1x17x32xf32, #tpu.memory_space<vmem>>, %arg7: memref<1x17x32xf32, #tpu.memory_space<vmem>>, %arg8: memref<17x32xf32, #tpu.memory_space<vmem>>) attributes {dimension_semantics = [#tpu.dimension_semantics<parallel>, #tpu.dimension_semantics<arbitrary>], iteration_bounds = array<i64: 4, 1>, scalar_prefetch = 0 : i64, scratch_operands = 1 : i64, tpu.core_type = #tpu.core_type<tc>, window_params = [{transform_indices = @transform_0, window_bounds = array<i64: 1, 17, 32>}, {transform_indices = @transform_1, window_bounds = array<i64: 32, 32>}, {pipeline_mode = #tpu.pipeline_mode<synchronous>, transform_indices = @transform_2, window_bounds = array<i64: 1, 32>}, {transform_indices = @transform_3, window_bounds = array<i64: 1, 1, 32>}, {transform_indices = @transform_4, window_bounds = array<i64: 1, 17, 32>}, {transform_indices = @transform_5, window_bounds = array<i64: 1, 17, 32>}]} {
    %c0_i32 = arith.constant 0 : i32
    %0 = arith.cmpi eq, %arg1, %c0_i32 : i32
    %1 = arith.extui %0 : i1 to i32
    %c0_i32_0 = arith.constant 0 : i32
    %2 = arith.cmpi ne, %1, %c0_i32_0 : i32
    scf.if %2 {
      %cst_11 = arith.constant 0.000000e+00 : f32
      %15 = vector.broadcast %cst_11 : f32 to vector<17x32xf32>
      %c0_12 = arith.constant 0 : index
      %c0_13 = arith.constant 0 : index
      %16 = vector.load %arg8[%c0_12, %c0_13] : memref<17x32xf32, #tpu.memory_space<vmem>>, vector<17x32xf32>
      tpu.vector_store %arg8[%c0_12, %c0_13], %15 {strides = array<i32>} : memref<17x32xf32, #tpu.memory_space<vmem>>, vector<17x32xf32>,
    } else {
    }
    %c0 = arith.constant 0 : index
    %c0_1 = arith.constant 0 : index
    %3 = vector.load %arg8[%c0, %c0_1] : memref<17x32xf32, #tpu.memory_space<vmem>>, vector<17x32xf32>
    %c0_2 = arith.constant 0 : index
    %c0_3 = arith.constant 0 : index
    %c0_4 = arith.constant 0 : index
    %4 = vector.load %arg2[%c0_2, %c0_3, %c0_4] : memref<1x17x32xf32, #tpu.memory_space<vmem>>, vector<1x17x32xf32>
    %5 = vector.shape_cast %4 : vector<1x17x32xf32> to vector<17x32xf32>
    %6 = arith.truncf %5 : vector<17x32xf32> to vector<17x32xbf16>
    %c0_5 = arith.constant 0 : index
    %c0_6 = arith.constant 0 : index
    %7 = vector.load %arg3[%c0_5, %c0_6] : memref<32x32xf32, #tpu.memory_space<vmem>>, vector<32x32xf32>
    %8 = arith.truncf %7 : vector<32x32xf32> to vector<32x32xbf16>
    %cst = arith.constant dense<0.000000e+00> : vector<17x32xf32>
    %9 = tpu.matmul %6, %8, %cst {dimension_numbers = #tpu.dot_dimension_numbers<[1], [0], [0], [1], [0, 0, 1, 1], [], []>} : vector<17x32xbf16>, vector<32x32xbf16>, vector<17x32xf32> -> vector<17x32xf32>
    %10 = arith.addf %3, %9 : vector<17x32xf32>
    %c0_7 = arith.constant 0 : index
    %c0_8 = arith.constant 0 : index
    %11 = vector.load %arg8[%c0_7, %c0_8] : memref<17x32xf32, #tpu.memory_space<vmem>>, vector<17x32xf32>
    tpu.vector_store %arg8[%c0_7, %c0_8], %10 {strides = array<i32>} : memref<17x32xf32, #tpu.memory_space<vmem>>, vector<17x32xf32>,
    %c0_i32_9 = arith.constant 0 : i32
    %12 = arith.cmpi eq, %arg1, %c0_i32_9 : i32
    %13 = arith.extui %12 : i1 to i32
    %c0_i32_10 = arith.constant 0 : i32
    %14 = arith.cmpi ne, %13, %c0_i32_10 : i32
    scf.if %14 {
      %c0_11 = arith.constant 0 : index
      %c0_12 = arith.constant 0 : index
      %c0_13 = arith.constant 0 : index
      %15 = vector.load %arg6[%c0_11, %c0_12, %c0_13] : memref<1x17x32xf32, #tpu.memory_space<vmem>>, vector<1x17x32xf32>
      %16 = vector.shape_cast %15 : vector<1x17x32xf32> to vector<17x32xf32>
      %c0_14 = arith.constant 0 : index
      %c0_15 = arith.constant 0 : index
      %c0_16 = arith.constant 0 : index
      %17 = vector.load %arg5[%c0_14, %c0_15, %c0_16] : memref<1x1x32xf32, #tpu.memory_space<vmem>>, vector<1x1x32xf32>
      %18 = vector.shape_cast %17 : vector<1x1x32xf32> to vector<1x32xf32>
      %c0_17 = arith.constant 0 : index
      %c0_18 = arith.constant 0 : index
      %19 = vector.load %arg8[%c0_17, %c0_18] : memref<17x32xf32, #tpu.memory_space<vmem>>, vector<17x32xf32>
      %c0_19 = arith.constant 0 : index
      %c0_20 = arith.constant 0 : index
      %20 = vector.load %arg4[%c0_19, %c0_20] : memref<1x32xf32, #tpu.memory_space<vmem>>, vector<1x32xf32>
      %21 = vector.broadcast %20 : vector<1x32xf32> to vector<17x32xf32>
      %22 = arith.addf %19, %21 : vector<17x32xf32>
      %23 = vector.broadcast %18 : vector<1x32xf32> to vector<17x32xf32>
      %24 = arith.mulf %23, %22 : vector<17x32xf32>
      %25 = arith.addf %16, %24 : vector<17x32xf32>
      %c0_21 = arith.constant 0 : index
      %c0_22 = arith.constant 0 : index
      %c0_23 = arith.constant 0 : index
      %26 = vector.load %arg7[%c0_21, %c0_22, %c0_23] : memref<1x17x32xf32, #tpu.memory_space<vmem>>, vector<1x17x32xf32>
      %27 = vector.shape_cast %26 : vector<1x17x32xf32> to vector<17x32xf32>
      %28 = vector.shape_cast %25 : vector<17x32xf32> to vector<1x17x32xf32>
      tpu.vector_store %arg7[%c0_21, %c0_22, %c0_23], %28 {strides = array<i32>} : memref<1x17x32xf32, #tpu.memory_space<vmem>>, vector<1x17x32xf32>,
    } else {
    }
    return
  }
  func.func @transform_0(%arg0: i32, %arg1: i32) -> (i32, i32, i32) {
    %c0_i32 = arith.constant 0 : i32
    %c0_i32_0 = arith.constant 0 : i32
    return %arg0, %c0_i32, %arg1 : i32, i32, i32
  }
  func.func @transform_1(%arg0: i32, %arg1: i32) -> (i32, i32) {
    %c0_i32 = arith.constant 0 : i32
    %c0_i32_0 = arith.constant 0 : i32
    return %arg1, %c0_i32 : i32, i32
  }
  func.func @transform_2(%arg0: i32, %arg1: i32) -> (i32, i32) {
    %c0_i32 = arith.constant 0 : i32
    %c0_i32_0 = arith.constant 0 : i32
    %c0_i32_1 = arith.constant 0 : i32
    return %c0_i32, %c0_i32_0 : i32, i32
  }
  func.func @transform_3(%arg0: i32, %arg1: i32) -> (i32, i32, i32) {
    %c0_i32 = arith.constant 0 : i32
    %c0_i32_0 = arith.constant 0 : i32
    %c0_i32_1 = arith.constant 0 : i32
    return %arg0, %c0_i32, %c0_i32_0 : i32, i32, i32
  }
  func.func @transform_4(%arg0: i32, %arg1: i32) -> (i32, i32, i32) {
    %c0_i32 = arith.constant 0 : i32
    %c0_i32_0 = arith.constant 0 : i32
    %c0_i32_1 = arith.constant 0 : i32
    return %arg0, %c0_i32, %c0_i32_0 : i32, i32, i32
  }
  func.func @transform_5(%arg0: i32, %arg1: i32) -> (i32, i32, i32) {
    %c0_i32 = arith.constant 0 : i32
    %c0_i32_0 = arith.constant 0 : i32
    %c0_i32_1 = arith.constant 0 : i32
    return %arg0, %c0_i32, %c0_i32_0 : i32, i32, i32
  }
}

module attributes {stable_mosaic.version = 11 : i64} {
  func.func @_adaln_proj_kernel(%arg0: i32, %arg1: i32, %arg2: memref<1x17x32xf32, #tpu.memory_space<vmem>>, %arg3: memref<1x1x32xf32, #tpu.memory_space<vmem>>, %arg4: memref<1x1x32xf32, #tpu.memory_space<vmem>>, %arg5: memref<32x128xf32, #tpu.memory_space<vmem>>, %arg6: memref<1x128xf32, #tpu.memory_space<vmem>>, %arg7: memref<1x17x128xf32, #tpu.memory_space<vmem>>) attributes {dimension_semantics = [#tpu.dimension_semantics<parallel>, #tpu.dimension_semantics<parallel>], iteration_bounds = array<i64: 4, 1>, scalar_prefetch = 0 : i64, scratch_operands = 0 : i64, tpu.core_type = #tpu.core_type<tc>, window_params = [{transform_indices = @transform_0, window_bounds = array<i64: 1, 17, 32>}, {transform_indices = @transform_1, window_bounds = array<i64: 1, 1, 32>}, {transform_indices = @transform_2, window_bounds = array<i64: 1, 1, 32>}, {transform_indices = @transform_3, window_bounds = array<i64: 32, 128>}, {transform_indices = @transform_4, window_bounds = array<i64: 1, 128>}, {transform_indices = @transform_5, window_bounds = array<i64: 1, 17, 128>}]} {
    %c0 = arith.constant 0 : index
    %c0_0 = arith.constant 0 : index
    %c0_1 = arith.constant 0 : index
    %0 = vector.load %arg2[%c0, %c0_0, %c0_1] : memref<1x17x32xf32, #tpu.memory_space<vmem>>, vector<1x17x32xf32>
    %1 = vector.shape_cast %0 : vector<1x17x32xf32> to vector<17x32xf32>
    %cst = arith.constant dense<0.000000e+00> : vector<17xf32>
    %2 = vector.multi_reduction <add>, %1, %cst [1] : vector<17x32xf32> to vector<17xf32>
    %3 = vector.shape_cast %2 : vector<17xf32> to vector<17x1xf32>
    %cst_2 = arith.constant 3.200000e+01 : f32
    %4 = vector.broadcast %cst_2 : f32 to vector<17x1xf32>
    %5 = arith.divf %3, %4 : vector<17x1xf32>
    %6 = vector.broadcast %5 : vector<17x1xf32> to vector<17x32xf32>
    %7 = arith.subf %1, %6 : vector<17x32xf32>
    %8 = arith.mulf %7, %7 : vector<17x32xf32>
    %cst_3 = arith.constant dense<0.000000e+00> : vector<17xf32>
    %9 = vector.multi_reduction <add>, %8, %cst_3 [1] : vector<17x32xf32> to vector<17xf32>
    %10 = vector.shape_cast %9 : vector<17xf32> to vector<17x1xf32>
    %cst_4 = arith.constant 3.200000e+01 : f32
    %11 = vector.broadcast %cst_4 : f32 to vector<17x1xf32>
    %12 = arith.divf %10, %11 : vector<17x1xf32>
    %13 = vector.broadcast %5 : vector<17x1xf32> to vector<17x32xf32>
    %14 = arith.subf %1, %13 : vector<17x32xf32>
    %cst_5 = arith.constant 9.99999997E-7 : f32
    %15 = vector.broadcast %cst_5 : f32 to vector<17x1xf32>
    %16 = arith.addf %12, %15 : vector<17x1xf32>
    %17 = math.rsqrt %16 : vector<17x1xf32>
    %18 = vector.broadcast %17 : vector<17x1xf32> to vector<17x32xf32>
    %19 = arith.mulf %14, %18 : vector<17x32xf32>
    %c0_6 = arith.constant 0 : index
    %c0_7 = arith.constant 0 : index
    %c0_8 = arith.constant 0 : index
    %20 = vector.load %arg3[%c0_6, %c0_7, %c0_8] : memref<1x1x32xf32, #tpu.memory_space<vmem>>, vector<1x1x32xf32>
    %21 = vector.shape_cast %20 : vector<1x1x32xf32> to vector<1x32xf32>
    %cst_9 = arith.constant 1.000000e+00 : f32
    %22 = vector.broadcast %cst_9 : f32 to vector<1x32xf32>
    %23 = arith.addf %22, %21 : vector<1x32xf32>
    %24 = vector.broadcast %23 : vector<1x32xf32> to vector<17x32xf32>
    %25 = arith.mulf %19, %24 : vector<17x32xf32>
    %c0_10 = arith.constant 0 : index
    %c0_11 = arith.constant 0 : index
    %c0_12 = arith.constant 0 : index
    %26 = vector.load %arg4[%c0_10, %c0_11, %c0_12] : memref<1x1x32xf32, #tpu.memory_space<vmem>>, vector<1x1x32xf32>
    %27 = vector.shape_cast %26 : vector<1x1x32xf32> to vector<1x32xf32>
    %28 = vector.broadcast %27 : vector<1x32xf32> to vector<17x32xf32>
    %29 = arith.addf %25, %28 : vector<17x32xf32>
    %30 = arith.truncf %29 : vector<17x32xf32> to vector<17x32xbf16>
    %c0_13 = arith.constant 0 : index
    %c0_14 = arith.constant 0 : index
    %31 = vector.load %arg5[%c0_13, %c0_14] : memref<32x128xf32, #tpu.memory_space<vmem>>, vector<32x128xf32>
    %32 = arith.truncf %31 : vector<32x128xf32> to vector<32x128xbf16>
    %cst_15 = arith.constant dense<0.000000e+00> : vector<17x128xf32>
    %33 = tpu.matmul %30, %32, %cst_15 {dimension_numbers = #tpu.dot_dimension_numbers<[1], [0], [0], [1], [0, 0, 1, 1], [], []>} : vector<17x32xbf16>, vector<32x128xbf16>, vector<17x128xf32> -> vector<17x128xf32>
    %c0_16 = arith.constant 0 : index
    %c0_17 = arith.constant 0 : index
    %34 = vector.load %arg6[%c0_16, %c0_17] : memref<1x128xf32, #tpu.memory_space<vmem>>, vector<1x128xf32>
    %35 = vector.broadcast %34 : vector<1x128xf32> to vector<17x128xf32>
    %36 = arith.addf %33, %35 : vector<17x128xf32>
    %37 = arith.mulf %36, %36 : vector<17x128xf32>
    %38 = arith.mulf %36, %37 : vector<17x128xf32>
    %cst_18 = arith.constant 4.471500e-02 : f32
    %39 = vector.broadcast %cst_18 : f32 to vector<17x128xf32>
    %40 = arith.mulf %39, %38 : vector<17x128xf32>
    %41 = arith.addf %36, %40 : vector<17x128xf32>
    %cst_19 = arith.constant 0.797884583 : f32
    %42 = vector.broadcast %cst_19 : f32 to vector<17x128xf32>
    %43 = arith.mulf %42, %41 : vector<17x128xf32>
    %44 = math.tanh %43 : vector<17x128xf32>
    %cst_20 = arith.constant 1.000000e+00 : f32
    %45 = vector.broadcast %cst_20 : f32 to vector<17x128xf32>
    %46 = arith.addf %45, %44 : vector<17x128xf32>
    %cst_21 = arith.constant 5.000000e-01 : f32
    %47 = vector.broadcast %cst_21 : f32 to vector<17x128xf32>
    %48 = arith.mulf %47, %46 : vector<17x128xf32>
    %49 = arith.mulf %36, %48 : vector<17x128xf32>
    %c0_22 = arith.constant 0 : index
    %c0_23 = arith.constant 0 : index
    %c0_24 = arith.constant 0 : index
    %50 = vector.load %arg7[%c0_22, %c0_23, %c0_24] : memref<1x17x128xf32, #tpu.memory_space<vmem>>, vector<1x17x128xf32>
    %51 = vector.shape_cast %50 : vector<1x17x128xf32> to vector<17x128xf32>
    %52 = vector.shape_cast %49 : vector<17x128xf32> to vector<1x17x128xf32>
    tpu.vector_store %arg7[%c0_22, %c0_23, %c0_24], %52 {strides = array<i32>} : memref<1x17x128xf32, #tpu.memory_space<vmem>>, vector<1x17x128xf32>,
    return
  }
  func.func @transform_0(%arg0: i32, %arg1: i32) -> (i32, i32, i32) {
    %c0_i32 = arith.constant 0 : i32
    %c0_i32_0 = arith.constant 0 : i32
    %c0_i32_1 = arith.constant 0 : i32
    return %arg0, %c0_i32, %c0_i32_0 : i32, i32, i32
  }
  func.func @transform_1(%arg0: i32, %arg1: i32) -> (i32, i32, i32) {
    %c0_i32 = arith.constant 0 : i32
    %c0_i32_0 = arith.constant 0 : i32
    %c0_i32_1 = arith.constant 0 : i32
    return %arg0, %c0_i32, %c0_i32_0 : i32, i32, i32
  }
  func.func @transform_2(%arg0: i32, %arg1: i32) -> (i32, i32, i32) {
    %c0_i32 = arith.constant 0 : i32
    %c0_i32_0 = arith.constant 0 : i32
    %c0_i32_1 = arith.constant 0 : i32
    return %arg0, %c0_i32, %c0_i32_0 : i32, i32, i32
  }
  func.func @transform_3(%arg0: i32, %arg1: i32) -> (i32, i32) {
    %c0_i32 = arith.constant 0 : i32
    %c0_i32_0 = arith.constant 0 : i32
    return %c0_i32, %arg1 : i32, i32
  }
  func.func @transform_4(%arg0: i32, %arg1: i32) -> (i32, i32) {
    %c0_i32 = arith.constant 0 : i32
    %c0_i32_0 = arith.constant 0 : i32
    return %c0_i32, %arg1 : i32, i32
  }
  func.func @transform_5(%arg0: i32, %arg1: i32) -> (i32, i32, i32) {
    %c0_i32 = arith.constant 0 : i32
    %c0_i32_0 = arith.constant 0 : i32
    return %arg0, %c0_i32, %arg1 : i32, i32, i32
  }
}

module attributes {stable_mosaic.version = 11 : i64} {
  func.func @_res_gate_proj_kernel(%arg0: i32, %arg1: i32, %arg2: memref<1x17x128xf32, #tpu.memory_space<vmem>>, %arg3: memref<128x32xf32, #tpu.memory_space<vmem>>, %arg4: memref<1x32xf32, #tpu.memory_space<vmem>>, %arg5: memref<1x1x32xf32, #tpu.memory_space<vmem>>, %arg6: memref<1x17x32xf32, #tpu.memory_space<vmem>>, %arg7: memref<1x17x32xf32, #tpu.memory_space<vmem>>, %arg8: memref<17x32xf32, #tpu.memory_space<vmem>>) attributes {dimension_semantics = [#tpu.dimension_semantics<parallel>, #tpu.dimension_semantics<arbitrary>], iteration_bounds = array<i64: 4, 1>, scalar_prefetch = 0 : i64, scratch_operands = 1 : i64, tpu.core_type = #tpu.core_type<tc>, window_params = [{transform_indices = @transform_0, window_bounds = array<i64: 1, 17, 128>}, {transform_indices = @transform_1, window_bounds = array<i64: 128, 32>}, {pipeline_mode = #tpu.pipeline_mode<synchronous>, transform_indices = @transform_2, window_bounds = array<i64: 1, 32>}, {transform_indices = @transform_3, window_bounds = array<i64: 1, 1, 32>}, {transform_indices = @transform_4, window_bounds = array<i64: 1, 17, 32>}, {transform_indices = @transform_5, window_bounds = array<i64: 1, 17, 32>}]} {
    %c0_i32 = arith.constant 0 : i32
    %0 = arith.cmpi eq, %arg1, %c0_i32 : i32
    %1 = arith.extui %0 : i1 to i32
    %c0_i32_0 = arith.constant 0 : i32
    %2 = arith.cmpi ne, %1, %c0_i32_0 : i32
    scf.if %2 {
      %cst_11 = arith.constant 0.000000e+00 : f32
      %15 = vector.broadcast %cst_11 : f32 to vector<17x32xf32>
      %c0_12 = arith.constant 0 : index
      %c0_13 = arith.constant 0 : index
      %16 = vector.load %arg8[%c0_12, %c0_13] : memref<17x32xf32, #tpu.memory_space<vmem>>, vector<17x32xf32>
      tpu.vector_store %arg8[%c0_12, %c0_13], %15 {strides = array<i32>} : memref<17x32xf32, #tpu.memory_space<vmem>>, vector<17x32xf32>,
    } else {
    }
    %c0 = arith.constant 0 : index
    %c0_1 = arith.constant 0 : index
    %3 = vector.load %arg8[%c0, %c0_1] : memref<17x32xf32, #tpu.memory_space<vmem>>, vector<17x32xf32>
    %c0_2 = arith.constant 0 : index
    %c0_3 = arith.constant 0 : index
    %c0_4 = arith.constant 0 : index
    %4 = vector.load %arg2[%c0_2, %c0_3, %c0_4] : memref<1x17x128xf32, #tpu.memory_space<vmem>>, vector<1x17x128xf32>
    %5 = vector.shape_cast %4 : vector<1x17x128xf32> to vector<17x128xf32>
    %6 = arith.truncf %5 : vector<17x128xf32> to vector<17x128xbf16>
    %c0_5 = arith.constant 0 : index
    %c0_6 = arith.constant 0 : index
    %7 = vector.load %arg3[%c0_5, %c0_6] : memref<128x32xf32, #tpu.memory_space<vmem>>, vector<128x32xf32>
    %8 = arith.truncf %7 : vector<128x32xf32> to vector<128x32xbf16>
    %cst = arith.constant dense<0.000000e+00> : vector<17x32xf32>
    %9 = tpu.matmul %6, %8, %cst {dimension_numbers = #tpu.dot_dimension_numbers<[1], [0], [0], [1], [0, 0, 1, 1], [], []>} : vector<17x128xbf16>, vector<128x32xbf16>, vector<17x32xf32> -> vector<17x32xf32>
    %10 = arith.addf %3, %9 : vector<17x32xf32>
    %c0_7 = arith.constant 0 : index
    %c0_8 = arith.constant 0 : index
    %11 = vector.load %arg8[%c0_7, %c0_8] : memref<17x32xf32, #tpu.memory_space<vmem>>, vector<17x32xf32>
    tpu.vector_store %arg8[%c0_7, %c0_8], %10 {strides = array<i32>} : memref<17x32xf32, #tpu.memory_space<vmem>>, vector<17x32xf32>,
    %c0_i32_9 = arith.constant 0 : i32
    %12 = arith.cmpi eq, %arg1, %c0_i32_9 : i32
    %13 = arith.extui %12 : i1 to i32
    %c0_i32_10 = arith.constant 0 : i32
    %14 = arith.cmpi ne, %13, %c0_i32_10 : i32
    scf.if %14 {
      %c0_11 = arith.constant 0 : index
      %c0_12 = arith.constant 0 : index
      %c0_13 = arith.constant 0 : index
      %15 = vector.load %arg6[%c0_11, %c0_12, %c0_13] : memref<1x17x32xf32, #tpu.memory_space<vmem>>, vector<1x17x32xf32>
      %16 = vector.shape_cast %15 : vector<1x17x32xf32> to vector<17x32xf32>
      %c0_14 = arith.constant 0 : index
      %c0_15 = arith.constant 0 : index
      %c0_16 = arith.constant 0 : index
      %17 = vector.load %arg5[%c0_14, %c0_15, %c0_16] : memref<1x1x32xf32, #tpu.memory_space<vmem>>, vector<1x1x32xf32>
      %18 = vector.shape_cast %17 : vector<1x1x32xf32> to vector<1x32xf32>
      %c0_17 = arith.constant 0 : index
      %c0_18 = arith.constant 0 : index
      %19 = vector.load %arg8[%c0_17, %c0_18] : memref<17x32xf32, #tpu.memory_space<vmem>>, vector<17x32xf32>
      %c0_19 = arith.constant 0 : index
      %c0_20 = arith.constant 0 : index
      %20 = vector.load %arg4[%c0_19, %c0_20] : memref<1x32xf32, #tpu.memory_space<vmem>>, vector<1x32xf32>
      %21 = vector.broadcast %20 : vector<1x32xf32> to vector<17x32xf32>
      %22 = arith.addf %19, %21 : vector<17x32xf32>
      %23 = vector.broadcast %18 : vector<1x32xf32> to vector<17x32xf32>
      %24 = arith.mulf %23, %22 : vector<17x32xf32>
      %25 = arith.addf %16, %24 : vector<17x32xf32>
      %c0_21 = arith.constant 0 : index
      %c0_22 = arith.constant 0 : index
      %c0_23 = arith.constant 0 : index
      %26 = vector.load %arg7[%c0_21, %c0_22, %c0_23] : memref<1x17x32xf32, #tpu.memory_space<vmem>>, vector<1x17x32xf32>
      %27 = vector.shape_cast %26 : vector<1x17x32xf32> to vector<17x32xf32>
      %28 = vector.shape_cast %25 : vector<17x32xf32> to vector<1x17x32xf32>
      tpu.vector_store %arg7[%c0_21, %c0_22, %c0_23], %28 {strides = array<i32>} : memref<1x17x32xf32, #tpu.memory_space<vmem>>, vector<1x17x32xf32>,
    } else {
    }
    return
  }
  func.func @transform_0(%arg0: i32, %arg1: i32) -> (i32, i32, i32) {
    %c0_i32 = arith.constant 0 : i32
    %c0_i32_0 = arith.constant 0 : i32
    return %arg0, %c0_i32, %arg1 : i32, i32, i32
  }
  func.func @transform_1(%arg0: i32, %arg1: i32) -> (i32, i32) {
    %c0_i32 = arith.constant 0 : i32
    %c0_i32_0 = arith.constant 0 : i32
    return %arg1, %c0_i32 : i32, i32
  }
  func.func @transform_2(%arg0: i32, %arg1: i32) -> (i32, i32) {
    %c0_i32 = arith.constant 0 : i32
    %c0_i32_0 = arith.constant 0 : i32
    %c0_i32_1 = arith.constant 0 : i32
    return %c0_i32, %c0_i32_0 : i32, i32
  }
  func.func @transform_3(%arg0: i32, %arg1: i32) -> (i32, i32, i32) {
    %c0_i32 = arith.constant 0 : i32
    %c0_i32_0 = arith.constant 0 : i32
    %c0_i32_1 = arith.constant 0 : i32
    return %arg0, %c0_i32, %c0_i32_0 : i32, i32, i32
  }
  func.func @transform_4(%arg0: i32, %arg1: i32) -> (i32, i32, i32) {
    %c0_i32 = arith.constant 0 : i32
    %c0_i32_0 = arith.constant 0 : i32
    %c0_i32_1 = arith.constant 0 : i32
    return %arg0, %c0_i32, %c0_i32_0 : i32, i32, i32
  }
  func.func @transform_5(%arg0: i32, %arg1: i32) -> (i32, i32, i32) {
    %c0_i32 = arith.constant 0 : i32
    %c0_i32_0 = arith.constant 0 : i32
    %c0_i32_1 = arith.constant 0 : i32
    return %arg0, %c0_i32, %c0_i32_0 : i32, i32, i32
  }
}

module attributes {stable_mosaic.version = 11 : i64} {
  func.func @_linear_kernel(%arg0: i32, %arg1: i32, %arg2: i32, %arg3: memref<4x32xf32, #tpu.memory_space<vmem>>, %arg4: memref<32x64xf32, #tpu.memory_space<vmem>>, %arg5: memref<1x64xf32, #tpu.memory_space<vmem>>, %arg6: memref<4x64xf32, #tpu.memory_space<vmem>>, %arg7: memref<4x64xf32, #tpu.memory_space<vmem>>) attributes {dimension_semantics = [#tpu.dimension_semantics<parallel>, #tpu.dimension_semantics<parallel>, #tpu.dimension_semantics<arbitrary>], iteration_bounds = array<i64: 1, 1, 1>, scalar_prefetch = 0 : i64, scratch_operands = 1 : i64, tpu.core_type = #tpu.core_type<tc>, window_params = [{transform_indices = @transform_0, window_bounds = array<i64: 4, 32>}, {transform_indices = @transform_1, window_bounds = array<i64: 32, 64>}, {transform_indices = @transform_2, window_bounds = array<i64: 1, 64>}, {transform_indices = @transform_3, window_bounds = array<i64: 4, 64>}]} {
    %c0_i32 = arith.constant 0 : i32
    %0 = arith.cmpi eq, %arg2, %c0_i32 : i32
    %1 = arith.extui %0 : i1 to i32
    %c0_i32_0 = arith.constant 0 : i32
    %2 = arith.cmpi ne, %1, %c0_i32_0 : i32
    scf.if %2 {
      %cst_11 = arith.constant 0.000000e+00 : f32
      %20 = vector.broadcast %cst_11 : f32 to vector<4x64xf32>
      %c0_12 = arith.constant 0 : index
      %c0_13 = arith.constant 0 : index
      %21 = vector.load %arg7[%c0_12, %c0_13] : memref<4x64xf32, #tpu.memory_space<vmem>>, vector<4x64xf32>
      tpu.vector_store %arg7[%c0_12, %c0_13], %20 {strides = array<i32>} : memref<4x64xf32, #tpu.memory_space<vmem>>, vector<4x64xf32>,
    } else {
    }
    %c0 = arith.constant 0 : index
    %c0_1 = arith.constant 0 : index
    %3 = vector.load %arg3[%c0, %c0_1] : memref<4x32xf32, #tpu.memory_space<vmem>>, vector<4x32xf32>
    %4 = arith.negf %3 : vector<4x32xf32>
    %5 = math.exp %4 : vector<4x32xf32>
    %cst = arith.constant 1.000000e+00 : f32
    %6 = vector.broadcast %cst : f32 to vector<4x32xf32>
    %7 = arith.addf %6, %5 : vector<4x32xf32>
    %8 = arith.divf %6, %7 : vector<4x32xf32>
    %9 = arith.mulf %3, %8 : vector<4x32xf32>
    %c0_2 = arith.constant 0 : index
    %c0_3 = arith.constant 0 : index
    %10 = vector.load %arg7[%c0_2, %c0_3] : memref<4x64xf32, #tpu.memory_space<vmem>>, vector<4x64xf32>
    %11 = arith.truncf %9 : vector<4x32xf32> to vector<4x32xbf16>
    %c0_4 = arith.constant 0 : index
    %c0_5 = arith.constant 0 : index
    %12 = vector.load %arg4[%c0_4, %c0_5] : memref<32x64xf32, #tpu.memory_space<vmem>>, vector<32x64xf32>
    %13 = arith.truncf %12 : vector<32x64xf32> to vector<32x64xbf16>
    %cst_6 = arith.constant dense<0.000000e+00> : vector<4x64xf32>
    %14 = tpu.matmul %11, %13, %cst_6 {dimension_numbers = #tpu.dot_dimension_numbers<[1], [0], [0], [1], [0, 0, 1, 1], [], []>} : vector<4x32xbf16>, vector<32x64xbf16>, vector<4x64xf32> -> vector<4x64xf32>
    %15 = arith.addf %10, %14 : vector<4x64xf32>
    %c0_7 = arith.constant 0 : index
    %c0_8 = arith.constant 0 : index
    %16 = vector.load %arg7[%c0_7, %c0_8] : memref<4x64xf32, #tpu.memory_space<vmem>>, vector<4x64xf32>
    tpu.vector_store %arg7[%c0_7, %c0_8], %15 {strides = array<i32>} : memref<4x64xf32, #tpu.memory_space<vmem>>, vector<4x64xf32>,
    %c0_i32_9 = arith.constant 0 : i32
    %17 = arith.cmpi eq, %arg2, %c0_i32_9 : i32
    %18 = arith.extui %17 : i1 to i32
    %c0_i32_10 = arith.constant 0 : i32
    %19 = arith.cmpi ne, %18, %c0_i32_10 : i32
    scf.if %19 {
      %c0_11 = arith.constant 0 : index
      %c0_12 = arith.constant 0 : index
      %20 = vector.load %arg7[%c0_11, %c0_12] : memref<4x64xf32, #tpu.memory_space<vmem>>, vector<4x64xf32>
      %c0_13 = arith.constant 0 : index
      %c0_14 = arith.constant 0 : index
      %21 = vector.load %arg5[%c0_13, %c0_14] : memref<1x64xf32, #tpu.memory_space<vmem>>, vector<1x64xf32>
      %22 = vector.broadcast %21 : vector<1x64xf32> to vector<4x64xf32>
      %23 = arith.addf %20, %22 : vector<4x64xf32>
      %c0_15 = arith.constant 0 : index
      %c0_16 = arith.constant 0 : index
      %24 = vector.load %arg6[%c0_15, %c0_16] : memref<4x64xf32, #tpu.memory_space<vmem>>, vector<4x64xf32>
      tpu.vector_store %arg6[%c0_15, %c0_16], %23 {strides = array<i32>} : memref<4x64xf32, #tpu.memory_space<vmem>>, vector<4x64xf32>,
    } else {
    }
    return
  }
  func.func @transform_0(%arg0: i32, %arg1: i32, %arg2: i32) -> (i32, i32) {
    %c0_i32 = arith.constant 0 : i32
    return %arg0, %arg2 : i32, i32
  }
  func.func @transform_1(%arg0: i32, %arg1: i32, %arg2: i32) -> (i32, i32) {
    %c0_i32 = arith.constant 0 : i32
    return %arg2, %arg1 : i32, i32
  }
  func.func @transform_2(%arg0: i32, %arg1: i32, %arg2: i32) -> (i32, i32) {
    %c0_i32 = arith.constant 0 : i32
    %c0_i32_0 = arith.constant 0 : i32
    return %c0_i32, %arg1 : i32, i32
  }
  func.func @transform_3(%arg0: i32, %arg1: i32, %arg2: i32) -> (i32, i32) {
    %c0_i32 = arith.constant 0 : i32
    return %arg0, %arg1 : i32, i32
  }
}

module attributes {stable_mosaic.version = 11 : i64} {
  func.func @_adaln_proj_kernel(%arg0: i32, %arg1: i32, %arg2: memref<1x1x32xf32, #tpu.memory_space<vmem>>, %arg3: memref<1x1x32xf32, #tpu.memory_space<vmem>>, %arg4: memref<1x1x32xf32, #tpu.memory_space<vmem>>, %arg5: memref<32x128xf32, #tpu.memory_space<vmem>>, %arg6: memref<1x128xf32, #tpu.memory_space<vmem>>, %arg7: memref<1x1x128xf32, #tpu.memory_space<vmem>>) attributes {dimension_semantics = [#tpu.dimension_semantics<parallel>, #tpu.dimension_semantics<parallel>], iteration_bounds = array<i64: 4, 1>, scalar_prefetch = 0 : i64, scratch_operands = 0 : i64, tpu.core_type = #tpu.core_type<tc>, window_params = [{transform_indices = @transform_0, window_bounds = array<i64: 1, 1, 32>}, {transform_indices = @transform_1, window_bounds = array<i64: 1, 1, 32>}, {transform_indices = @transform_2, window_bounds = array<i64: 1, 1, 32>}, {transform_indices = @transform_3, window_bounds = array<i64: 32, 128>}, {transform_indices = @transform_4, window_bounds = array<i64: 1, 128>}, {transform_indices = @transform_5, window_bounds = array<i64: 1, 1, 128>}]} {
    %c0 = arith.constant 0 : index
    %c0_0 = arith.constant 0 : index
    %c0_1 = arith.constant 0 : index
    %0 = vector.load %arg2[%c0, %c0_0, %c0_1] : memref<1x1x32xf32, #tpu.memory_space<vmem>>, vector<1x1x32xf32>
    %1 = vector.shape_cast %0 : vector<1x1x32xf32> to vector<1x32xf32>
    %cst = arith.constant dense<0.000000e+00> : vector<1xf32>
    %2 = vector.multi_reduction <add>, %1, %cst [1] : vector<1x32xf32> to vector<1xf32>
    %3 = vector.shape_cast %2 : vector<1xf32> to vector<1x1xf32>
    %cst_2 = arith.constant 3.200000e+01 : f32
    %4 = vector.broadcast %cst_2 : f32 to vector<1x1xf32>
    %5 = arith.divf %3, %4 : vector<1x1xf32>
    %6 = vector.broadcast %5 : vector<1x1xf32> to vector<1x32xf32>
    %7 = arith.subf %1, %6 : vector<1x32xf32>
    %8 = arith.mulf %7, %7 : vector<1x32xf32>
    %cst_3 = arith.constant dense<0.000000e+00> : vector<1xf32>
    %9 = vector.multi_reduction <add>, %8, %cst_3 [1] : vector<1x32xf32> to vector<1xf32>
    %10 = vector.shape_cast %9 : vector<1xf32> to vector<1x1xf32>
    %cst_4 = arith.constant 3.200000e+01 : f32
    %11 = vector.broadcast %cst_4 : f32 to vector<1x1xf32>
    %12 = arith.divf %10, %11 : vector<1x1xf32>
    %13 = vector.broadcast %5 : vector<1x1xf32> to vector<1x32xf32>
    %14 = arith.subf %1, %13 : vector<1x32xf32>
    %cst_5 = arith.constant 9.99999997E-7 : f32
    %15 = vector.broadcast %cst_5 : f32 to vector<1x1xf32>
    %16 = arith.addf %12, %15 : vector<1x1xf32>
    %17 = math.rsqrt %16 : vector<1x1xf32>
    %18 = vector.broadcast %17 : vector<1x1xf32> to vector<1x32xf32>
    %19 = arith.mulf %14, %18 : vector<1x32xf32>
    %c0_6 = arith.constant 0 : index
    %c0_7 = arith.constant 0 : index
    %c0_8 = arith.constant 0 : index
    %20 = vector.load %arg3[%c0_6, %c0_7, %c0_8] : memref<1x1x32xf32, #tpu.memory_space<vmem>>, vector<1x1x32xf32>
    %21 = vector.shape_cast %20 : vector<1x1x32xf32> to vector<1x32xf32>
    %cst_9 = arith.constant 1.000000e+00 : f32
    %22 = vector.broadcast %cst_9 : f32 to vector<1x32xf32>
    %23 = arith.addf %22, %21 : vector<1x32xf32>
    %24 = arith.mulf %19, %23 : vector<1x32xf32>
    %c0_10 = arith.constant 0 : index
    %c0_11 = arith.constant 0 : index
    %c0_12 = arith.constant 0 : index
    %25 = vector.load %arg4[%c0_10, %c0_11, %c0_12] : memref<1x1x32xf32, #tpu.memory_space<vmem>>, vector<1x1x32xf32>
    %26 = vector.shape_cast %25 : vector<1x1x32xf32> to vector<1x32xf32>
    %27 = arith.addf %24, %26 : vector<1x32xf32>
    %28 = arith.truncf %27 : vector<1x32xf32> to vector<1x32xbf16>
    %c0_13 = arith.constant 0 : index
    %c0_14 = arith.constant 0 : index
    %29 = vector.load %arg5[%c0_13, %c0_14] : memref<32x128xf32, #tpu.memory_space<vmem>>, vector<32x128xf32>
    %30 = arith.truncf %29 : vector<32x128xf32> to vector<32x128xbf16>
    %cst_15 = arith.constant dense<0.000000e+00> : vector<1x128xf32>
    %31 = tpu.matmul %28, %30, %cst_15 {dimension_numbers = #tpu.dot_dimension_numbers<[1], [0], [0], [1], [0, 0, 1, 1], [], []>} : vector<1x32xbf16>, vector<32x128xbf16>, vector<1x128xf32> -> vector<1x128xf32>
    %c0_16 = arith.constant 0 : index
    %c0_17 = arith.constant 0 : index
    %32 = vector.load %arg6[%c0_16, %c0_17] : memref<1x128xf32, #tpu.memory_space<vmem>>, vector<1x128xf32>
    %33 = arith.addf %31, %32 : vector<1x128xf32>
    %c0_18 = arith.constant 0 : index
    %c0_19 = arith.constant 0 : index
    %c0_20 = arith.constant 0 : index
    %34 = vector.load %arg7[%c0_18, %c0_19, %c0_20] : memref<1x1x128xf32, #tpu.memory_space<vmem>>, vector<1x1x128xf32>
    %35 = vector.shape_cast %34 : vector<1x1x128xf32> to vector<1x128xf32>
    %36 = vector.shape_cast %33 : vector<1x128xf32> to vector<1x1x128xf32>
    tpu.vector_store %arg7[%c0_18, %c0_19, %c0_20], %36 {strides = array<i32>} : memref<1x1x128xf32, #tpu.memory_space<vmem>>, vector<1x1x128xf32>,
    return
  }
  func.func @transform_0(%arg0: i32, %arg1: i32) -> (i32, i32, i32) {
    %c0_i32 = arith.constant 0 : i32
    %c0_i32_0 = arith.constant 0 : i32
    %c0_i32_1 = arith.constant 0 : i32
    return %arg0, %c0_i32, %c0_i32_0 : i32, i32, i32
  }
  func.func @transform_1(%arg0: i32, %arg1: i32) -> (i32, i32, i32) {
    %c0_i32 = arith.constant 0 : i32
    %c0_i32_0 = arith.constant 0 : i32
    %c0_i32_1 = arith.constant 0 : i32
    return %arg0, %c0_i32, %c0_i32_0 : i32, i32, i32
  }
  func.func @transform_2(%arg0: i32, %arg1: i32) -> (i32, i32, i32) {
    %c0_i32 = arith.constant 0 : i32
    %c0_i32_0 = arith.constant 0 : i32
    %c0_i32_1 = arith.constant 0 : i32
    return %arg0, %c0_i32, %c0_i32_0 : i32, i32, i32
  }
  func.func @transform_3(%arg0: i32, %arg1: i32) -> (i32, i32) {
    %c0_i32 = arith.constant 0 : i32
    %c0_i32_0 = arith.constant 0 : i32
    return %c0_i32, %arg1 : i32, i32
  }
  func.func @transform_4(%arg0: i32, %arg1: i32) -> (i32, i32) {
    %c0_i32 = arith.constant 0 : i32
    %c0_i32_0 = arith.constant 0 : i32
    return %c0_i32, %arg1 : i32, i32
  }
  func.func @transform_5(%arg0: i32, %arg1: i32) -> (i32, i32, i32) {
    %c0_i32 = arith.constant 0 : i32
    %c0_i32_0 = arith.constant 0 : i32
    return %arg0, %c0_i32, %arg1 : i32, i32, i32
  }
}

module attributes {stable_mosaic.version = 11 : i64} {
  func.func @_adaln_proj_kernel(%arg0: i32, %arg1: i32, %arg2: memref<1x16x32xf32, #tpu.memory_space<vmem>>, %arg3: memref<1x1x32xf32, #tpu.memory_space<vmem>>, %arg4: memref<1x1x32xf32, #tpu.memory_space<vmem>>, %arg5: memref<32x128xf32, #tpu.memory_space<vmem>>, %arg6: memref<1x128xf32, #tpu.memory_space<vmem>>, %arg7: memref<1x16x128xf32, #tpu.memory_space<vmem>>) attributes {dimension_semantics = [#tpu.dimension_semantics<parallel>, #tpu.dimension_semantics<parallel>], iteration_bounds = array<i64: 4, 1>, scalar_prefetch = 0 : i64, scratch_operands = 0 : i64, tpu.core_type = #tpu.core_type<tc>, window_params = [{transform_indices = @transform_0, window_bounds = array<i64: 1, 16, 32>}, {transform_indices = @transform_1, window_bounds = array<i64: 1, 1, 32>}, {transform_indices = @transform_2, window_bounds = array<i64: 1, 1, 32>}, {transform_indices = @transform_3, window_bounds = array<i64: 32, 128>}, {transform_indices = @transform_4, window_bounds = array<i64: 1, 128>}, {transform_indices = @transform_5, window_bounds = array<i64: 1, 16, 128>}]} {
    %c0 = arith.constant 0 : index
    %c0_0 = arith.constant 0 : index
    %c0_1 = arith.constant 0 : index
    %0 = vector.load %arg2[%c0, %c0_0, %c0_1] : memref<1x16x32xf32, #tpu.memory_space<vmem>>, vector<1x16x32xf32>
    %1 = vector.shape_cast %0 : vector<1x16x32xf32> to vector<16x32xf32>
    %cst = arith.constant dense<0.000000e+00> : vector<16xf32>
    %2 = vector.multi_reduction <add>, %1, %cst [1] : vector<16x32xf32> to vector<16xf32>
    %3 = vector.shape_cast %2 : vector<16xf32> to vector<16x1xf32>
    %cst_2 = arith.constant 3.200000e+01 : f32
    %4 = vector.broadcast %cst_2 : f32 to vector<16x1xf32>
    %5 = arith.divf %3, %4 : vector<16x1xf32>
    %6 = vector.broadcast %5 : vector<16x1xf32> to vector<16x32xf32>
    %7 = arith.subf %1, %6 : vector<16x32xf32>
    %8 = arith.mulf %7, %7 : vector<16x32xf32>
    %cst_3 = arith.constant dense<0.000000e+00> : vector<16xf32>
    %9 = vector.multi_reduction <add>, %8, %cst_3 [1] : vector<16x32xf32> to vector<16xf32>
    %10 = vector.shape_cast %9 : vector<16xf32> to vector<16x1xf32>
    %cst_4 = arith.constant 3.200000e+01 : f32
    %11 = vector.broadcast %cst_4 : f32 to vector<16x1xf32>
    %12 = arith.divf %10, %11 : vector<16x1xf32>
    %13 = vector.broadcast %5 : vector<16x1xf32> to vector<16x32xf32>
    %14 = arith.subf %1, %13 : vector<16x32xf32>
    %cst_5 = arith.constant 9.99999997E-7 : f32
    %15 = vector.broadcast %cst_5 : f32 to vector<16x1xf32>
    %16 = arith.addf %12, %15 : vector<16x1xf32>
    %17 = math.rsqrt %16 : vector<16x1xf32>
    %18 = vector.broadcast %17 : vector<16x1xf32> to vector<16x32xf32>
    %19 = arith.mulf %14, %18 : vector<16x32xf32>
    %c0_6 = arith.constant 0 : index
    %c0_7 = arith.constant 0 : index
    %c0_8 = arith.constant 0 : index
    %20 = vector.load %arg3[%c0_6, %c0_7, %c0_8] : memref<1x1x32xf32, #tpu.memory_space<vmem>>, vector<1x1x32xf32>
    %21 = vector.shape_cast %20 : vector<1x1x32xf32> to vector<1x32xf32>
    %cst_9 = arith.constant 1.000000e+00 : f32
    %22 = vector.broadcast %cst_9 : f32 to vector<1x32xf32>
    %23 = arith.addf %22, %21 : vector<1x32xf32>
    %24 = vector.broadcast %23 : vector<1x32xf32> to vector<16x32xf32>
    %25 = arith.mulf %19, %24 : vector<16x32xf32>
    %c0_10 = arith.constant 0 : index
    %c0_11 = arith.constant 0 : index
    %c0_12 = arith.constant 0 : index
    %26 = vector.load %arg4[%c0_10, %c0_11, %c0_12] : memref<1x1x32xf32, #tpu.memory_space<vmem>>, vector<1x1x32xf32>
    %27 = vector.shape_cast %26 : vector<1x1x32xf32> to vector<1x32xf32>
    %28 = vector.broadcast %27 : vector<1x32xf32> to vector<16x32xf32>
    %29 = arith.addf %25, %28 : vector<16x32xf32>
    %30 = arith.truncf %29 : vector<16x32xf32> to vector<16x32xbf16>
    %c0_13 = arith.constant 0 : index
    %c0_14 = arith.constant 0 : index
    %31 = vector.load %arg5[%c0_13, %c0_14] : memref<32x128xf32, #tpu.memory_space<vmem>>, vector<32x128xf32>
    %32 = arith.truncf %31 : vector<32x128xf32> to vector<32x128xbf16>
    %cst_15 = arith.constant dense<0.000000e+00> : vector<16x128xf32>
    %33 = tpu.matmul %30, %32, %cst_15 {dimension_numbers = #tpu.dot_dimension_numbers<[1], [0], [0], [1], [0, 0, 1, 1], [], []>} : vector<16x32xbf16>, vector<32x128xbf16>, vector<16x128xf32> -> vector<16x128xf32>
    %c0_16 = arith.constant 0 : index
    %c0_17 = arith.constant 0 : index
    %34 = vector.load %arg6[%c0_16, %c0_17] : memref<1x128xf32, #tpu.memory_space<vmem>>, vector<1x128xf32>
    %35 = vector.broadcast %34 : vector<1x128xf32> to vector<16x128xf32>
    %36 = arith.addf %33, %35 : vector<16x128xf32>
    %c0_18 = arith.constant 0 : index
    %c0_19 = arith.constant 0 : index
    %c0_20 = arith.constant 0 : index
    %37 = vector.load %arg7[%c0_18, %c0_19, %c0_20] : memref<1x16x128xf32, #tpu.memory_space<vmem>>, vector<1x16x128xf32>
    %38 = vector.shape_cast %37 : vector<1x16x128xf32> to vector<16x128xf32>
    %39 = vector.shape_cast %36 : vector<16x128xf32> to vector<1x16x128xf32>
    tpu.vector_store %arg7[%c0_18, %c0_19, %c0_20], %39 {strides = array<i32>} : memref<1x16x128xf32, #tpu.memory_space<vmem>>, vector<1x16x128xf32>,
    return
  }
  func.func @transform_0(%arg0: i32, %arg1: i32) -> (i32, i32, i32) {
    %c0_i32 = arith.constant 0 : i32
    %c0_i32_0 = arith.constant 0 : i32
    %c0_i32_1 = arith.constant 0 : i32
    return %arg0, %c0_i32, %c0_i32_0 : i32, i32, i32
  }
  func.func @transform_1(%arg0: i32, %arg1: i32) -> (i32, i32, i32) {
    %c0_i32 = arith.constant 0 : i32
    %c0_i32_0 = arith.constant 0 : i32
    %c0_i32_1 = arith.constant 0 : i32
    return %arg0, %c0_i32, %c0_i32_0 : i32, i32, i32
  }
  func.func @transform_2(%arg0: i32, %arg1: i32) -> (i32, i32, i32) {
    %c0_i32 = arith.constant 0 : i32
    %c0_i32_0 = arith.constant 0 : i32
    %c0_i32_1 = arith.constant 0 : i32
    return %arg0, %c0_i32, %c0_i32_0 : i32, i32, i32
  }
  func.func @transform_3(%arg0: i32, %arg1: i32) -> (i32, i32) {
    %c0_i32 = arith.constant 0 : i32
    %c0_i32_0 = arith.constant 0 : i32
    return %c0_i32, %arg1 : i32, i32
  }
  func.func @transform_4(%arg0: i32, %arg1: i32) -> (i32, i32) {
    %c0_i32 = arith.constant 0 : i32
    %c0_i32_0 = arith.constant 0 : i32
    return %c0_i32, %arg1 : i32, i32
  }
  func.func @transform_5(%arg0: i32, %arg1: i32) -> (i32, i32, i32) {
    %c0_i32 = arith.constant 0 : i32
    %c0_i32_0 = arith.constant 0 : i32
    return %arg0, %c0_i32, %arg1 : i32, i32, i32
  }
}

</mosaic_0001>

<bundles_post_ra>
// kernel: loss_fn.24
= control target key start
LH: loop header
LB: loop body
LE: loop exit
PB: predicated region body
PF: predicated region fallthrough
CT: control target
= control target key end

     0   :  { %vm19_vm0 = vcmask 257024   ;;  %v92_v3 = vmov 0.0   ;;  %vm30_vm1 = vcmask 261120   ;;  %s137_s1 = inlined_call_operand.vmem [shape: f32[32,32], index: 1, kind: input, shape index: {}]   ;;  %s138_s0 = inlined_call_operand.vmem [shape: f32[4,32], index: 0, kind: input, shape index: {}]   ;;  %s139_s2 = inlined_call_operand.vmem [shape: f32[1,32], index: 2, kind: input, shape index: {}]   ;;  %s140_s3 = inlined_call_operand.vmem [shape: f32[4,32], index: 3, kind: output, shape index: {}]  }
   0x1   :  { %v26_v0 = vld [vmem:[%s137_s1 + $0x10] sm:$0xff]  ;;  %v27_v1 = vld [vmem:[%s137_s1 + $0x18] sm:$0xff]  ;;  %v24_v2 = vld [vmem:[%s137_s1] sm:$0xff]  ;;  %20 = vst.msk [vmem:[#allocation2] sm:$0xf] %vm19_vm0, %v92_v3 }
   0x2   :  { %v29_v4 = vpack.c.bf16 %v27_v1, %v26_v0  ;;  %v25_v5 = vld [vmem:[%s137_s1 + $0x8] sm:$0xff]  ;;  %v21_v7 = vld [vmem:[%s138_s0] sm:$0xf] }
   0x3   :  { %v28_v6 = vpack.c.bf16 %v25_v5, %v24_v2  ;;  %v23_v8 = vpack.c.bf16 %v21_v7, %v21_v7  ;;  %v87_v12 = vld [vmem:[%s139_s2] ss:$0 sm:$0xff] }
   0x4   :  { %40 = vmatpush.bf16.msra.mxu0 %v29_v4 }
   0x8   :  { %41 = vmatpush.bf16.msra.mxu0 %v28_v6  ;;  %v22_v9 = vld [vmem:[#allocation2] sm:$0xf] }
   0xb   :  { %84 = vmatmul.msk.bf16.vlgmr.msra.gmra.mxu0 %vm30_vm1, %v23_v8 }
  0x88   :  { %v43_v10 = vpop.f32.mrf.mxu0 }
  0x89   :  { %v47_v11 = vadd.f32 %v43_v10, %v22_v9 }
  0x8b   :  { %49 = vst.msk [vmem:[#allocation2] sm:$0xf] %vm19_vm0, %v47_v11 }
  0x90   :  { %v45_v13 = vpop.f32.mrf.mxu0 }
  0x92   :  { %v53_v14 = vld [vmem:[#allocation2] sm:$0xf] }
  0x93   :  { %v58_v15 = vadd.f32 %v87_v12, %v53_v14 }
  0x95   :  { %v85_v16 = vmul.f32 -1.442695, %v58_v15 }
  0x97   :  { %88 = vpow2.f32 %v85_v16 }
  0x9d   :  { %v89_v17 = vpop.eup %88 }
  0x9e   :  { %v62_v18 = vadd.f32 1.0, %v89_v17 }
  0xa0   :  { %90 = vrcp.f32 %v62_v18  ;;  %v74_v22 = vand.u32 2147483648, %v62_v18  ;;  %v72_v24 = vand.u32 2147483647, %v62_v18  ;;  %vm68_vm3 = vweird.f32 %v62_v18 }
  0xa2   :  { %v75_v26 = vor.u32 1.1754944e-38, %v74_v22  ;;  %vm73_vm5 = vcmp.eq.f32.partialorder %v72_v24, 8.507059e+37 }
  0xa6   :  { %v91_v19 = vpop.eup %90 }
  0xa7   :  { %v64_v20 = vmul.f32 %v91_v19, %v62_v18  ;;  %vm69_vm2 = vweird.f32 %v91_v19 }
  0xa8   :  { %vm70_vm4 = vmor %vm68_vm3, %vm69_vm2 }
  0xa9   :  { %v65_v21 = vsub.f32 1.0, %v64_v20 }
  0xab   :  { %v66_v23 = vmul.f32 %v91_v19, %v65_v21 }
  0xad   :  { %v67_v25 = vadd.f32 %v91_v19, %v66_v23 }
  0xaf   :  { %v71_v27 = vsel %vm70_vm4, %v91_v19, %v67_v25 }
  0xb0   :  { %v76_v28 = vsel %vm73_vm5, %v75_v26, %v71_v27 }
  0xb1   :  { %v78_v29 = vmul.f32 %v76_v28, %v58_v15 }
  0xb3   :  { %79 = vst.msk [vmem:[%s140_s3] sm:$0xf] %vm19_vm0, %v78_v29 }

// kernel: loss_fn.25
= control target key start
LH: loop header
LB: loop body
LE: loop exit
PB: predicated region body
PF: predicated region fallthrough
CT: control target
= control target key end

     0   :  { %vm19_vm0 = vcmask 257024   ;;  %v67_v3 = vmov 0.0   ;;  %vm30_vm1 = vcmask 261120   ;;  %s112_s1 = inlined_call_operand.vmem [shape: f32[32,32], index: 1, kind: input, shape index: {}]   ;;  %s113_s0 = inlined_call_operand.vmem [shape: f32[4,32], index: 0, kind: input, shape index: {}]   ;;  %s114_s2 = inlined_call_operand.vmem [shape: f32[1,32], index: 2, kind: input, shape index: {}]   ;;  %s115_s3 = inlined_call_operand.vmem [shape: f32[4,32], index: 3, kind: output, shape index: {}]  }
   0x1   :  { %v26_v0 = vld [vmem:[%s112_s1 + $0x10] sm:$0xff]  ;;  %v27_v1 = vld [vmem:[%s112_s1 + $0x18] sm:$0xff]  ;;  %v24_v2 = vld [vmem:[%s112_s1] sm:$0xff]  ;;  %20 = vst.msk [vmem:[#allocation2] sm:$0xf] %vm19_vm0, %v67_v3 }
   0x2   :  { %v29_v4 = vpack.c.bf16 %v27_v1, %v26_v0  ;;  %v25_v5 = vld [vmem:[%s112_s1 + $0x8] sm:$0xff]  ;;  %v21_v7 = vld [vmem:[%s113_s0] sm:$0xf] }
   0x3   :  { %v28_v6 = vpack.c.bf16 %v25_v5, %v24_v2  ;;  %v23_v8 = vpack.c.bf16 %v21_v7, %v21_v7  ;;  %v66_v12 = vld [vmem:[%s114_s2] ss:$0 sm:$0xff] }
   0x4   :  { %40 = vmatpush.bf16.msra.mxu0 %v29_v4 }
   0x8   :  { %41 = vmatpush.bf16.msra.mxu0 %v28_v6  ;;  %v22_v9 = vld [vmem:[#allocation2] sm:$0xf] }
   0xb   :  { %64 = vmatmul.msk.bf16.vlgmr.msra.gmra.mxu0 %vm30_vm1, %v23_v8 }
  0x88   :  { %v43_v10 = vpop.f32.mrf.mxu0 }
  0x89   :  { %v47_v11 = vadd.f32 %v43_v10, %v22_v9 }
  0x8b   :  { %49 = vst.msk [vmem:[#allocation2] sm:$0xf] %vm19_vm0, %v47_v11 }
  0x90   :  { %v45_v13 = vpop.f32.mrf.mxu0 }
  0x92   :  { %v53_v14 = vld [vmem:[#allocation2] sm:$0xf] }
  0x93   :  { %v58_v15 = vadd.f32 %v66_v12, %v53_v14 }
  0x95   :  { %59 = vst.msk [vmem:[%s115_s3] sm:$0xf] %vm19_vm0, %v58_v15 }

// kernel: loss_fn.26
= control target key start
LH: loop header
LB: loop body
LE: loop exit
PB: predicated region body
PF: predicated region fallthrough
CT: control target
= control target key end

     0   :  { %vm58_vm4 = vcmask 261120   ;;  %vm19_vm5 = vcmask 1043456   ;;  %vm20_vm6 = vcmask 523268   ;;  %v123_v29 = vmov 0.0   ;;  %s190_s1 = inlined_call_operand.vmem [shape: f32[32,192], index: 1, kind: input, shape index: {}]   ;;  %s191_s0 = inlined_call_operand.vmem [shape: f32[4,32], index: 0, kind: input, shape index: {}]   ;;  %s192_s2 = inlined_call_operand.vmem [shape: f32[1,192], index: 2, kind: input, shape index: {}]   ;;  %s193_s3 = inlined_call_operand.vmem [shape: f32[4,192], index: 3, kind: output, shape index: {}]  }
   0x1   :  { %v50_v0 = vld [vmem:[%s190_s1 + $0x20] sm:$0xff]  ;;  %v52_v1 = vld [vmem:[%s190_s1 + $0x30] sm:$0xff]  ;;  %v51_v2 = vld [vmem:[%s190_s1 + $0x28] sm:$0xff] }
   0x2   :  { %v56_v3 = vpack.c.bf16 %v52_v1, %v50_v0  ;;  %v53_v4 = vld [vmem:[%s190_s1 + $0x38] sm:$0xff]  ;;  %v46_v5 = vld [vmem:[%s190_s1] sm:$0xff]  ;;  %v48_v6 = vld [vmem:[%s190_s1 + $0x10] sm:$0xff] }
   0x3   :  { %v57_v7 = vpack.c.bf16 %v53_v4, %v51_v2  ;;  %v47_v8 = vld [vmem:[%s190_s1 + $0x8] sm:$0xff]  ;;  %v49_v9 = vld [vmem:[%s190_s1 + $0x18] sm:$0xff]  ;;  %v23_v10 = vld [vmem:[%s191_s0] sm:$0xf]  ;;  %v54_v11 = vpack.c.bf16 %v48_v6, %v46_v5 }
   0x4   :  { %68 = vmatpush.bf16.msra.mxu0 %v56_v3  ;;  %v115_v12 = vmul.f32 -1.442695, %v23_v10  ;;  %v55_v13 = vpack.c.bf16 %v49_v9, %v47_v8  ;;  %vm172_vm7 = vmor %vm20_vm6, %vm19_vm5  ;;  %v102_v32 = vld [vmem:[%s192_s2] sm:$0x3] }
   0x5   :  { %81 = vmatpush.bf16.msra.mxu1 %v57_v7  ;;  %22 = vst.msk [vmem:[#allocation2] sm:$0xff] %vm172_vm7, %v123_v29  ;;  %v105_v36 = vperm.slane %v102_v32, 1  ;;  %v104_v38 = vperm.slane %v102_v32, 0 }
   0x6   :  { %119 = vpow2.f32 %v115_v12 }
   0x7   :  { %v106_v39 = vrot.slane %v105_v36, 4 }
   0x8   :  { %69 = vmatpush.bf16.msra.mxu0 %v54_v11 }
   0x9   :  { %82 = vmatpush.bf16.msra.mxu1 %v55_v13  ;;  %v107_v42 = vsel %vm19_vm5, %v104_v38, %v106_v39 }
   0xc   :  { %v120_v14 = vpop.eup %119  ;;  %v44_v33 = vld [vmem:[#allocation2] sm:$0xff] }
   0xd   :  { %v27_v15 = vadd.f32 1.0, %v120_v14 }
   0xf   :  { %121 = vrcp.f32 %v27_v15  ;;  %v39_v18 = vand.u32 2147483648, %v27_v15  ;;  %vm33_vm0 = vweird.f32 %v27_v15  ;;  %v37_v20 = vand.u32 2147483647, %v27_v15 }
  0x11   :  { %v40_v22 = vor.u32 1.1754944e-38, %v39_v18  ;;  %vm38_vm3 = vcmp.eq.f32.partialorder %v37_v20, 8.507059e+37 }
  0x15   :  { %v122_v16 = vpop.eup %121 }
  0x16   :  { %v29_v17 = vmul.f32 %v122_v16, %v27_v15  ;;  %vm34_vm1 = vweird.f32 %v122_v16 }
  0x17   :  { %vm35_vm2 = vmor %vm33_vm0, %vm34_vm1 }
  0x18   :  { %v30_v19 = vsub.f32 1.0, %v29_v17 }
  0x1a   :  { %v31_v21 = vmul.f32 %v122_v16, %v30_v19 }
  0x1c   :  { %v32_v23 = vadd.f32 %v122_v16, %v31_v21 }
  0x1e   :  { %v36_v24 = vsel %vm35_vm2, %v122_v16, %v32_v23 }
  0x1f   :  { %v41_v25 = vsel %vm38_vm3, %v40_v22, %v36_v24 }
  0x20   :  { %v43_v26 = vmul.f32 %v41_v25, %v23_v10 }
  0x22   :  { %v45_v27 = vpack.c.bf16 %v43_v26, %v43_v26 }
  0x24   :  { %116 = vmatmul.msk.bf16.vlgmr.msra.gmra.mxu0 %vm58_vm4, %v45_v27  ;;  %117 = vmatmul.msk.bf16.vlgmr.msra.gmra.mxu1 %vm58_vm4, %v45_v27 }
  0xa1   :  { %v71_v30 = vpop.f32.mrf.mxu0  ;;  %v84_v31 = vpop.f32.mrf.mxu1 }
  0xa2   :  { %v90_v34 = vrot.slane %v84_v31, 4 }
  0xa4   :  { %v92_v35 = vsel %vm19_vm5, %v71_v30, %v90_v34 }
  0xa5   :  { %v94_v37 = vadd.f32 %v92_v35, %v44_v33 }
  0xa7   :  { %97 = vst.msk [vmem:[#allocation2] sm:$0xff] %vm172_vm7, %v94_v37 }
  0xa9   :  { %v73_v40 = vpop.f32.mrf.mxu0  ;;  %v86_v41 = vpop.f32.mrf.mxu1 }
  0xae   :  { %v101_v43 = vld [vmem:[#allocation2] sm:$0xff] }
  0xaf   :  { %v109_v44 = vadd.f32 %v107_v42, %v101_v43 }
  0xb1   :  { %110 = vst.msk [vmem:[%s193_s3] sm:$0xff] %vm172_vm7, %v109_v44 }

// kernel: loss_fn.23
= control target key start
LH: loop header
LB: loop body
LE: loop exit
PB: predicated region body
PF: predicated region fallthrough
CT: control target
= control target key end

     0   :  { %vm30_vm0 = vcmask 1042432   ;;  %vm19_vm1 = vcmask 257024   ;;  %v92_v2 = vmov 0.0   ;;  %vm26_vm2 = vcmask 48128   ;;  %s128_s1 = inlined_call_operand.vmem [shape: f32[6,32], index: 1, kind: input, shape index: {}]   ;;  %s129_s0 = inlined_call_operand.vmem [shape: f32[4,6], index: 0, kind: input, shape index: {}]   ;;  %s130_s2 = inlined_call_operand.vmem [shape: f32[1,32], index: 2, kind: input, shape index: {}]   ;;  %s131_s3 = inlined_call_operand.vmem [shape: f32[4,32], index: 3, kind: output, shape index: {}]  }
   0x1   :  { %v24_v0 = vld [vmem:[%s128_s1] sm:$0x3f]  ;;  %20 = vst.msk [vmem:[#allocation2] sm:$0xf] %vm19_vm1, %v92_v2 }
   0x2   :  { %v21_v1 = vld [vmem:[%s129_s0] sm:$0xf]  ;;  %v25_v3 = vpack.c.bf16 %v24_v0, %v24_v0 }
   0x3   :  { %v23_v5 = vpack.c.bf16 %v21_v1, %v21_v1  ;;  %v87_v9 = vld [vmem:[%s130_s2] ss:$0 sm:$0xff] }
   0x4   :  { %v32_v4 = vsel %vm30_vm0, %v25_v3, 0 }
   0x5   :  { %41 = vmatpush.bf16.msra.mxu0 %v32_v4 }
   0x8   :  { %84 = vmatmul.msk.bf16.vlgmr.msra.gmra.mxu0 %vm26_vm2, %v23_v5  ;;  %v22_v6 = vld [vmem:[#allocation2] sm:$0xf] }
  0x85   :  { %v43_v7 = vpop.f32.mrf.mxu0 }
  0x86   :  { %v47_v8 = vadd.f32 %v43_v7, %v22_v6 }
  0x88   :  { %49 = vst.msk [vmem:[#allocation2] sm:$0xf] %vm19_vm1, %v47_v8 }
  0x8d   :  { %v45_v10 = vpop.f32.mrf.mxu0 }
  0x8f   :  { %v53_v11 = vld [vmem:[#allocation2] sm:$0xf] }
  0x90   :  { %v58_v12 = vadd.f32 %v87_v9, %v53_v11 }
  0x92   :  { %v85_v13 = vmul.f32 -1.442695, %v58_v12 }
  0x94   :  { %88 = vpow2.f32 %v85_v13 }
  0x9a   :  { %v89_v14 = vpop.eup %88 }
  0x9b   :  { %v62_v15 = vadd.f32 1.0, %v89_v14 }
  0x9d   :  { %90 = vrcp.f32 %v62_v15  ;;  %v74_v19 = vand.u32 2147483648, %v62_v15  ;;  %v72_v21 = vand.u32 2147483647, %v62_v15  ;;  %vm68_vm4 = vweird.f32 %v62_v15 }
  0x9f   :  { %v75_v23 = vor.u32 1.1754944e-38, %v74_v19  ;;  %vm73_vm6 = vcmp.eq.f32.partialorder %v72_v21, 8.507059e+37 }
  0xa3   :  { %v91_v16 = vpop.eup %90 }
  0xa4   :  { %v64_v17 = vmul.f32 %v91_v16, %v62_v15  ;;  %vm69_vm3 = vweird.f32 %v91_v16 }
  0xa5   :  { %vm70_vm5 = vmor %vm68_vm4, %vm69_vm3 }
  0xa6   :  { %v65_v18 = vsub.f32 1.0, %v64_v17 }
  0xa8   :  { %v66_v20 = vmul.f32 %v91_v16, %v65_v18 }
  0xaa   :  { %v67_v22 = vadd.f32 %v91_v16, %v66_v20 }
  0xac   :  { %v71_v24 = vsel %vm70_vm5, %v91_v16, %v67_v22 }
  0xad   :  { %v76_v25 = vsel %vm73_vm6, %v75_v23, %v71_v24 }
  0xae   :  { %v78_v26 = vmul.f32 %v76_v25, %v58_v12 }
  0xb0   :  { %79 = vst.msk [vmem:[%s131_s3] sm:$0xf] %vm19_vm1, %v78_v26 }

// kernel: loss_fn.21
= control target key start
LH: loop header
LB: loop body
LE: loop exit
PB: predicated region body
PF: predicated region fallthrough
CT: control target
= control target key end

     0   :  { %vm19_vm0 = vcmask 261120   ;;  %vm63_vm1 = vcmask 1041408   ;;  %v157_v3 = vmov 0.0   ;;  %vm50_vm2 = vcmask 31744   ;;  %s256_s1 = inlined_call_operand.vmem [shape: f32[4,32], index: 1, kind: input, shape index: {}]   ;;  %s257_s0 = inlined_call_operand.vmem [shape: f32[64,4], index: 0, kind: input, shape index: {}]   ;;  %s258_s2 = inlined_call_operand.vmem [shape: f32[1,32], index: 2, kind: input, shape index: {}]   ;;  %s259_s3 = inlined_call_operand.vmem [shape: f32[64,32], index: 3, kind: output, shape index: {}]  }
   0x1   :  { %v48_v0 = vld [vmem:[%s256_s1] sm:$0xf]  ;;  %v29_v2 = vld [vmem:[%s257_s0 + $0x8] sm:$0xff]  ;;  %20 = vst.msk [vmem:[#allocation2] sm:$0xff] %vm19_vm0, %v157_v3  ;;  %v30_v5 = vld [vmem:[%s257_s0 + $0x10] sm:$0xff] }
   0x2   :  { %v28_v1 = vld [vmem:[%s257_s0] sm:$0xff]  ;;  %v49_v4 = vpack.c.bf16 %v48_v0, %v48_v0  ;;  %v31_v6 = vld [vmem:[%s257_s0 + $0x18] sm:$0xff]  ;;  %21 = vst.msk [vmem:[#allocation2 + $0x8] sm:$0xff] %vm19_vm0, %v157_v3  ;;  %v33_v8 = vld [vmem:[%s257_s0 + $0x28] sm:$0xff] }
   0x3   :  { %v32_v7 = vld [vmem:[%s257_s0 + $0x20] sm:$0xff]  ;;  %v34_v9 = vld [vmem:[%s257_s0 + $0x30] sm:$0xff]  ;;  %v35_v10 = vld [vmem:[%s257_s0 + $0x38] sm:$0xff]  ;;  %22 = vst.msk [vmem:[#allocation2 + $0x10] sm:$0xff] %vm19_vm0, %v157_v3  ;;  %v44_v12 = vpack.c.bf16 %v29_v2, %v28_v1  ;;  %v45_v13 = vpack.c.bf16 %v31_v6, %v30_v5 }
   0x4   :  { %v65_v11 = vsel %vm63_vm1, %v49_v4, 0  ;;  %23 = vst.msk [vmem:[#allocation2 + $0x18] sm:$0xff] %vm19_vm0, %v157_v3  ;;  %v46_v14 = vpack.c.bf16 %v33_v8, %v32_v7  ;;  %v47_v15 = vpack.c.bf16 %v35_v10, %v34_v9  ;;  %v156_v25 = vld [vmem:[%s258_s2] ss:$0 sm:$0xff] }
   0x5   :  { %74 = vmatpush.bf16.msra.mxu0 %v65_v11  ;;  %152 = vmatpush.bf16.msra.mxu1 %v65_v11  ;;  %24 = vst.msk [vmem:[#allocation2 + $0x20] sm:$0xff] %vm19_vm0, %v157_v3 }
   0x6   :  { %153 = vmatpush.bf16.msra.mxu2 %v65_v11  ;;  %154 = vmatpush.bf16.msra.mxu3 %v65_v11  ;;  %25 = vst.msk [vmem:[#allocation2 + $0x28] sm:$0xff] %vm19_vm0, %v157_v3 }
   0x7   :  { %26 = vst.msk [vmem:[#allocation2 + $0x30] sm:$0xff] %vm19_vm0, %v157_v3 }
   0x8   :  { %148 = vmatmul.msk.bf16.vlgmr.msra.gmra.mxu0 %vm50_vm2, %v44_v12  ;;  %149 = vmatmul.msk.bf16.vlgmr.msra.gmra.mxu1 %vm50_vm2, %v45_v13  ;;  %27 = vst.msk [vmem:[#allocation2 + $0x38] sm:$0xff] %vm19_vm0, %v157_v3  ;;  %v36_v16 = vld [vmem:[#allocation2] sm:$0xff] }
   0x9   :  { %150 = vmatmul.msk.bf16.vlgmr.msra.gmra.mxu2 %vm50_vm2, %v46_v14  ;;  %151 = vmatmul.msk.bf16.vlgmr.msra.gmra.mxu3 %vm50_vm2, %v47_v15  ;;  %v37_v24 = vld [vmem:[#allocation2 + $0x8] sm:$0xff] }
   0xa   :  { %v38_v17 = vld [vmem:[#allocation2 + $0x10] sm:$0xff] }
   0xb   :  { %v39_v31 = vld [vmem:[#allocation2 + $0x18] sm:$0xff] }
   0xc   :  { %v40_v22 = vld [vmem:[#allocation2 + $0x20] sm:$0xff] }
   0xd   :  { %v41_v39 = vld [vmem:[#allocation2 + $0x28] sm:$0xff] }
   0xe   :  { %v42_v23 = vld [vmem:[#allocation2 + $0x30] sm:$0xff] }
   0xf   :  { %v43_v40 = vld [vmem:[#allocation2 + $0x38] sm:$0xff] }
  0x85   :  { %v76_v18 = vpop.f32.mrf.mxu0  ;;  %v81_v19 = vpop.f32.mrf.mxu1 }
  0x86   :  { %v96_v20 = vadd.f32 %v76_v18, %v36_v16  ;;  %v98_v21 = vadd.f32 %v81_v19, %v38_v17 }
  0x88   :  { %105 = vst.msk [vmem:[#allocation2] sm:$0xff] %vm19_vm0, %v96_v20 }
  0x89   :  { %107 = vst.msk [vmem:[#allocation2 + $0x10] sm:$0xff] %vm19_vm0, %v98_v21 }
  0x8c   :  { %v86_v26 = vpop.f32.mrf.mxu2  ;;  %v91_v27 = vpop.f32.mrf.mxu3 }
  0x8d   :  { %v100_v28 = vadd.f32 %v86_v26, %v40_v22  ;;  %v102_v29 = vadd.f32 %v91_v27, %v42_v23  ;;  %v78_v30 = vpop.f32.mrf.mxu0  ;;  %v83_v32 = vpop.f32.mrf.mxu1 }
  0x8e   :  { %v97_v33 = vadd.f32 %v78_v30, %v37_v24  ;;  %v99_v37 = vadd.f32 %v83_v32, %v39_v31 }
  0x8f   :  { %v116_v34 = vld [vmem:[#allocation2] sm:$0xff]  ;;  %109 = vst.msk [vmem:[#allocation2 + $0x20] sm:$0xff] %vm19_vm0, %v100_v28 }
  0x90   :  { %v128_v35 = vadd.f32 %v156_v25, %v116_v34  ;;  %v118_v36 = vld [vmem:[#allocation2 + $0x10] sm:$0xff]  ;;  %111 = vst.msk [vmem:[#allocation2 + $0x30] sm:$0xff] %vm19_vm0, %v102_v29 }
  0x91   :  { %v130_v38 = vadd.f32 %v156_v25, %v118_v36  ;;  %106 = vst.msk [vmem:[#allocation2 + $0x8] sm:$0xff] %vm19_vm0, %v97_v33 }
  0x92   :  { %136 = vst.msk [vmem:[%s259_s3] sm:$0xff] %vm19_vm0, %v128_v35 }
  0x93   :  { %138 = vst.msk [vmem:[%s259_s3 + $0x10] sm:$0xff] %vm19_vm0, %v130_v38 }
  0x94   :  { %108 = vst.msk [vmem:[#allocation2 + $0x18] sm:$0xff] %vm19_vm0, %v99_v37  ;;  %v88_v41 = vpop.f32.mrf.mxu2  ;;  %v93_v42 = vpop.f32.mrf.mxu3 }
  0x95   :  { %v101_v43 = vadd.f32 %v88_v41, %v41_v39  ;;  %v103_v44 = vadd.f32 %v93_v42, %v43_v40 }
  0x96   :  { %v120_v45 = vld [vmem:[#allocation2 + $0x20] sm:$0xff] }
  0x97   :  { %v132_v46 = vadd.f32 %v156_v25, %v120_v45  ;;  %v122_v47 = vld [vmem:[#allocation2 + $0x30] sm:$0xff]  ;;  %110 = vst.msk [vmem:[#allocation2 + $0x28] sm:$0xff] %vm19_vm0, %v101_v43 }
  0x98   :  { %v134_v48 = vadd.f32 %v156_v25, %v122_v47  ;;  %v117_v49 = vld [vmem:[#allocation2 + $0x8] sm:$0xff]  ;;  %112 = vst.msk [vmem:[#allocation2 + $0x38] sm:$0xff] %vm19_vm0, %v103_v44 }
  0x99   :  { %140 = vst.msk [vmem:[%s259_s3 + $0x20] sm:$0xff] %vm19_vm0, %v132_v46  ;;  %v129_v50 = vadd.f32 %v156_v25, %v117_v49 }
  0x9a   :  { %142 = vst.msk [vmem:[%s259_s3 + $0x30] sm:$0xff] %vm19_vm0, %v134_v48 }
  0x9b   :  { %137 = vst.msk [vmem:[%s259_s3 + $0x8] sm:$0xff] %vm19_vm0, %v129_v50  ;;  %v119_v51 = vld [vmem:[#allocation2 + $0x18] sm:$0xff] }
  0x9c   :  { %v131_v52 = vadd.f32 %v156_v25, %v119_v51 }
  0x9e   :  { %139 = vst.msk [vmem:[%s259_s3 + $0x18] sm:$0xff] %vm19_vm0, %v131_v52  ;;  %v121_v53 = vld [vmem:[#allocation2 + $0x28] sm:$0xff] }
  0x9f   :  { %v133_v54 = vadd.f32 %v156_v25, %v121_v53  ;;  %v123_v55 = vld [vmem:[#allocation2 + $0x38] sm:$0xff] }
  0xa0   :  { %v135_v56 = vadd.f32 %v156_v25, %v123_v55 }
  0xa1   :  { %141 = vst.msk [vmem:[%s259_s3 + $0x28] sm:$0xff] %vm19_vm0, %v133_v54 }
  0xa2   :  { %143 = vst.msk [vmem:[%s259_s3 + $0x38] sm:$0xff] %vm19_vm0, %v135_v56 }

// kernel: loss_fn.22
= control target key start
LH: loop header
LB: loop body
LE: loop exit
PB: predicated region body
PF: predicated region fallthrough
CT: control target
= control target key end

     0   :  { %vm19_vm0 = vcmask 257024   ;;  %vm30_vm1 = vcmask 1043456   ;;  %v67_v2 = vmov 0.0   ;;  %vm26_vm2 = vcmask 64512   ;;  %s103_s1 = inlined_call_operand.vmem [shape: f32[8,32], index: 1, kind: input, shape index: {}]   ;;  %s104_s0 = inlined_call_operand.vmem [shape: f32[4,8], index: 0, kind: input, shape index: {}]   ;;  %s105_s2 = inlined_call_operand.vmem [shape: f32[1,32], index: 2, kind: input, shape index: {}]   ;;  %s106_s3 = inlined_call_operand.vmem [shape: f32[4,32], index: 3, kind: output, shape index: {}]  }
   0x1   :  { %v24_v0 = vld [vmem:[%s103_s1] sm:$0xff]  ;;  %20 = vst.msk [vmem:[#allocation2] sm:$0xf] %vm19_vm0, %v67_v2 }
   0x2   :  { %v21_v1 = vld [vmem:[%s104_s0] sm:$0xf]  ;;  %v25_v3 = vpack.c.bf16 %v24_v0, %v24_v0 }
   0x3   :  { %v23_v5 = vpack.c.bf16 %v21_v1, %v21_v1  ;;  %v66_v9 = vld [vmem:[%s105_s2] ss:$0 sm:$0xff] }
   0x4   :  { %v32_v4 = vsel %vm30_vm1, %v25_v3, 0 }
   0x5   :  { %41 = vmatpush.bf16.msra.mxu0 %v32_v4 }
   0x8   :  { %64 = vmatmul.msk.bf16.vlgmr.msra.gmra.mxu0 %vm26_vm2, %v23_v5  ;;  %v22_v6 = vld [vmem:[#allocation2] sm:$0xf] }
  0x85   :  { %v43_v7 = vpop.f32.mrf.mxu0 }
  0x86   :  { %v47_v8 = vadd.f32 %v43_v7, %v22_v6 }
  0x88   :  { %49 = vst.msk [vmem:[#allocation2] sm:$0xf] %vm19_vm0, %v47_v8 }
  0x8d   :  { %v45_v10 = vpop.f32.mrf.mxu0 }
  0x8f   :  { %v53_v11 = vld [vmem:[#allocation2] sm:$0xf] }
  0x90   :  { %v58_v12 = vadd.f32 %v66_v9, %v53_v11 }
  0x92   :  { %59 = vst.msk [vmem:[%s106_s3] sm:$0xf] %vm19_vm0, %v58_v12 }

// kernel: loss_fn.27
= control target key start
LH: loop header
LB: loop body
LE: loop exit
PB: predicated region body
PF: predicated region fallthrough
CT: control target
= control target key end

     0   :  { %s668_s18 = smov 0   ;;  %s670_s19 = smov 0   ;;  %s749_s0 = inlined_call_operand.vmem [shape: f32[4,17,32], index: 0, kind: input, shape index: {}]   ;;  %s750_s1 = inlined_call_operand.vmem [shape: f32[4,1,32], index: 1, kind: input, shape index: {}]   ;;  %s751_s2 = inlined_call_operand.vmem [shape: f32[4,1,32], index: 2, kind: input, shape index: {}]   ;;  %s752_s3 = inlined_call_operand.vmem [shape: f32[32,96], index: 3, kind: input, shape index: {}]   ;;  %s753_s4 = inlined_call_operand.vmem [shape: f32[1,96], index: 4, kind: input, shape index: {}]   ;;  %s754_s5 = inlined_call_operand.vmem [shape: f32[4,17,96], index: 5, kind: output, shape index: {}]  }
   0x1   :  { %s672_s20 = smov 0  }
   0x2 LB: > { %s27_s21 = sadd.s32 1, %s631_s19  ;;  %p568_p0 = scmp.ge.s32.totalorder %s635_s20, 1  ;;  %s635_s20 = sphi %s672_s20, %s15_s20   ;;  %s631_s19 = sphi %s670_s19, %s756_s19   ;;  %s627_s18 = sphi %s668_s18, %s755_s18  }
   0x3   : > { %p29_p1 = scmp.ge.s32.totalorder %s27_s21, 4  ;;  %p234_p2 = scmp.lt.s32.totalorder %s635_s20, 5 }
   0x5   : > { %s758_s21 = smov (%p29_p1, %s27_s21), 0  ;;  %p235_p3 = pnand %p568_p0, %p234_p2 }
   0x6   : > { %p278_p4 = scmp.lt.s32.totalorder (!%p235_p3), %s627_s18, 3 }
   0x7   : > { %238 = sbr.rel (%p235_p3) target bundleno = 437 (0x1b5), region = 40 }
   0xc   : > { %s760_s18 = smov (!%p278_p4, %s627_s18), 3  ;;  %vm308_vm0 = vcmask 261120   ;;  %vm315_vm1 = vcmask 253952   ;;  %v637_v6 = vmov 32.0   ;;  %v402_v28 = vld [vmem:[%s752_s3 + $0x10] sm:$0xff]  ;;  %v403_v29 = vld [vmem:[%s752_s3 + $0x18] sm:$0xff] }
   0xd   : > { %s577_s22 = smul.u32 24, %s760_s18  ;;  %605 = vrcp.f32 %v637_v6  ;;  %s288_s28 = scalar_lea.vmem %s751_s2, %s760_s18  ;;  %v405_v30 = vpack.c.bf16 %v403_v29, %v402_v28  ;;  %v400_v33 = vld [vmem:[%s752_s3] sm:$0xff]  ;;  %v401_v34 = vld [vmem:[%s752_s3 + $0x8] sm:$0xff]  ;;  %vm434_vm12 = vcmask 785408   ;;  %vm437_vm13 = vcmask 778240  }
   0xe   : > { %v404_v35 = vpack.c.bf16 %v401_v34, %v400_v33  ;;  %s285_s14 = scalar_lea.vmem %s750_s1, %s760_s18 }
   0xf   : > { %s282_s25 = scalar_lea.vmem %s749_s0, %s577_s22  ;;  %422 = vmatpush.bf16.msra.mxu0 %v405_v30  ;;  %575 = vmatpush.bf16.msra.mxu1 %v405_v30  ;;  %v383_v51 = vld [vmem:[%s285_s14] sm:$0x1]  ;;  %s303_s26 = scalar_lea.vmem %s754_s5, %s577_s22 }
  0x10   : > { %v305_v0 = vld [vmem:[%s282_s25] sm:$0xff]  ;;  %v307_v1 = vld [vmem:[%s282_s25 + $0x10] sm:$0x1]  ;;  %v306_v4 = vld [vmem:[%s282_s25 + $0x8] sm:$0xff]  ;;  %v384_v53 = vadd.f32 1.0, %v383_v51 }
  0x11   : > { %v309_v2 = vsel %vm308_vm0, %v305_v0, 0.0  ;;  %v316_v3 = vsel %vm315_vm1, %v307_v1, 0.0  ;;  %v312_v5 = vsel %vm308_vm0, %v306_v4, 0.0 }
  0x12   : > { %310 = vadd.xlane.f32.xlu0 %v309_v2  ;;  %317 = vadd.xlane.f32.xlu1 %v316_v3  ;;  %v386_v59 = vperm.slane %v384_v53, 0  ;;  %v603_v2 = vld [vmem:[%s288_s28] ss:$0 sm:$0xff] }
  0x13   : > { %v606_v7 = vpop.eup %605  ;;  %423 = vmatpush.bf16.msra.mxu0 %v404_v35  ;;  %576 = vmatpush.bf16.msra.mxu1 %v404_v35 }
  0x14   : > { %v320_v8 = vmul.f32 32.0, %v606_v7  ;;  %vm324_vm2 = vweird.f32 %v606_v7 }
  0x16   : > { %v321_v9 = vsub.f32 1.0, %v320_v8 }
  0x18   : > { %v322_v10 = vmul.f32 %v606_v7, %v321_v9 }
  0x1a   : > { %313 = vadd.xlane.f32.xlu0 %v312_v5  ;;  %v323_v11 = vadd.f32 %v606_v7, %v322_v10 }
  0x1c   : > { %v325_v12 = vsel %vm324_vm2, %v606_v7, %v323_v11 }
  0x85   : > { %v311_v13 = vpop.xlane.xlu0 %310  ;;  %v318_v17 = vpop.xlane.xlu1 %317 }
  0x86   : > { %v326_v14 = vmul.f32 %v325_v12, %v311_v13  ;;  %v328_v21 = vmul.f32 %v325_v12, %v318_v17 }
  0x88   : > { %v329_v15 = vsub.f32 %v305_v0, %v326_v14  ;;  %v698_v23 = vsub.f32 %v307_v1, %v328_v21 }
  0x8a   : > { %v332_v16 = vmul.f32 %v329_v15, %v329_v15  ;;  %v334_v26 = vmul.f32 %v698_v23, %v698_v23 }
  0x8c   : > { %v335_v18 = vsel %vm308_vm0, %v332_v16, 0.0  ;;  %v341_v27 = vsel %vm315_vm1, %v334_v26, 0.0 }
  0x8d   : > { %336 = vadd.xlane.f32.xlu1 %v335_v18  ;;  %v314_v19 = vpop.xlane.xlu0 %313 }
  0x8e   : > { %v327_v20 = vmul.f32 %v325_v12, %v314_v19 }
  0x90   : > { %v330_v22 = vsub.f32 %v306_v4, %v327_v20 }
  0x92   : > { %v333_v24 = vmul.f32 %v330_v22, %v330_v22 }
  0x94   : > { %v338_v25 = vsel %vm308_vm0, %v333_v24, 0.0 }
  0x95   : > { %339 = vadd.xlane.f32.xlu2 %v338_v25 }
  0x9d   : > { %342 = vadd.xlane.f32.xlu2 %v341_v27 }
 0x100   : > { %v337_v31 = vpop.xlane.xlu1 %336 }
 0x101   : > { %v344_v32 = vmul.f32 %v337_v31, %v325_v12 }
 0x103   : > { %v347_v36 = vadd.f32 1e-06, %v344_v32 }
 0x105   : > { %607 = vrsqrt.f32 %v347_v36  ;;  %vm356_vm4 = vweird.f32 %v347_v36 }
 0x108   : > { %v340_v37 = vpop.xlane.xlu2 %339 }
 0x109   : > { %v345_v38 = vmul.f32 %v340_v37, %v325_v12 }
 0x10b   : > { %v608_v39 = vpop.eup %607  ;;  %v348_v40 = vadd.f32 1e-06, %v345_v38 }
 0x10c   : > { %v351_v41 = vmul.f32 %v608_v39, %v347_v36  ;;  %vm357_vm3 = vweird.f32 %v608_v39 }
 0x10d   : > { %609 = vrsqrt.f32 %v348_v40  ;;  %vm358_vm5 = vmor %vm356_vm4, %vm357_vm3  ;;  %vm366_vm7 = vweird.f32 %v348_v40 }
 0x10e   : > { %v352_v42 = vmul.f32 %v608_v39, %v351_v41 }
 0x110   : > { %v353_v43 = vmul.f32 0.5, %v352_v42  ;;  %v343_v44 = vpop.xlane.xlu2 %342 }
 0x111   : > { %v346_v45 = vmul.f32 %v343_v44, %v325_v12 }
 0x112   : > { %v354_v46 = vsub.f32 1.5, %v353_v43 }
 0x113   : > { %v610_v47 = vpop.eup %609  ;;  %v349_v48 = vadd.f32 1e-06, %v346_v45 }
 0x114   : > { %v355_v49 = vmul.f32 %v608_v39, %v354_v46  ;;  %v361_v50 = vmul.f32 %v610_v47, %v348_v40  ;;  %vm367_vm6 = vweird.f32 %v610_v47 }
 0x115   : > { %611 = vrsqrt.f32 %v349_v48  ;;  %vm368_vm8 = vmor %vm366_vm7, %vm367_vm6  ;;  %vm376_vm10 = vweird.f32 %v349_v48 }
 0x116   : > { %v362_v52 = vmul.f32 %v610_v47, %v361_v50  ;;  %v359_v54 = vsel %vm358_vm5, %v608_v39, %v355_v49 }
 0x117   : > { %v380_v58 = vmul.f32 %v359_v54, %v329_v15  ;;  %v604_v15 = vld [vmem:[%s753_s4] ss:$0 sm:$0xff] }
 0x118   : > { %v363_v55 = vmul.f32 0.5, %v362_v52 }
 0x119   : > { %v388_v1 = vmul.f32 %v386_v59, %v380_v58 }
 0x11a   : > { %v364_v56 = vsub.f32 1.5, %v363_v55 }
 0x11b   : > { %v612_v57 = vpop.eup %611  ;;  %v395_v6 = vadd.f32 %v603_v2, %v388_v1 }
 0x11c   : > { %v365_v60 = vmul.f32 %v610_v47, %v364_v56  ;;  %v371_v61 = vmul.f32 %v612_v57, %v349_v48  ;;  %vm377_vm9 = vweird.f32 %v612_v57 }
 0x11d   : > { %vm378_vm11 = vmor %vm376_vm10, %vm377_vm9 }
 0x11e   : > { %v369_v62 = vsel %vm368_vm8, %v610_v47, %v365_v60  ;;  %v372_v63 = vmul.f32 %v612_v57, %v371_v61 }
 0x11f   : > { %v381_v0 = vmul.f32 %v369_v62, %v330_v22 }
 0x120   : > { %v373_v3 = vmul.f32 0.5, %v372_v63 }
 0x121   : > { %v389_v4 = vmul.f32 %v386_v59, %v381_v0 }
 0x122   : > { %v374_v5 = vsub.f32 1.5, %v373_v3 }
 0x123   : > { %v396_v7 = vadd.f32 %v603_v2, %v389_v4 }
 0x124   : > { %v375_v8 = vmul.f32 %v612_v57, %v374_v5 }
 0x125   : > { %v398_v9 = vpack.c.bf16 %v396_v7, %v395_v6 }
 0x126   : > { %v379_v10 = vsel %vm378_vm11, %v612_v57, %v375_v8 }
 0x127   : > { %571 = vmatmul.msk.bf16.vlgmr.msra.gmra.mxu0 %vm308_vm0, %v398_v9  ;;  %v382_v11 = vmul.f32 %v379_v10, %v698_v23 }
 0x129   : > { %v390_v12 = vmul.f32 %v386_v59, %v382_v11 }
 0x12b   : > { %v397_v13 = vadd.f32 %v603_v2, %v390_v12 }
 0x12d   : > { %v399_v14 = vpack.c.bf16 %v397_v13, %v397_v13 }
 0x12f   : > { %572 = vmatmul.msk.bf16.vlgmr.msra.gmra.mxu1 %vm308_vm0, %v399_v14 }
 0x1a4   : > { %v425_v16 = vpop.f32.mrf.mxu0 }
 0x1a5   : > { %v426_v17 = vadd.f32 %v604_v15, %v425_v16 }
 0x1a7   : > { %435 = vst.msk [vmem:[%s303_s26] sm:$0xff] %vm434_vm12, %v426_v17 }
 0x1ac   : > { %v427_v18 = vpop.f32.mrf.mxu0  ;;  %v430_v19 = vpop.f32.mrf.mxu1 }
 0x1ad   : > { %v428_v20 = vadd.f32 %v604_v15, %v427_v18  ;;  %v431_v21 = vadd.f32 %v604_v15, %v430_v19 }
 0x1af   : > { %436 = vst.msk [vmem:[%s303_s26 + $0x8] sm:$0xff] %vm434_vm12, %v428_v20 }
 0x1b0   : > { %438 = vst.msk [vmem:[%s303_s26 + $0x10] sm:$0x1] %vm437_vm13, %v431_v21 }
 0x1b4   : > { %v432_v22 = vpop.f32.mrf.mxu1 }
 0x1b5 PF: > { %s15_s20 = sadd.s32 1, %s635_s20   ;;  %s755_s18 = smov %s631_s19 }
 0x1b6   : > { %p12_p5 = scmp.ge.s32.totalorder %s15_s20, 6   ;;  %s756_s19 = smov %s758_s21 }
 0x1b8   :  { %14 = sbr.rel (!%p12_p5) target bundleno = 2 (0x2), region = 82 }

// kernel: loss_fn.28
= control target key start
LH: loop header
LB: loop body
LE: loop exit
PB: predicated region body
PF: predicated region fallthrough
CT: control target
= control target key end

     0   :  { %s856_s12 = smov 0   ;;  %s999_s0 = inlined_call_operand.vmem [shape: f32[2,2,34,16], index: 0, kind: input, shape index: {}]   ;;  %s1000_s1 = inlined_call_operand.vmem [shape: f32[2,2,34,16], index: 1, kind: input, shape index: {}]   ;;  %s1001_s2 = inlined_call_operand.vmem [shape: f32[2,2,34,16], index: 2, kind: input, shape index: {}]   ;;  %s1002_s3 = inlined_call_operand.vmem [shape: f32[2,2,34,16], index: 3, kind: output, shape index: {}]  }
   0x1 LB: > { %s756_s13 = sadd.s32 4294967295, %s834_s12   ;;  %p760_p0 = scmp.ge.s32.totalorder %s834_s12, 1  ;;  %s834_s12 = sphi %s856_s12, %s13_s12  }
   0x2   : > { %p157_p1 = scmp.lt.s32.totalorder %s834_s12, 3 }
   0x4   : > { %p158_p2 = pnand %p760_p0, %p157_p1 }
   0x5   : > { %p191_p3 = scmp.lt.s32.totalorder (!%p158_p2), %s756_s13, 1 }
   0x6   : > { %161 = sbr.rel (%p158_p2) target bundleno = 614 (0x266), region = 32 }
   0xb   : > { %s1004_s13 = smov (!%p191_p3, %s756_s13), 1  ;;  %vm298_vm0 = vcmask 130048   ;;  %vm407_vm1 = vcmask 277504   ;;  %vm420_vm2 = vcmask 271360   ;;  %vm576_vm3 = vcmask 1040384  }
   0xc   : > { %s864_s14 = smul.u32 80, %s1004_s13  ;;  %vm670_vm4 = vcmask 123904  }
   0xe   : > { %s200_s17 = scalar_lea.vmem %s1000_s1, %s864_s14  ;;  %s876_s20 = scalar_lea.vmem %s999_s0, %s864_s14 }
   0xf   : > { %v236_v0 = vld [vmem:[%s200_s17 + $0x20] sm:$0x3]  ;;  %v241_v1 = vld [vmem:[%s200_s17 + $0x48] sm:$0x3]  ;;  %v234_v2 = vld [vmem:[%s200_s17 + $0x10] sm:$0xff]  ;;  %s956_s23 = scalar_lea.vmem %s1001_s2, %s864_s14  ;;  %s210_s26 = scalar_lea.vmem %s1002_s3, %s864_s14 }
  0x10   : > { %v266_v3 = vpack.c.bf16 %v236_v0, %v236_v0  ;;  %v271_v4 = vpack.c.bf16 %v241_v1, %v241_v1  ;;  %v235_v5 = vld [vmem:[%s200_s17 + $0x18] sm:$0xff]  ;;  %v264_v6 = vpack.c.bf16 %v234_v2, %v234_v2  ;;  %v240_v8 = vld [vmem:[%s200_s17 + $0x40] sm:$0xff]  ;;  %v233_v21 = vld [vmem:[%s200_s17 + $0x8] sm:$0xff] }
  0x11   : > { %v239_v7 = vld [vmem:[%s200_s17 + $0x38] sm:$0xff]  ;;  %v265_v9 = vpack.c.bf16 %v235_v5, %v235_v5  ;;  %v270_v11 = vpack.c.bf16 %v240_v8, %v240_v8  ;;  %v232_v20 = vld [vmem:[%s200_s17] sm:$0xff]  ;;  %v237_v22 = vld [vmem:[%s200_s17 + $0x28] sm:$0xff]  ;;  %v263_v27 = vpack.c.bf16 %v233_v21, %v233_v21 }
  0x12   : > { %v269_v10 = vpack.c.bf16 %v239_v7, %v239_v7  ;;  %v294_v12 = vunpack.c.l.b16 %v266_v3  ;;  %v362_v13 = vunpack.c.l.b16 %v271_v4  ;;  %v292_v14 = vunpack.c.l.b16 %v264_v6  ;;  %v238_v23 = vld [vmem:[%s200_s17 + $0x30] sm:$0xff]  ;;  %v212_v32 = vld [vmem:[%s876_s20] sm:$0xff]  ;;  %v213_v35 = vld [vmem:[%s876_s20 + $0x8] sm:$0xff] }
  0x13   : > { %v293_v15 = vunpack.c.l.b16 %v265_v9  ;;  %v361_v19 = vunpack.c.l.b16 %v270_v11  ;;  %v262_v26 = vpack.c.bf16 %v232_v20, %v232_v20  ;;  %v267_v30 = vpack.c.bf16 %v237_v22, %v237_v22  ;;  %v217_v36 = vld [vmem:[%s876_s20 + $0x28] sm:$0xff]  ;;  %v218_v37 = vld [vmem:[%s876_s20 + $0x30] sm:$0xff]  ;;  %v215_v61 = vld [vmem:[%s876_s20 + $0x18] sm:$0xff] }
  0x14   : > { %v297_v16 = vpack.c.b16 %v294_v12, %v294_v12  ;;  %v365_v17 = vpack.c.b16 %v362_v13, %v362_v13  ;;  %v360_v18 = vunpack.c.l.b16 %v269_v10  ;;  %v268_v31 = vpack.c.bf16 %v238_v23, %v238_v23  ;;  %v214_v60 = vld [vmem:[%s876_s20 + $0x10] sm:$0xff]  ;;  %v219_v62 = vld [vmem:[%s876_s20 + $0x38] sm:$0xff]  ;;  %v220_v63 = vld [vmem:[%s876_s20 + $0x40] sm:$0xff] }
  0x15   : > { %v296_v28 = vpack.c.b16 %v293_v15, %v292_v14  ;;  %v290_v33 = vunpack.c.l.b16 %v262_v26  ;;  %v291_v34 = vunpack.c.l.b16 %v263_v27  ;;  %v358_v40 = vunpack.c.l.b16 %v267_v30  ;;  %v216_v14 = vld [vmem:[%s876_s20 + $0x20] sm:$0x3]  ;;  %v221_v15 = vld [vmem:[%s876_s20 + $0x48] sm:$0x3] }
  0x16   : > { %v315_v24 = vsel %vm298_vm0, %v297_v16, 0  ;;  %v382_v25 = vsel %vm298_vm0, %v365_v17, 0  ;;  %v364_v29 = vpack.c.b16 %v361_v19, %v360_v18  ;;  %v359_v41 = vunpack.c.l.b16 %v268_v31 }
  0x17   : > { %322 = vmatpush.bf16.xpose.msra.mxu0 %v315_v24  ;;  %389 = vmatpush.bf16.xpose.msra.mxu1 %v382_v25  ;;  %v312_v38 = vsel %vm298_vm0, %v296_v28, 0  ;;  %v222_v42 = vmul.f32 0.25, %v212_v32  ;;  %v223_v43 = vmul.f32 0.25, %v213_v35  ;;  %v227_v44 = vmul.f32 0.25, %v217_v36 }
  0x18   : > { %v379_v39 = vsel %vm298_vm0, %v364_v29, 0  ;;  %v228_v45 = vmul.f32 0.25, %v218_v37  ;;  %v295_v46 = vpack.c.b16 %v291_v34, %v290_v33  ;;  %v363_v47 = vpack.c.b16 %v359_v41, %v358_v40 }
  0x19   : > { %v252_v48 = vpack.c.bf16 %v222_v42, %v222_v42  ;;  %v253_v49 = vpack.c.bf16 %v223_v43, %v223_v43  ;;  %v257_v50 = vpack.c.bf16 %v227_v44, %v227_v44  ;;  %v224_v0 = vmul.f32 0.25, %v214_v60 }
  0x1a   : > { %v258_v51 = vpack.c.bf16 %v228_v45, %v228_v45  ;;  %v309_v52 = vsel %vm298_vm0, %v295_v46, 0  ;;  %v376_v53 = vsel %vm298_vm0, %v363_v47, 0  ;;  %v225_v1 = vmul.f32 0.25, %v215_v61 }
  0x1b   : > { %v277_v54 = vunpack.c.l.b16 %v252_v48  ;;  %v278_v55 = vunpack.c.l.b16 %v253_v49  ;;  %v345_v56 = vunpack.c.l.b16 %v257_v50  ;;  %v229_v2 = vmul.f32 0.25, %v219_v62 }
  0x1c   : > { %v346_v57 = vunpack.c.l.b16 %v258_v51  ;;  %v230_v3 = vmul.f32 0.25, %v220_v63  ;;  %v254_v4 = vpack.c.bf16 %v224_v0, %v224_v0  ;;  %v255_v5 = vpack.c.bf16 %v225_v1, %v225_v1 }
  0x1d   : > { %v282_v58 = vpack.c.b16 %v278_v55, %v277_v54  ;;  %v259_v6 = vpack.c.bf16 %v229_v2, %v229_v2  ;;  %v226_v16 = vmul.f32 0.25, %v216_v14  ;;  %v231_v17 = vmul.f32 0.25, %v221_v15 }
  0x1e   : > { %v350_v59 = vpack.c.b16 %v346_v57, %v345_v56  ;;  %v260_v7 = vpack.c.bf16 %v230_v3, %v230_v3  ;;  %v279_v8 = vunpack.c.l.b16 %v254_v4  ;;  %v280_v9 = vunpack.c.l.b16 %v255_v5 }
  0x1f   : > { %323 = vmatpush.bf16.xpose.msra.mxu0 %v312_v38  ;;  %390 = vmatpush.bf16.xpose.msra.mxu1 %v379_v39  ;;  %v347_v10 = vunpack.c.l.b16 %v259_v6  ;;  %v256_v18 = vpack.c.bf16 %v226_v16, %v226_v16  ;;  %v261_v19 = vpack.c.bf16 %v231_v17, %v231_v17 }
  0x20   : > { %v348_v11 = vunpack.c.l.b16 %v260_v7  ;;  %v283_v12 = vpack.c.b16 %v280_v9, %v279_v8 }
  0x21   : > { %v281_v20 = vunpack.c.l.b16 %v256_v18  ;;  %v349_v21 = vunpack.c.l.b16 %v261_v19 }
  0x22   : > { %v351_v13 = vpack.c.b16 %v348_v11, %v347_v10 }
  0x23   : > { %v284_v22 = vpack.c.b16 %v281_v20, %v281_v20  ;;  %v352_v23 = vpack.c.b16 %v349_v21, %v349_v21 }
  0x27   : > { %324 = vmatpush.bf16.xpose.msra.mxu0 %v309_v52  ;;  %391 = vmatpush.bf16.xpose.msra.mxu1 %v376_v53 }
  0x2e   : > { %765 = vmatmul.msk.bf16.vlgmr.msra.gmra.mxu0 %vm298_vm0, %v282_v58  ;;  %768 = vmatmul.msk.bf16.vlgmr.msra.gmra.mxu1 %vm298_vm0, %v350_v59 }
  0x3e   : > { %766 = vmatmul.msk.bf16.gmra.mxu0 %vm298_vm0, %v283_v12  ;;  %769 = vmatmul.msk.bf16.gmra.mxu1 %vm298_vm0, %v351_v13 }
  0x4e   : > { %767 = vmatmul.msk.bf16.gmra.mxu0 %vm298_vm0, %v284_v22  ;;  %770 = vmatmul.msk.bf16.gmra.mxu1 %vm298_vm0, %v352_v23 }
  0xab   : > { %v326_v24 = vpop.f32.mrf.mxu0  ;;  %v393_v25 = vpop.f32.mrf.mxu1 }
  0xac   : > { %v424_v26 = vsel %vm407_vm1, %v393_v25, -inf  ;;  %v408_v27 = vsel %vm407_vm1, %v326_v24, -inf }
  0xad   : > { %425 = vmax.xlane.f32.xlu1 %v424_v26  ;;  %409 = vmax.xlane.f32.xlu0 %v408_v27 }
  0xb3   : > { %v328_v28 = vpop.f32.mrf.mxu0  ;;  %v395_v29 = vpop.f32.mrf.mxu1 }
  0xb4   : > { %v427_v30 = vsel %vm407_vm1, %v395_v29, -inf  ;;  %v411_v31 = vsel %vm407_vm1, %v328_v28, -inf }
  0xb5   : > { %428 = vmax.xlane.f32.xlu1 %v427_v30  ;;  %412 = vmax.xlane.f32.xlu0 %v411_v31 }
  0xbb   : > { %v331_v32 = vpop.f32.mrf.mxu0  ;;  %v398_v33 = vpop.f32.mrf.mxu1 }
  0xbc   : > { %v430_v34 = vsel %vm407_vm1, %v398_v33, -inf  ;;  %v414_v35 = vsel %vm407_vm1, %v331_v32, -inf }
  0xbd   : > { %431 = vmax.xlane.f32.xlu0 %v430_v34  ;;  %415 = vmax.xlane.f32.xlu2 %v414_v35 }
  0xc3   : > { %v333_v36 = vpop.f32.mrf.mxu0  ;;  %v400_v37 = vpop.f32.mrf.mxu1 }
  0xc4   : > { %v433_v38 = vsel %vm407_vm1, %v400_v37, -inf  ;;  %v417_v39 = vsel %vm407_vm1, %v333_v36, -inf }
  0xc5   : > { %434 = vmax.xlane.f32.xlu1 %v433_v38  ;;  %418 = vmax.xlane.f32.xlu2 %v417_v39 }
  0xcb   : > { %v906_v40 = vpop.f32.mrf.mxu0  ;;  %v403_v41 = vpop.f32.mrf.mxu1 }
  0xcc   : > { %v436_v42 = vsel %vm420_vm2, %v403_v41, -inf  ;;  %v421_v43 = vsel %vm420_vm2, %v906_v40, -inf }
  0xcd   : > { %437 = vmax.xlane.f32.xlu0 %v436_v42  ;;  %422 = vmax.xlane.f32.xlu2 %v421_v43  ;;  %v249_v42 = vld [vmem:[%s956_s23 + $0x38] sm:$0xff] }
  0xd3   : > { %v338_v44 = vpop.f32.mrf.mxu0  ;;  %v405_v45 = vpop.f32.mrf.mxu1 }
  0xd4   : > { %v250_v45 = vld [vmem:[%s956_s23 + $0x40] sm:$0xff] }
 0x120   : > { %v426_v46 = vpop.xlane.xlu1 %425  ;;  %v410_v47 = vpop.xlane.xlu0 %409 }
 0x121   : > { %v444_v48 = vsub.f32 %v393_v25, %v426_v46  ;;  %v439_v49 = vsub.f32 %v326_v24, %v410_v47  ;;  %v536_v46 = vpack.c.bf16 %v249_v42, %v249_v42 }
 0x123   : > { %v459_v50 = vmul.f32 1.442695, %v444_v48  ;;  %v449_v51 = vmul.f32 1.442695, %v439_v49  ;;  %v537_v49 = vpack.c.bf16 %v250_v45, %v250_v45 }
 0x125   : > { %788 = vpow2.f32 %v459_v50 }
 0x126   : > { %790 = vpow2.f32 %v449_v51 }
 0x128   : > { %v429_v52 = vpop.xlane.xlu1 %428  ;;  %v413_v53 = vpop.xlane.xlu0 %412 }
 0x129   : > { %v445_v54 = vsub.f32 %v395_v29, %v429_v52  ;;  %v440_v55 = vsub.f32 %v328_v28, %v413_v53  ;;  %v623_v52 = vunpack.c.l.b16 %v536_v46  ;;  %v624_v53 = vunpack.c.l.b16 %v537_v49 }
 0x12b   : > { %v911_v56 = vpop.eup %788  ;;  %v461_v57 = vmul.f32 1.442695, %v445_v54  ;;  %v451_v58 = vmul.f32 1.442695, %v440_v55  ;;  %v242_v54 = vld [vmem:[%s956_s23] sm:$0xff]  ;;  %v243_v55 = vld [vmem:[%s956_s23 + $0x8] sm:$0xff] }
 0x12c   : > { %v913_v59 = vpop.eup %790  ;;  %v484_v60 = vsel %vm407_vm1, %v911_v56, 0.0 }
 0x12d   : > { %792 = vpow2.f32 %v461_v57  ;;  %v469_v61 = vsel %vm407_vm1, %v913_v59, 0.0  ;;  %485 = vadd.xlane.f32.xlu0 %v484_v60  ;;  %v247_v57 = vld [vmem:[%s956_s23 + $0x28] sm:$0xff]  ;;  %v529_v60 = vpack.c.bf16 %v242_v54, %v242_v54 }
 0x12e   : > { %794 = vpow2.f32 %v451_v58  ;;  %470 = vadd.xlane.f32.xlu1 %v469_v61  ;;  %v530_v61 = vpack.c.bf16 %v243_v55, %v243_v55 }
 0x130   : > { %v432_v62 = vpop.xlane.xlu0 %431  ;;  %v416_v63 = vpop.xlane.xlu2 %415 }
 0x131   : > { %v446_v0 = vsub.f32 %v398_v33, %v432_v62  ;;  %v441_v1 = vsub.f32 %v331_v32, %v416_v63  ;;  %v246_v32 = vld [vmem:[%s956_s23 + $0x20] sm:$0x3]  ;;  %v251_v33 = vld [vmem:[%s956_s23 + $0x48] sm:$0x3]  ;;  %v248_v62 = vld [vmem:[%s956_s23 + $0x30] sm:$0xff]  ;;  %v534_v63 = vpack.c.bf16 %v247_v57, %v247_v57 }
 0x132   : > { %v533_v34 = vpack.c.bf16 %v246_v32, %v246_v32  ;;  %v538_v35 = vpack.c.bf16 %v251_v33, %v251_v33 }
 0x133   : > { %v919_v2 = vpop.eup %792  ;;  %v463_v3 = vmul.f32 1.442695, %v446_v0  ;;  %v453_v4 = vmul.f32 1.442695, %v441_v1  ;;  %v627_v0 = vpack.c.b16 %v624_v53, %v623_v52  ;;  %v535_v1 = vpack.c.bf16 %v248_v62, %v248_v62 }
 0x134   : > { %v921_v5 = vpop.eup %794  ;;  %v487_v6 = vsel %vm407_vm1, %v919_v2, 0.0 }
 0x135   : > { %796 = vpow2.f32 %v463_v3  ;;  %v472_v7 = vsel %vm407_vm1, %v921_v5, 0.0  ;;  %v557_v3 = vunpack.c.l.b16 %v529_v60 }
 0x136   : > { %798 = vpow2.f32 %v453_v4  ;;  %488 = vadd.xlane.f32.xlu1 %v487_v6  ;;  %473 = vadd.xlane.f32.xlu2 %v472_v7  ;;  %v558_v4 = vunpack.c.l.b16 %v530_v61  ;;  %v621_v6 = vunpack.c.l.b16 %v534_v63  ;;  %v622_v7 = vunpack.c.l.b16 %v535_v1 }
 0x138   : > { %v435_v8 = vpop.xlane.xlu1 %434  ;;  %v419_v9 = vpop.xlane.xlu2 %418 }
 0x139   : > { %v447_v10 = vsub.f32 %v400_v37, %v435_v8  ;;  %v442_v11 = vsub.f32 %v333_v36, %v419_v9  ;;  %v561_v36 = vunpack.c.l.b16 %v533_v34  ;;  %v625_v37 = vunpack.c.l.b16 %v538_v35 }
 0x13a   : > { %v562_v8 = vpack.c.b16 %v558_v4, %v557_v3  ;;  %v626_v9 = vpack.c.b16 %v622_v7, %v621_v6 }
 0x13b   : > { %v927_v12 = vpop.eup %796  ;;  %v465_v13 = vmul.f32 1.442695, %v447_v10  ;;  %v455_v14 = vmul.f32 1.442695, %v442_v11  ;;  %v564_v38 = vpack.c.b16 %v561_v36, %v561_v36  ;;  %v628_v39 = vpack.c.b16 %v625_v37, %v625_v37 }
 0x13c   : > { %v929_v15 = vpop.eup %798  ;;  %v490_v16 = vsel %vm407_vm1, %v927_v12, 0.0 }
 0x13d   : > { %800 = vpow2.f32 %v465_v13  ;;  %v475_v17 = vsel %vm407_vm1, %v929_v15, 0.0  ;;  %v578_v47 = vsel %vm576_vm3, %v564_v38, 0  ;;  %v641_v48 = vsel %vm576_vm3, %v628_v39, 0 }
 0x13e   : > { %802 = vpow2.f32 %v455_v14  ;;  %491 = vadd.xlane.f32.xlu1 %v490_v16  ;;  %476 = vadd.xlane.f32.xlu2 %v475_v17 }
 0x13f   : > { %585 = vmatpush.bf16.msra.mxu2 %v578_v47  ;;  %648 = vmatpush.bf16.msra.mxu3 %v641_v48 }
 0x140   : > { %v438_v18 = vpop.xlane.xlu0 %437  ;;  %v423_v19 = vpop.xlane.xlu2 %422 }
 0x141   : > { %v448_v20 = vsub.f32 %v403_v41, %v438_v18  ;;  %v443_v21 = vsub.f32 %v906_v40, %v423_v19  ;;  %v244_v40 = vld [vmem:[%s956_s23 + $0x10] sm:$0xff]  ;;  %v245_v41 = vld [vmem:[%s956_s23 + $0x18] sm:$0xff] }
 0x142   : > { %v531_v43 = vpack.c.bf16 %v244_v40, %v244_v40  ;;  %v532_v44 = vpack.c.bf16 %v245_v41, %v245_v41 }
 0x143   : > { %v936_v22 = vpop.eup %800  ;;  %v467_v23 = vmul.f32 1.442695, %v448_v20  ;;  %v457_v24 = vmul.f32 1.442695, %v443_v21  ;;  %649 = vmatpush.bf16.msra.mxu3 %v627_v0 }
 0x144   : > { %v938_v25 = vpop.eup %802  ;;  %v493_v26 = vsel %vm407_vm1, %v936_v22, 0.0  ;;  %v559_v50 = vunpack.c.l.b16 %v531_v43  ;;  %v560_v51 = vunpack.c.l.b16 %v532_v44 }
 0x145   : > { %804 = vpow2.f32 %v467_v23  ;;  %v478_v27 = vsel %vm407_vm1, %v938_v25, 0.0 }
 0x146   : > { %806 = vpow2.f32 %v457_v24  ;;  %479 = vadd.xlane.f32.xlu0 %v478_v27  ;;  %494 = vadd.xlane.f32.xlu2 %v493_v26  ;;  %v563_v58 = vpack.c.b16 %v560_v51, %v559_v50 }
 0x147   : > { %650 = vmatpush.bf16.msra.mxu3 %v626_v9 }
 0x148   : > { %586 = vmatpush.bf16.msra.mxu2 %v563_v58 }
 0x14b   : > { %v944_v28 = vpop.eup %804 }
 0x14c   : > { %v946_v29 = vpop.eup %806  ;;  %v496_v30 = vsel %vm420_vm2, %v944_v28, 0.0  ;;  %587 = vmatpush.bf16.msra.mxu2 %v562_v8 }
 0x14d   : > { %497 = vadd.xlane.f32.xlu1 %v496_v30  ;;  %v481_v31 = vsel %vm420_vm2, %v946_v29, 0.0 }
 0x14e   : > { %482 = vadd.xlane.f32.xlu0 %v481_v31 }
 0x1a0   : > { %v486_v11 = vpop.xlane.xlu0 %485 }
 0x1a1   : > { %v471_v10 = vpop.xlane.xlu1 %470  ;;  %808 = vrcp.f32 %v486_v11 }
 0x1a2   : > { %810 = vrcp.f32 %v471_v10 }
 0x1a7   : > { %v809_v16 = vpop.eup %808 }
 0x1a8   : > { %v811_v17 = vpop.eup %810  ;;  %v514_v18 = vmul.f32 %v809_v16, %v911_v56 }
 0x1a9   : > { %v489_v13 = vpop.xlane.xlu1 %488  ;;  %v474_v14 = vpop.xlane.xlu2 %473  ;;  %v509_v19 = vmul.f32 %v811_v17, %v913_v59 }
 0x1aa   : > { %812 = vrcp.f32 %v489_v13  ;;  %v524_v26 = vpack.c.bf16 %v514_v18, %v514_v18 }
 0x1ab   : > { %814 = vrcp.f32 %v474_v14  ;;  %v519_v31 = vpack.c.bf16 %v509_v19, %v509_v19 }
 0x1ac   : > { %v608_v34 = vunpack.c.l.b16 %v524_v26 }
 0x1ad   : > { %v544_v36 = vunpack.c.l.b16 %v519_v31 }
 0x1b0   : > { %v813_v20 = vpop.eup %812 }
 0x1b1   : > { %v815_v21 = vpop.eup %814  ;;  %v477_v23 = vpop.xlane.xlu2 %476  ;;  %v515_v24 = vmul.f32 %v813_v20, %v919_v2 }
 0x1b2   : > { %v492_v27 = vpop.xlane.xlu1 %491  ;;  %v510_v30 = vmul.f32 %v815_v21, %v921_v5  ;;  %816 = vrcp.f32 %v477_v23 }
 0x1b3   : > { %v525_v32 = vpack.c.bf16 %v515_v24, %v515_v24  ;;  %818 = vrcp.f32 %v492_v27 }
 0x1b4   : > { %v520_v33 = vpack.c.bf16 %v510_v30, %v510_v30 }
 0x1b5   : > { %v609_v35 = vunpack.c.l.b16 %v525_v32 }
 0x1b6   : > { %v545_v56 = vunpack.c.l.b16 %v520_v33 }
 0x1b7   : > { %v613_v37 = vpack.c.b16 %v609_v35, %v608_v34 }
 0x1b8   : > { %v549_v59 = vpack.c.b16 %v545_v56, %v544_v36  ;;  %v817_v2 = vpop.eup %816 }
 0x1b9   : > { %774 = vmatmul.msk.bf16.vlgmr.msra.gmra.mxu3 %vm407_vm1, %v613_v37  ;;  %v480_v38 = vpop.xlane.xlu0 %479  ;;  %v495_v39 = vpop.xlane.xlu2 %494  ;;  %v511_v40 = vmul.f32 %v817_v2, %v929_v15 }
 0x1ba   : > { %820 = vrcp.f32 %v480_v38  ;;  %771 = vmatmul.msk.bf16.vlgmr.msra.gmra.mxu2 %vm407_vm1, %v549_v59  ;;  %v819_v5 = vpop.eup %818 }
 0x1bb   : > { %822 = vrcp.f32 %v495_v39  ;;  %v516_v41 = vmul.f32 %v819_v5, %v927_v12  ;;  %v521_v47 = vpack.c.bf16 %v511_v40, %v511_v40 }
 0x1bd   : > { %v526_v49 = vpack.c.bf16 %v516_v41, %v516_v41  ;;  %v546_v52 = vunpack.c.l.b16 %v521_v47 }
 0x1bf   : > { %v610_v54 = vunpack.c.l.b16 %v526_v49 }
 0x1c0   : > { %v821_v42 = vpop.eup %820  ;;  %v498_v43 = vpop.xlane.xlu1 %497 }
 0x1c1   : > { %v823_v44 = vpop.eup %822  ;;  %v483_v45 = vpop.xlane.xlu0 %482  ;;  %v512_v46 = vmul.f32 %v821_v42, %v938_v25  ;;  %824 = vrcp.f32 %v498_v43 }
 0x1c2   : > { %v517_v48 = vmul.f32 %v823_v44, %v936_v22  ;;  %826 = vrcp.f32 %v483_v45 }
 0x1c3   : > { %v522_v50 = vpack.c.bf16 %v512_v46, %v512_v46 }
 0x1c4   : > { %v527_v51 = vpack.c.bf16 %v517_v48, %v517_v48 }
 0x1c5   : > { %v547_v53 = vunpack.c.l.b16 %v522_v50 }
 0x1c6   : > { %v611_v15 = vunpack.c.l.b16 %v527_v51 }
 0x1c7   : > { %v550_v55 = vpack.c.b16 %v547_v53, %v546_v52  ;;  %v825_v12 = vpop.eup %824 }
 0x1c8   : > { %v614_v57 = vpack.c.b16 %v611_v15, %v610_v54  ;;  %v827_v58 = vpop.eup %826  ;;  %v518_v25 = vmul.f32 %v825_v12, %v944_v28 }
 0x1c9   : > { %v513_v22 = vmul.f32 %v827_v58, %v946_v29 }
 0x1ca   : > { %772 = vmatmul.msk.bf16.gmra.mxu2 %vm407_vm1, %v550_v55  ;;  %775 = vmatmul.msk.bf16.gmra.mxu3 %vm407_vm1, %v614_v57  ;;  %v528_v61 = vpack.c.bf16 %v518_v25, %v518_v25 }
 0x1cb   : > { %v523_v60 = vpack.c.bf16 %v513_v22, %v513_v22 }
 0x1cc   : > { %v612_v63 = vunpack.c.l.b16 %v528_v61 }
 0x1cd   : > { %v548_v62 = vunpack.c.l.b16 %v523_v60 }
 0x1ce   : > { %v615_v1 = vpack.c.b16 %v612_v63, %v612_v63 }
 0x1cf   : > { %v551_v0 = vpack.c.b16 %v548_v62, %v548_v62 }
 0x1da   : > { %773 = vmatmul.msk.bf16.gmra.mxu2 %vm407_vm1, %v551_v0  ;;  %776 = vmatmul.msk.bf16.gmra.mxu3 %vm407_vm1, %v615_v1 }
 0x23c   : > { %v652_v3 = vpop.f32.mrf.mxu3 }
 0x23d   : > { %v589_v4 = vpop.f32.mrf.mxu2  ;;  %672 = vst.msk [vmem:[%s210_s26 + $0x28] sm:$0xff] %vm298_vm0, %v652_v3 }
 0x23e   : > { %666 = vst.msk [vmem:[%s210_s26] sm:$0xff] %vm298_vm0, %v589_v4 }
 0x244   : > { %v654_v28 = vpop.f32.mrf.mxu3 }
 0x245   : > { %v591_v29 = vpop.f32.mrf.mxu2  ;;  %673 = vst.msk [vmem:[%s210_s26 + $0x30] sm:$0xff] %vm298_vm0, %v654_v28 }
 0x246   : > { %667 = vst.msk [vmem:[%s210_s26 + $0x8] sm:$0xff] %vm298_vm0, %v591_v29 }
 0x24d   : > { %v594_v6 = vpop.f32.mrf.mxu2  ;;  %v657_v7 = vpop.f32.mrf.mxu3 }
 0x24e   : > { %668 = vst.msk [vmem:[%s210_s26 + $0x10] sm:$0xff] %vm298_vm0, %v594_v6 }
 0x24f   : > { %674 = vst.msk [vmem:[%s210_s26 + $0x38] sm:$0xff] %vm298_vm0, %v657_v7 }
 0x255   : > { %v596_v8 = vpop.f32.mrf.mxu2  ;;  %v659_v9 = vpop.f32.mrf.mxu3 }
 0x256   : > { %669 = vst.msk [vmem:[%s210_s26 + $0x18] sm:$0xff] %vm298_vm0, %v596_v8 }
 0x257   : > { %675 = vst.msk [vmem:[%s210_s26 + $0x40] sm:$0xff] %vm298_vm0, %v659_v9 }
 0x25d   : > { %v599_v10 = vpop.f32.mrf.mxu2  ;;  %v662_v11 = vpop.f32.mrf.mxu3 }
 0x25e   : > { %671 = vst.msk [vmem:[%s210_s26 + $0x20] sm:$0x3] %vm670_vm4, %v599_v10 }
 0x25f   : > { %676 = vst.msk [vmem:[%s210_s26 + $0x48] sm:$0x3] %vm670_vm4, %v662_v11 }
 0x265   : > { %v601_v13 = vpop.f32.mrf.mxu2  ;;  %v664_v14 = vpop.f32.mrf.mxu3 }
 0x266 PF: > { %s13_s12 = sadd.s32 1, %s834_s12  }
 0x267   : > { %p10_p4 = scmp.ge.s32.totalorder %s13_s12, 4  }
 0x269   :  { %12 = sbr.rel (!%p10_p4) target bundleno = 1 (0x1), region = 68 }

// kernel: loss_fn.29
= control target key start
LH: loop header
LB: loop body
LE: loop exit
PB: predicated region body
PF: predicated region fallthrough
CT: control target
= control target key end

     0   :  { %s593_s18 = smov 0   ;;  %s595_s19 = smov 0   ;;  %s667_s0 = inlined_call_operand.vmem [shape: f32[4,17,32], index: 0, kind: input, shape index: {}]   ;;  %s668_s1 = inlined_call_operand.vmem [shape: f32[32,32], index: 1, kind: input, shape index: {}]   ;;  %s669_s2 = inlined_call_operand.vmem [shape: f32[1,32], index: 2, kind: input, shape index: {}]   ;;  %s670_s3 = inlined_call_operand.vmem [shape: f32[4,1,32], index: 3, kind: input, shape index: {}]   ;;  %s671_s4 = inlined_call_operand.vmem [shape: f32[4,17,32], index: 4, kind: input, shape index: {}]   ;;  %s672_s5 = inlined_call_operand.vmem [shape: f32[4,17,32], index: 5, kind: output, shape index: {}]  }
   0x1   :  { %s597_s20 = smov 0  }
   0x2 LB: > { %s27_s21 = sadd.s32 1, %s556_s19  ;;  %p500_p0 = scmp.ge.s32.totalorder %s560_s20, 1  ;;  %s560_s20 = sphi %s597_s20, %s15_s20   ;;  %s556_s19 = sphi %s595_s19, %s674_s19   ;;  %s552_s18 = sphi %s593_s18, %s673_s18  }
   0x3   : > { %p29_p1 = scmp.ge.s32.totalorder %s27_s21, 4  ;;  %p233_p2 = scmp.lt.s32.totalorder %s560_s20, 5 }
   0x5   : > { %s676_s21 = smov (%p29_p1, %s27_s21), 0  ;;  %p234_p3 = pnand %p500_p0, %p233_p2 }
   0x6   : > { %p277_p4 = scmp.lt.s32.totalorder (!%p234_p3), %s552_s18, 3 }
   0x7   : > { %237 = sbr.rel (%p234_p3) target bundleno = 173 (0xad), region = 40 }
   0xc   : > { %v324_v0 = vld [vmem:[%s668_s1 + $0x10] sm:$0xff]  ;;  %v325_v1 = vld [vmem:[%s668_s1 + $0x18] sm:$0xff]  ;;  %v322_v2 = vld [vmem:[%s668_s1] sm:$0xff]  ;;  %vm309_vm0 = vcmask 261120   ;;  %v562_v5 = vmov 0.0   ;;  %s678_s18 = smov (!%p277_p4, %s552_s18), 3 }
   0xd   : > { %v327_v3 = vpack.c.bf16 %v325_v1, %v324_v0  ;;  %v323_v4 = vld [vmem:[%s668_s1 + $0x8] sm:$0xff]  ;;  %310 = vst.msk [vmem:[#allocation2] sm:$0xff] %vm309_vm0, %v562_v5  ;;  %s628_s30 = smul.u32 24, %s678_s18  ;;  %s293_s8 = scalar_lea.vmem %s670_s3, %s678_s18  ;;  %vm312_vm1 = vcmask 253952   ;;  %v537_v19 = vld [vmem:[%s669_s2] ss:$0 sm:$0xff] }
   0xe   : > { %311 = vst.msk [vmem:[#allocation2 + $0x8] sm:$0xff] %vm309_vm0, %v562_v5  ;;  %v326_v6 = vpack.c.bf16 %v323_v4, %v322_v2  ;;  %v536_v21 = vld [vmem:[%s293_s8] ss:$0 sm:$0xff] }
   0xf   : > { %341 = vmatpush.bf16.msra.mxu0 %v327_v3  ;;  %508 = vmatpush.bf16.msra.mxu1 %v327_v3  ;;  %s284_s11 = scalar_lea.vmem %s667_s0, %s628_s30  ;;  %313 = vst.msk [vmem:[#allocation2 + $0x10] sm:$0x1] %vm312_vm1, %v562_v5  ;;  %s298_s16 = scalar_lea.vmem %s671_s4, %s628_s30 }
  0x10   : > { %v317_v7 = vld [vmem:[%s284_s11] sm:$0xff]  ;;  %v318_v8 = vld [vmem:[%s284_s11 + $0x8] sm:$0xff]  ;;  %v319_v10 = vld [vmem:[%s284_s11 + $0x10] sm:$0x1]  ;;  %s303_s22 = scalar_lea.vmem %s672_s5, %s628_s30 }
  0x11   : > { %v320_v9 = vpack.c.bf16 %v318_v8, %v317_v7  ;;  %v321_v11 = vpack.c.bf16 %v319_v10, %v319_v10  ;;  %v363_v27 = vld [vmem:[%s298_s16] sm:$0xff]  ;;  %v365_v29 = vld [vmem:[%s298_s16 + $0x10] sm:$0x1]  ;;  %v364_v36 = vld [vmem:[%s298_s16 + $0x8] sm:$0xff] }
  0x13   : > { %342 = vmatpush.bf16.msra.mxu0 %v326_v6  ;;  %509 = vmatpush.bf16.msra.mxu1 %v326_v6 }
  0x14   : > { %v314_v12 = vld [vmem:[#allocation2] sm:$0xff] }
  0x15   : > { %v315_v18 = vld [vmem:[#allocation2 + $0x8] sm:$0xff] }
  0x16   : > { %504 = vmatmul.msk.bf16.vlgmr.msra.gmra.mxu0 %vm309_vm0, %v320_v9  ;;  %505 = vmatmul.msk.bf16.vlgmr.msra.gmra.mxu1 %vm309_vm0, %v321_v11  ;;  %v316_v13 = vld [vmem:[#allocation2 + $0x10] sm:$0x1] }
  0x93   : > { %v344_v14 = vpop.f32.mrf.mxu0  ;;  %v349_v16 = vpop.f32.mrf.mxu1 }
  0x94   : > { %v353_v15 = vadd.f32 %v344_v14, %v314_v12  ;;  %v355_v17 = vadd.f32 %v349_v16, %v316_v13 }
  0x96   : > { %356 = vst.msk [vmem:[#allocation2] sm:$0xff] %vm309_vm0, %v353_v15 }
  0x97   : > { %359 = vst.msk [vmem:[#allocation2 + $0x10] sm:$0x1] %vm312_vm1, %v355_v17 }
  0x9b   : > { %v346_v20 = vpop.f32.mrf.mxu0  ;;  %v351_v23 = vpop.f32.mrf.mxu1 }
  0x9c   : > { %v354_v22 = vadd.f32 %v346_v20, %v315_v18 }
  0x9d   : > { %v367_v24 = vld [vmem:[#allocation2] sm:$0xff] }
  0x9e   : > { %v369_v25 = vld [vmem:[#allocation2 + $0x10] sm:$0x1]  ;;  %v374_v26 = vadd.f32 %v537_v19, %v367_v24  ;;  %357 = vst.msk [vmem:[#allocation2 + $0x8] sm:$0xff] %vm309_vm0, %v354_v22 }
  0x9f   : > { %v376_v28 = vadd.f32 %v537_v19, %v369_v25 }
  0xa0   : > { %v380_v30 = vmul.f32 %v536_v21, %v374_v26 }
  0xa1   : > { %v382_v31 = vmul.f32 %v536_v21, %v376_v28 }
  0xa2   : > { %v383_v32 = vadd.f32 %v380_v30, %v363_v27 }
  0xa3   : > { %v385_v33 = vadd.f32 %v382_v31, %v365_v29 }
  0xa4   : > { %386 = vst.msk [vmem:[%s303_s22] sm:$0xff] %vm309_vm0, %v383_v32 }
  0xa5   : > { %388 = vst.msk [vmem:[%s303_s22 + $0x10] sm:$0x1] %vm312_vm1, %v385_v33  ;;  %v368_v34 = vld [vmem:[#allocation2 + $0x8] sm:$0xff] }
  0xa6   : > { %v375_v35 = vadd.f32 %v537_v19, %v368_v34 }
  0xa8   : > { %v381_v37 = vmul.f32 %v536_v21, %v375_v35 }
  0xaa   : > { %v384_v38 = vadd.f32 %v381_v37, %v364_v36 }
  0xac   : > { %387 = vst.msk [vmem:[%s303_s22 + $0x8] sm:$0xff] %vm309_vm0, %v384_v38 }
  0xad PF: > { %s15_s20 = sadd.s32 1, %s560_s20   ;;  %s673_s18 = smov %s556_s19 }
  0xae   : > { %p12_p5 = scmp.ge.s32.totalorder %s15_s20, 6   ;;  %s674_s19 = smov %s676_s21 }
  0xb0   :  { %14 = sbr.rel (!%p12_p5) target bundleno = 2 (0x2), region = 87 }

// kernel: loss_fn.30
= control target key start
LH: loop header
LB: loop body
LE: loop exit
PB: predicated region body
PF: predicated region fallthrough
CT: control target
= control target key end

     0   :  { %s699_s18 = smov 0   ;;  %s701_s19 = smov 0   ;;  %s780_s0 = inlined_call_operand.vmem [shape: f32[4,17,32], index: 0, kind: input, shape index: {}]   ;;  %s781_s1 = inlined_call_operand.vmem [shape: f32[4,1,32], index: 1, kind: input, shape index: {}]   ;;  %s782_s2 = inlined_call_operand.vmem [shape: f32[4,1,32], index: 2, kind: input, shape index: {}]   ;;  %s783_s3 = inlined_call_operand.vmem [shape: f32[32,128], index: 3, kind: input, shape index: {}]   ;;  %s784_s4 = inlined_call_operand.vmem [shape: f32[1,128], index: 4, kind: input, shape index: {}]   ;;  %s785_s5 = inlined_call_operand.vmem [shape: f32[4,17,128], index: 5, kind: output, shape index: {}]  }
   0x1   :  { %s703_s20 = smov 0  }
   0x2 LB: > { %s27_s21 = sadd.s32 1, %s662_s19  ;;  %p593_p0 = scmp.ge.s32.totalorder %s666_s20, 1  ;;  %s666_s20 = sphi %s703_s20, %s15_s20   ;;  %s662_s19 = sphi %s701_s19, %s787_s19   ;;  %s658_s18 = sphi %s699_s18, %s786_s18  }
   0x3   : > { %p29_p1 = scmp.ge.s32.totalorder %s27_s21, 4  ;;  %p234_p2 = scmp.lt.s32.totalorder %s666_s20, 5 }
   0x5   : > { %s789_s21 = smov (%p29_p1, %s27_s21), 0  ;;  %p235_p3 = pnand %p593_p0, %p234_p2 }
   0x6   : > { %p278_p4 = scmp.lt.s32.totalorder (!%p235_p3), %s658_s18, 3 }
   0x7   : > { %238 = sbr.rel (%p235_p3) target bundleno = 456 (0x1c8), region = 40 }
   0xc   : > { %s791_s18 = smov (!%p278_p4, %s658_s18), 3  ;;  %vm308_vm0 = vcmask 261120   ;;  %vm315_vm1 = vcmask 253952   ;;  %v668_v6 = vmov 32.0   ;;  %v402_v28 = vld [vmem:[%s783_s3 + $0x10] sm:$0xff]  ;;  %v403_v29 = vld [vmem:[%s783_s3 + $0x18] sm:$0xff] }
   0xd   : > { %s602_s22 = smul.u32 24, %s791_s18  ;;  %630 = vrcp.f32 %v668_v6  ;;  %s288_s28 = scalar_lea.vmem %s782_s2, %s791_s18  ;;  %v405_v30 = vpack.c.bf16 %v403_v29, %v402_v28  ;;  %v400_v33 = vld [vmem:[%s783_s3] sm:$0xff]  ;;  %v401_v34 = vld [vmem:[%s783_s3 + $0x8] sm:$0xff] }
   0xe   : > { %v404_v35 = vpack.c.bf16 %v401_v34, %v400_v33  ;;  %s285_s14 = scalar_lea.vmem %s781_s1, %s791_s18 }
   0xf   : > { %s282_s25 = scalar_lea.vmem %s780_s0, %s602_s22  ;;  %422 = vmatpush.bf16.msra.mxu0 %v405_v30  ;;  %600 = vmatpush.bf16.msra.mxu1 %v405_v30  ;;  %v383_v51 = vld [vmem:[%s285_s14] sm:$0x1]  ;;  %s303_s26 = scalar_lea.vmem %s785_s5, %s602_s22 }
  0x10   : > { %v305_v0 = vld [vmem:[%s282_s25] sm:$0xff]  ;;  %v307_v1 = vld [vmem:[%s282_s25 + $0x10] sm:$0x1]  ;;  %v306_v4 = vld [vmem:[%s282_s25 + $0x8] sm:$0xff]  ;;  %v384_v53 = vadd.f32 1.0, %v383_v51 }
  0x11   : > { %v309_v2 = vsel %vm308_vm0, %v305_v0, 0.0  ;;  %v316_v3 = vsel %vm315_vm1, %v307_v1, 0.0  ;;  %v312_v5 = vsel %vm308_vm0, %v306_v4, 0.0 }
  0x12   : > { %310 = vadd.xlane.f32.xlu0 %v309_v2  ;;  %317 = vadd.xlane.f32.xlu1 %v316_v3  ;;  %v386_v59 = vperm.slane %v384_v53, 0  ;;  %v628_v2 = vld [vmem:[%s288_s28] ss:$0 sm:$0xff] }
  0x13   : > { %v631_v7 = vpop.eup %630  ;;  %423 = vmatpush.bf16.msra.mxu0 %v404_v35  ;;  %601 = vmatpush.bf16.msra.mxu1 %v404_v35 }
  0x14   : > { %v320_v8 = vmul.f32 32.0, %v631_v7  ;;  %vm324_vm2 = vweird.f32 %v631_v7 }
  0x16   : > { %v321_v9 = vsub.f32 1.0, %v320_v8 }
  0x18   : > { %v322_v10 = vmul.f32 %v631_v7, %v321_v9 }
  0x1a   : > { %313 = vadd.xlane.f32.xlu0 %v312_v5  ;;  %v323_v11 = vadd.f32 %v631_v7, %v322_v10 }
  0x1c   : > { %v325_v12 = vsel %vm324_vm2, %v631_v7, %v323_v11 }
  0x85   : > { %v311_v13 = vpop.xlane.xlu0 %310  ;;  %v318_v17 = vpop.xlane.xlu1 %317 }
  0x86   : > { %v326_v14 = vmul.f32 %v325_v12, %v311_v13  ;;  %v328_v21 = vmul.f32 %v325_v12, %v318_v17 }
  0x88   : > { %v329_v15 = vsub.f32 %v305_v0, %v326_v14  ;;  %v729_v23 = vsub.f32 %v307_v1, %v328_v21 }
  0x8a   : > { %v332_v16 = vmul.f32 %v329_v15, %v329_v15  ;;  %v334_v26 = vmul.f32 %v729_v23, %v729_v23 }
  0x8c   : > { %v335_v18 = vsel %vm308_vm0, %v332_v16, 0.0  ;;  %v341_v27 = vsel %vm315_vm1, %v334_v26, 0.0 }
  0x8d   : > { %336 = vadd.xlane.f32.xlu1 %v335_v18  ;;  %v314_v19 = vpop.xlane.xlu0 %313 }
  0x8e   : > { %v327_v20 = vmul.f32 %v325_v12, %v314_v19 }
  0x90   : > { %v330_v22 = vsub.f32 %v306_v4, %v327_v20 }
  0x92   : > { %v333_v24 = vmul.f32 %v330_v22, %v330_v22 }
  0x94   : > { %v338_v25 = vsel %vm308_vm0, %v333_v24, 0.0 }
  0x95   : > { %339 = vadd.xlane.f32.xlu2 %v338_v25 }
  0x9d   : > { %342 = vadd.xlane.f32.xlu2 %v341_v27 }
 0x100   : > { %v337_v31 = vpop.xlane.xlu1 %336 }
 0x101   : > { %v344_v32 = vmul.f32 %v337_v31, %v325_v12 }
 0x103   : > { %v347_v36 = vadd.f32 1e-06, %v344_v32 }
 0x105   : > { %632 = vrsqrt.f32 %v347_v36  ;;  %vm356_vm4 = vweird.f32 %v347_v36 }
 0x108   : > { %v340_v37 = vpop.xlane.xlu2 %339 }
 0x109   : > { %v345_v38 = vmul.f32 %v340_v37, %v325_v12 }
 0x10b   : > { %v633_v39 = vpop.eup %632  ;;  %v348_v40 = vadd.f32 1e-06, %v345_v38 }
 0x10c   : > { %v351_v41 = vmul.f32 %v633_v39, %v347_v36  ;;  %vm357_vm3 = vweird.f32 %v633_v39 }
 0x10d   : > { %634 = vrsqrt.f32 %v348_v40  ;;  %vm358_vm5 = vmor %vm356_vm4, %vm357_vm3  ;;  %vm366_vm7 = vweird.f32 %v348_v40 }
 0x10e   : > { %v352_v42 = vmul.f32 %v633_v39, %v351_v41 }
 0x110   : > { %v353_v43 = vmul.f32 0.5, %v352_v42  ;;  %v343_v44 = vpop.xlane.xlu2 %342 }
 0x111   : > { %v346_v45 = vmul.f32 %v343_v44, %v325_v12 }
 0x112   : > { %v354_v46 = vsub.f32 1.5, %v353_v43 }
 0x113   : > { %v635_v47 = vpop.eup %634  ;;  %v349_v48 = vadd.f32 1e-06, %v346_v45 }
 0x114   : > { %v355_v49 = vmul.f32 %v633_v39, %v354_v46  ;;  %v361_v50 = vmul.f32 %v635_v47, %v348_v40  ;;  %vm367_vm6 = vweird.f32 %v635_v47 }
 0x115   : > { %636 = vrsqrt.f32 %v349_v48  ;;  %vm368_vm8 = vmor %vm366_vm7, %vm367_vm6  ;;  %vm376_vm10 = vweird.f32 %v349_v48 }
 0x116   : > { %v362_v52 = vmul.f32 %v635_v47, %v361_v50  ;;  %v359_v54 = vsel %vm358_vm5, %v633_v39, %v355_v49 }
 0x117   : > { %v380_v58 = vmul.f32 %v359_v54, %v329_v15  ;;  %v629_v15 = vld [vmem:[%s784_s4] ss:$0 sm:$0xff] }
 0x118   : > { %v363_v55 = vmul.f32 0.5, %v362_v52 }
 0x119   : > { %v388_v1 = vmul.f32 %v386_v59, %v380_v58 }
 0x11a   : > { %v364_v56 = vsub.f32 1.5, %v363_v55 }
 0x11b   : > { %v637_v57 = vpop.eup %636  ;;  %v395_v6 = vadd.f32 %v628_v2, %v388_v1 }
 0x11c   : > { %v365_v60 = vmul.f32 %v635_v47, %v364_v56  ;;  %v371_v61 = vmul.f32 %v637_v57, %v349_v48  ;;  %vm377_vm9 = vweird.f32 %v637_v57 }
 0x11d   : > { %vm378_vm11 = vmor %vm376_vm10, %vm377_vm9 }
 0x11e   : > { %v369_v62 = vsel %vm368_vm8, %v635_v47, %v365_v60  ;;  %v372_v63 = vmul.f32 %v637_v57, %v371_v61 }
 0x11f   : > { %v381_v0 = vmul.f32 %v369_v62, %v330_v22 }
 0x120   : > { %v373_v3 = vmul.f32 0.5, %v372_v63 }
 0x121   : > { %v389_v4 = vmul.f32 %v386_v59, %v381_v0 }
 0x122   : > { %v374_v5 = vsub.f32 1.5, %v373_v3 }
 0x123   : > { %v396_v7 = vadd.f32 %v628_v2, %v389_v4 }
 0x124   : > { %v375_v8 = vmul.f32 %v637_v57, %v374_v5 }
 0x125   : > { %v398_v9 = vpack.c.bf16 %v396_v7, %v395_v6 }
 0x126   : > { %v379_v10 = vsel %vm378_vm11, %v637_v57, %v375_v8 }
 0x127   : > { %596 = vmatmul.msk.bf16.vlgmr.msra.gmra.mxu0 %vm308_vm0, %v398_v9  ;;  %v382_v11 = vmul.f32 %v379_v10, %v729_v23 }
 0x129   : > { %v390_v12 = vmul.f32 %v386_v59, %v382_v11 }
 0x12b   : > { %v397_v13 = vadd.f32 %v628_v2, %v390_v12 }
 0x12d   : > { %v399_v14 = vpack.c.bf16 %v397_v13, %v397_v13 }
 0x12f   : > { %597 = vmatmul.msk.bf16.vlgmr.msra.gmra.mxu1 %vm308_vm0, %v399_v14 }
 0x1a4   : > { %v425_v16 = vpop.f32.mrf.mxu0 }
 0x1a5   : > { %v426_v17 = vadd.f32 %v629_v15, %v425_v16 }
 0x1a7   : > { %v434_v18 = vmul.f32 %v426_v17, %v426_v17 }
 0x1a9   : > { %v437_v19 = vmul.f32 %v434_v18, %v426_v17 }
 0x1ab   : > { %v440_v20 = vmul.f32 0.044715, %v437_v19 }
 0x1ac   : > { %v427_v21 = vpop.f32.mrf.mxu0  ;;  %v430_v22 = vpop.f32.mrf.mxu1 }
 0x1ad   : > { %v443_v24 = vadd.f32 %v440_v20, %v426_v17  ;;  %v428_v25 = vadd.f32 %v629_v15, %v427_v21  ;;  %v431_v26 = vadd.f32 %v629_v15, %v430_v22 }
 0x1af   : > { %v446_v23 = vmul.f32 0.7978846, %v443_v24  ;;  %v435_v27 = vmul.f32 %v428_v25, %v428_v25  ;;  %v436_v28 = vmul.f32 %v431_v26, %v431_v26 }
 0x1b1   : > { %638 = vtanh.f32 %v446_v23  ;;  %v438_v29 = vmul.f32 %v435_v27, %v428_v25  ;;  %v439_v30 = vmul.f32 %v436_v28, %v431_v26 }
 0x1b3   : > { %v441_v31 = vmul.f32 0.044715, %v438_v29  ;;  %v442_v32 = vmul.f32 0.044715, %v439_v30 }
 0x1b4   : > { %v432_v33 = vpop.f32.mrf.mxu1 }
 0x1b5   : > { %v444_v34 = vadd.f32 %v441_v31, %v428_v25  ;;  %v445_v35 = vadd.f32 %v442_v32, %v431_v26 }
 0x1b7   : > { %v639_v36 = vpop.eup %638  ;;  %v447_v37 = vmul.f32 0.7978846, %v444_v34  ;;  %v448_v38 = vmul.f32 0.7978846, %v445_v35 }
 0x1b8   : > { %v452_v39 = vadd.f32 1.0, %v639_v36 }
 0x1b9   : > { %640 = vtanh.f32 %v447_v37 }
 0x1ba   : > { %v455_v40 = vmul.f32 0.5, %v452_v39  ;;  %642 = vtanh.f32 %v448_v38 }
 0x1bc   : > { %v458_v41 = vmul.f32 %v455_v40, %v426_v17 }
 0x1be   : > { %461 = vst [vmem:[%s303_s26] sm:$0xff] %v458_v41 }
 0x1bf   : > { %v641_v42 = vpop.eup %640 }
 0x1c0   : > { %v643_v43 = vpop.eup %642  ;;  %v453_v44 = vadd.f32 1.0, %v641_v42 }
 0x1c1   : > { %v454_v45 = vadd.f32 1.0, %v643_v43 }
 0x1c2   : > { %v456_v46 = vmul.f32 0.5, %v453_v44 }
 0x1c3   : > { %v457_v47 = vmul.f32 0.5, %v454_v45 }
 0x1c4   : > { %v459_v48 = vmul.f32 %v456_v46, %v428_v25 }
 0x1c5   : > { %v460_v49 = vmul.f32 %v457_v47, %v431_v26 }
 0x1c6   : > { %462 = vst [vmem:[%s303_s26 + $0x8] sm:$0xff] %v459_v48 }
 0x1c7   : > { %463 = vst [vmem:[%s303_s26 + $0x10] sm:$0x1] %v460_v49 }
 0x1c8 PF: > { %s15_s20 = sadd.s32 1, %s666_s20   ;;  %s786_s18 = smov %s662_s19 }
 0x1c9   : > { %p12_p5 = scmp.ge.s32.totalorder %s15_s20, 6   ;;  %s787_s19 = smov %s789_s21 }
 0x1cb   :  { %14 = sbr.rel (!%p12_p5) target bundleno = 2 (0x2), region = 82 }

// kernel: loss_fn.31
= control target key start
LH: loop header
LB: loop body
LE: loop exit
PB: predicated region body
PF: predicated region fallthrough
CT: control target
= control target key end

     0   :  { %s608_s18 = smov 0   ;;  %s610_s19 = smov 0   ;;  %s721_s0 = inlined_call_operand.vmem [shape: f32[4,17,128], index: 0, kind: input, shape index: {}]   ;;  %s722_s1 = inlined_call_operand.vmem [shape: f32[128,32], index: 1, kind: input, shape index: {}]   ;;  %s723_s2 = inlined_call_operand.vmem [shape: f32[1,32], index: 2, kind: input, shape index: {}]   ;;  %s724_s3 = inlined_call_operand.vmem [shape: f32[4,1,32], index: 3, kind: input, shape index: {}]   ;;  %s725_s4 = inlined_call_operand.vmem [shape: f32[4,17,32], index: 4, kind: input, shape index: {}]   ;;  %s726_s5 = inlined_call_operand.vmem [shape: f32[4,17,32], index: 5, kind: output, shape index: {}]  }
   0x1   :  { %s612_s20 = smov 0  }
   0x2 LB: > { %s27_s21 = sadd.s32 1, %s571_s19  ;;  %p511_p0 = scmp.ge.s32.totalorder %s575_s20, 1  ;;  %s575_s20 = sphi %s612_s20, %s15_s20   ;;  %s571_s19 = sphi %s610_s19, %s728_s19   ;;  %s567_s18 = sphi %s608_s18, %s727_s18  }
   0x3   : > { %p29_p1 = scmp.ge.s32.totalorder %s27_s21, 4  ;;  %p233_p2 = scmp.lt.s32.totalorder %s575_s20, 5 }
   0x5   : > { %s730_s21 = smov (%p29_p1, %s27_s21), 0  ;;  %p234_p3 = pnand %p511_p0, %p233_p2 }
   0x6   : > { %p277_p4 = scmp.lt.s32.totalorder (!%p234_p3), %s567_s18, 3 }
   0x7   : > { %237 = sbr.rel (%p234_p3) target bundleno = 197 (0xc5), region = 40 }
   0xc   : > { %v335_v0 = vld [vmem:[%s722_s1 + $0x70] sm:$0xff]  ;;  %v336_v1 = vld [vmem:[%s722_s1 + $0x78] sm:$0xff]  ;;  %v333_v2 = vld [vmem:[%s722_s1 + $0x60] sm:$0xff]  ;;  %s732_s18 = smov (!%p277_p4, %s567_s18), 3  ;;  %vm308_vm0 = vcmask 261120   ;;  %v577_v6 = vmov 0.0  }
   0xd   : > { %v344_v3 = vpack.c.bf16 %v336_v1, %v335_v0  ;;  %v334_v4 = vld [vmem:[%s722_s1 + $0x68] sm:$0xff]  ;;  %309 = vst.msk [vmem:[#allocation2] sm:$0xff] %vm308_vm0, %v577_v6  ;;  %v331_v7 = vld [vmem:[%s722_s1 + $0x50] sm:$0xff]  ;;  %v332_v8 = vld [vmem:[%s722_s1 + $0x58] sm:$0xff]  ;;  %s293_s11 = scalar_lea.vmem %s724_s3, %s732_s18  ;;  %s677_s7 = smul.u32 24, %s732_s18  ;;  %vm311_vm1 = vcmask 253952  }
   0xe   : > { %v343_v5 = vpack.c.bf16 %v334_v4, %v333_v2  ;;  %310 = vst.msk [vmem:[#allocation2 + $0x8] sm:$0xff] %vm308_vm0, %v577_v6  ;;  %v342_v9 = vpack.c.bf16 %v332_v8, %v331_v7  ;;  %v329_v10 = vld [vmem:[%s722_s1 + $0x40] sm:$0xff]  ;;  %v330_v11 = vld [vmem:[%s722_s1 + $0x48] sm:$0xff]  ;;  %v327_v13 = vld [vmem:[%s722_s1 + $0x30] sm:$0xff] }
   0xf   : > { %345 = vmatpush.bf16.msra.mxu0 %v344_v3  ;;  %517 = vmatpush.bf16.msra.mxu1 %v344_v3  ;;  %v341_v12 = vpack.c.bf16 %v330_v11, %v329_v10  ;;  %v328_v14 = vld [vmem:[%s722_s1 + $0x38] sm:$0xff]  ;;  %v325_v16 = vld [vmem:[%s722_s1 + $0x20] sm:$0xff]  ;;  %v326_v17 = vld [vmem:[%s722_s1 + $0x28] sm:$0xff]  ;;  %s284_s15 = scalar_lea.vmem %s721_s0, %s677_s7  ;;  %312 = vst.msk [vmem:[#allocation2 + $0x10] sm:$0x1] %vm311_vm1, %v577_v6  ;;  %s298_s24 = scalar_lea.vmem %s725_s4, %s677_s7 }
  0x10   : > { %v340_v15 = vpack.c.bf16 %v328_v14, %v327_v13  ;;  %v339_v18 = vpack.c.bf16 %v326_v17, %v325_v16  ;;  %v323_v19 = vld [vmem:[%s722_s1 + $0x10] sm:$0xff]  ;;  %v324_v20 = vld [vmem:[%s722_s1 + $0x18] sm:$0xff]  ;;  %v321_v22 = vld [vmem:[%s722_s1] sm:$0xff]  ;;  %s303_s29 = scalar_lea.vmem %s726_s5, %s677_s7 }
  0x11   : > { %v338_v21 = vpack.c.bf16 %v324_v20, %v323_v19  ;;  %v322_v23 = vld [vmem:[%s722_s1 + $0x8] sm:$0xff]  ;;  %v316_v25 = vld [vmem:[%s284_s15] sm:$0xff]  ;;  %v318_v27 = vld [vmem:[%s284_s15 + $0x10] sm:$0x1] }
  0x12   : > { %v337_v24 = vpack.c.bf16 %v322_v23, %v321_v22  ;;  %v317_v26 = vld [vmem:[%s284_s15 + $0x8] sm:$0xff]  ;;  %v320_v29 = vpack.c.bf16 %v318_v27, %v318_v27  ;;  %v552_v37 = vld [vmem:[%s723_s2] ss:$0 sm:$0xff]  ;;  %v376_v47 = vld [vmem:[%s298_s24 + $0x10] sm:$0x1] }
  0x13   : > { %346 = vmatpush.bf16.msra.mxu0 %v343_v5  ;;  %518 = vmatpush.bf16.msra.mxu1 %v343_v5  ;;  %v319_v28 = vpack.c.bf16 %v317_v26, %v316_v25  ;;  %v551_v40 = vld [vmem:[%s293_s11] ss:$0 sm:$0xff]  ;;  %v375_v54 = vld [vmem:[%s298_s24 + $0x8] sm:$0xff] }
  0x14   : > { %v313_v30 = vld [vmem:[#allocation2] sm:$0xff] }
  0x15   : > { %v314_v36 = vld [vmem:[#allocation2 + $0x8] sm:$0xff]  ;;  %v374_v45 = vld [vmem:[%s298_s24] sm:$0xff] }
  0x16   : > { %v315_v31 = vld [vmem:[#allocation2 + $0x10] sm:$0x1] }
  0x17   : > { %347 = vmatpush.bf16.msra.mxu0 %v342_v9  ;;  %519 = vmatpush.bf16.msra.mxu1 %v342_v9 }
  0x1b   : > { %348 = vmatpush.bf16.msra.mxu0 %v341_v12  ;;  %520 = vmatpush.bf16.msra.mxu1 %v341_v12 }
  0x1f   : > { %349 = vmatpush.bf16.msra.mxu0 %v340_v15  ;;  %521 = vmatpush.bf16.msra.mxu1 %v340_v15 }
  0x23   : > { %350 = vmatpush.bf16.msra.mxu0 %v339_v18  ;;  %522 = vmatpush.bf16.msra.mxu1 %v339_v18 }
  0x27   : > { %351 = vmatpush.bf16.msra.mxu0 %v338_v21  ;;  %523 = vmatpush.bf16.msra.mxu1 %v338_v21 }
  0x2b   : > { %352 = vmatpush.bf16.msra.mxu0 %v337_v24  ;;  %524 = vmatpush.bf16.msra.mxu1 %v337_v24 }
  0x2e   : > { %353 = vmatmul.bf16.vlgmr.msra.gmra.mxu0 %v319_v28  ;;  %358 = vmatmul.bf16.vlgmr.msra.gmra.mxu1 %v320_v29 }
  0xab   : > { %v354_v32 = vpop.f32.mrf.mxu0  ;;  %v359_v33 = vpop.f32.mrf.mxu1 }
  0xac   : > { %v363_v34 = vadd.f32 %v354_v32, %v313_v30  ;;  %v365_v35 = vadd.f32 %v359_v33, %v315_v31 }
  0xae   : > { %367 = vst.msk [vmem:[#allocation2] sm:$0xff] %vm308_vm0, %v363_v34 }
  0xaf   : > { %370 = vst.msk [vmem:[#allocation2 + $0x10] sm:$0x1] %vm311_vm1, %v365_v35 }
  0xb3   : > { %v356_v38 = vpop.f32.mrf.mxu0  ;;  %v361_v39 = vpop.f32.mrf.mxu1 }
  0xb4   : > { %v364_v41 = vadd.f32 %v356_v38, %v314_v36 }
  0xb5   : > { %v378_v42 = vld [vmem:[#allocation2] sm:$0xff] }
  0xb6   : > { %v385_v43 = vadd.f32 %v552_v37, %v378_v42  ;;  %v380_v44 = vld [vmem:[#allocation2 + $0x10] sm:$0x1]  ;;  %368 = vst.msk [vmem:[#allocation2 + $0x8] sm:$0xff] %vm308_vm0, %v364_v41 }
  0xb7   : > { %v387_v46 = vadd.f32 %v552_v37, %v380_v44 }
  0xb8   : > { %v391_v48 = vmul.f32 %v551_v40, %v385_v43 }
  0xb9   : > { %v393_v49 = vmul.f32 %v551_v40, %v387_v46 }
  0xba   : > { %v394_v50 = vadd.f32 %v391_v48, %v374_v45 }
  0xbb   : > { %v396_v51 = vadd.f32 %v393_v49, %v376_v47 }
  0xbc   : > { %397 = vst.msk [vmem:[%s303_s29] sm:$0xff] %vm308_vm0, %v394_v50 }
  0xbd   : > { %399 = vst.msk [vmem:[%s303_s29 + $0x10] sm:$0x1] %vm311_vm1, %v396_v51  ;;  %v379_v52 = vld [vmem:[#allocation2 + $0x8] sm:$0xff] }
  0xbe   : > { %v386_v53 = vadd.f32 %v552_v37, %v379_v52 }
  0xc0   : > { %v392_v55 = vmul.f32 %v551_v40, %v386_v53 }
  0xc2   : > { %v395_v56 = vadd.f32 %v392_v55, %v375_v54 }
  0xc4   : > { %398 = vst.msk [vmem:[%s303_s29 + $0x8] sm:$0xff] %vm308_vm0, %v395_v56 }
  0xc5 PF: > { %s15_s20 = sadd.s32 1, %s575_s20   ;;  %s727_s18 = smov %s571_s19 }
  0xc6   : > { %p12_p5 = scmp.ge.s32.totalorder %s15_s20, 6   ;;  %s728_s19 = smov %s730_s21 }
  0xc8   :  { %14 = sbr.rel (!%p12_p5) target bundleno = 2 (0x2), region = 87 }

// kernel: loss_fn.40
= control target key start
LH: loop header
LB: loop body
LE: loop exit
PB: predicated region body
PF: predicated region fallthrough
CT: control target
= control target key end

     0   :  { %vm19_vm0 = vcmask 519168   ;;  %v92_v8 = vmov 0.0   ;;  %vm50_vm5 = vcmask 261120   ;;  %s137_s1 = inlined_call_operand.vmem [shape: f32[32,64], index: 1, kind: input, shape index: {}]   ;;  %s138_s0 = inlined_call_operand.vmem [shape: f32[4,32], index: 0, kind: input, shape index: {}]   ;;  %s139_s2 = inlined_call_operand.vmem [shape: f32[1,64], index: 2, kind: input, shape index: {}]   ;;  %s140_s3 = inlined_call_operand.vmem [shape: f32[4,64], index: 3, kind: output, shape index: {}]  }
   0x1   :  { %v46_v0 = vld [vmem:[%s137_s1 + $0x10] sm:$0xff]  ;;  %v47_v1 = vld [vmem:[%s137_s1 + $0x18] sm:$0xff]  ;;  %v44_v2 = vld [vmem:[%s137_s1] sm:$0xff]  ;;  %20 = vst.msk [vmem:[#allocation2] sm:$0xf] %vm19_vm0, %v92_v8 }
   0x2   :  { %v49_v3 = vpack.c.bf16 %v47_v1, %v46_v0  ;;  %v45_v4 = vld [vmem:[%s137_s1 + $0x8] sm:$0xff]  ;;  %v21_v5 = vld [vmem:[%s138_s0] sm:$0xf] }
   0x3   :  { %v84_v6 = vmul.f32 -1.442695, %v21_v5  ;;  %v48_v7 = vpack.c.bf16 %v45_v4, %v44_v2  ;;  %v87_v26 = vld [vmem:[%s139_s2] ss:$0 sm:$0xff] }
   0x4   :  { %60 = vmatpush.bf16.msra.mxu0 %v49_v3 }
   0x5   :  { %88 = vpow2.f32 %v84_v6 }
   0x8   :  { %61 = vmatpush.bf16.msra.mxu0 %v48_v7  ;;  %v42_v23 = vld [vmem:[#allocation2] sm:$0xf] }
   0xb   :  { %v89_v9 = vpop.eup %88 }
   0xc   :  { %v25_v10 = vadd.f32 1.0, %v89_v9 }
   0xe   :  { %90 = vrcp.f32 %v25_v10  ;;  %v37_v13 = vand.u32 2147483648, %v25_v10  ;;  %vm31_vm1 = vweird.f32 %v25_v10  ;;  %v35_v15 = vand.u32 2147483647, %v25_v10 }
  0x10   :  { %v38_v17 = vor.u32 1.1754944e-38, %v37_v13  ;;  %vm36_vm4 = vcmp.eq.f32.partialorder %v35_v15, 8.507059e+37 }
  0x14   :  { %v91_v11 = vpop.eup %90 }
  0x15   :  { %v27_v12 = vmul.f32 %v91_v11, %v25_v10  ;;  %vm32_vm2 = vweird.f32 %v91_v11 }
  0x16   :  { %vm33_vm3 = vmor %vm31_vm1, %vm32_vm2 }
  0x17   :  { %v28_v14 = vsub.f32 1.0, %v27_v12 }
  0x19   :  { %v29_v16 = vmul.f32 %v91_v11, %v28_v14 }
  0x1b   :  { %v30_v18 = vadd.f32 %v91_v11, %v29_v16 }
  0x1d   :  { %v34_v19 = vsel %vm33_vm3, %v91_v11, %v30_v18 }
  0x1e   :  { %v39_v20 = vsel %vm36_vm4, %v38_v17, %v34_v19 }
  0x1f   :  { %v41_v21 = vmul.f32 %v39_v20, %v21_v5 }
  0x21   :  { %v43_v22 = vpack.c.bf16 %v41_v21, %v41_v21 }
  0x23   :  { %85 = vmatmul.msk.bf16.vlgmr.msra.gmra.mxu0 %vm50_vm5, %v43_v22 }
  0xa0   :  { %v63_v24 = vpop.f32.mrf.mxu0 }
  0xa1   :  { %v67_v25 = vadd.f32 %v63_v24, %v42_v23 }
  0xa3   :  { %69 = vst.msk [vmem:[#allocation2] sm:$0xf] %vm19_vm0, %v67_v25 }
  0xa8   :  { %v65_v27 = vpop.f32.mrf.mxu0 }
  0xaa   :  { %v73_v28 = vld [vmem:[#allocation2] sm:$0xf] }
  0xab   :  { %v78_v29 = vadd.f32 %v87_v26, %v73_v28 }
  0xad   :  { %79 = vst.msk [vmem:[%s140_s3] sm:$0xf] %vm19_vm0, %v78_v29 }

// kernel: loss_fn.41
= control target key start
LH: loop header
LB: loop body
LE: loop exit
PB: predicated region body
PF: predicated region fallthrough
CT: control target
= control target key end

     0   :  { %s559_s18 = smov 0   ;;  %s561_s19 = smov 0   ;;  %s621_s0 = inlined_call_operand.vmem [shape: f32[4,1,32], index: 0, kind: input, shape index: {}]   ;;  %s622_s1 = inlined_call_operand.vmem [shape: f32[4,1,32], index: 1, kind: input, shape index: {}]   ;;  %s623_s2 = inlined_call_operand.vmem [shape: f32[4,1,32], index: 2, kind: input, shape index: {}]   ;;  %s624_s3 = inlined_call_operand.vmem [shape: f32[32,128], index: 3, kind: input, shape index: {}]   ;;  %s625_s4 = inlined_call_operand.vmem [shape: f32[1,128], index: 4, kind: input, shape index: {}]   ;;  %s626_s5 = inlined_call_operand.vmem [shape: f32[4,1,128], index: 5, kind: output, shape index: {}]  }
   0x1   :  { %s563_s20 = smov 0  }
   0x2 LB: > { %s27_s21 = sadd.s32 1, %s522_s19  ;;  %p471_p0 = scmp.ge.s32.totalorder %s526_s20, 1  ;;  %s526_s20 = sphi %s563_s20, %s15_s20   ;;  %s522_s19 = sphi %s561_s19, %s628_s19   ;;  %s518_s18 = sphi %s559_s18, %s627_s18  }
   0x3   : > { %p29_p1 = scmp.ge.s32.totalorder %s27_s21, 4  ;;  %p232_p2 = scmp.lt.s32.totalorder %s526_s20, 5 }
   0x5   : > { %s630_s21 = smov (%p29_p1, %s27_s21), 0  ;;  %p233_p3 = pnand %p471_p0, %p232_p2 }
   0x6   : > { %p272_p4 = scmp.lt.s32.totalorder (!%p233_p3), %s518_s18, 3 }
   0x7   : > { %236 = sbr.rel (%p233_p3) target bundleno = 419 (0x1a3), region = 40 }
   0xc   : > { %s632_s18 = smov (!%p272_p4, %s518_s18), 3  ;;  %vm296_vm0 = vcmask 253952   ;;  %v528_v2 = vmov 32.0   ;;  %v334_v14 = vld [vmem:[%s624_s3 + $0x10] sm:$0xff]  ;;  %v335_v15 = vld [vmem:[%s624_s3 + $0x18] sm:$0xff]  ;;  %v332_v17 = vld [vmem:[%s624_s3] sm:$0xff] }
   0xd   : > { %s274_s24 = scalar_lea.vmem %s621_s0, %s632_s18  ;;  %500 = vrcp.f32 %v528_v2  ;;  %v337_v16 = vpack.c.bf16 %v335_v15, %v334_v14  ;;  %v333_v18 = vld [vmem:[%s624_s3 + $0x8] sm:$0xff]  ;;  %s277_s10 = scalar_lea.vmem %s622_s1, %s632_s18  ;;  %vm339_vm5 = vcmask 261120   ;;  %v338_v37 = vld [vmem:[%s625_s4] sm:$0x1] }
   0xe   : > { %v295_v0 = vld [vmem:[%s274_s24] sm:$0x1]  ;;  %v336_v19 = vpack.c.bf16 %v333_v18, %v332_v17  ;;  %s280_s13 = scalar_lea.vmem %s623_s2, %s632_s18  ;;  %s293_s22 = scalar_lea.vmem %s626_s5, %s632_s18 }
   0xf   : > { %v297_v1 = vsel %vm296_vm0, %v295_v0, 0.0  ;;  %349 = vmatpush.bf16.msra.mxu0 %v337_v16  ;;  %v326_v28 = vld [vmem:[%s277_s10] sm:$0x1] }
  0x10   : > { %298 = vadd.xlane.f32.xlu0 %v297_v1  ;;  %v327_v30 = vadd.f32 1.0, %v326_v28  ;;  %v329_v33 = vld [vmem:[%s280_s13] sm:$0x1] }
  0x13   : > { %v501_v3 = vpop.eup %500  ;;  %350 = vmatpush.bf16.msra.mxu0 %v336_v19 }
  0x14   : > { %v301_v4 = vmul.f32 32.0, %v501_v3  ;;  %vm305_vm1 = vweird.f32 %v501_v3 }
  0x16   : > { %v302_v5 = vsub.f32 1.0, %v301_v4 }
  0x18   : > { %v303_v6 = vmul.f32 %v501_v3, %v302_v5 }
  0x1a   : > { %v304_v7 = vadd.f32 %v501_v3, %v303_v6 }
  0x1c   : > { %v306_v8 = vsel %vm305_vm1, %v501_v3, %v304_v7 }
  0x83   : > { %v299_v9 = vpop.xlane.xlu0 %298 }
  0x84   : > { %v307_v10 = vmul.f32 %v306_v8, %v299_v9 }
  0x86   : > { %v308_v11 = vsub.f32 %v295_v0, %v307_v10 }
  0x88   : > { %v309_v12 = vmul.f32 %v308_v11, %v308_v11 }
  0x8a   : > { %v310_v13 = vsel %vm296_vm0, %v309_v12, 0.0 }
  0x8b   : > { %311 = vadd.xlane.f32.xlu0 %v310_v13 }
  0xfe   : > { %v312_v20 = vpop.xlane.xlu0 %311 }
  0xff   : > { %v313_v21 = vmul.f32 %v312_v20, %v306_v8 }
 0x101   : > { %v314_v22 = vadd.f32 1e-06, %v313_v21 }
 0x103   : > { %502 = vrsqrt.f32 %v314_v22  ;;  %vm321_vm3 = vweird.f32 %v314_v22 }
 0x109   : > { %v503_v23 = vpop.eup %502 }
 0x10a   : > { %v316_v24 = vmul.f32 %v503_v23, %v314_v22  ;;  %vm322_vm2 = vweird.f32 %v503_v23 }
 0x10b   : > { %vm323_vm4 = vmor %vm321_vm3, %vm322_vm2 }
 0x10c   : > { %v317_v25 = vmul.f32 %v503_v23, %v316_v24 }
 0x10e   : > { %v318_v26 = vmul.f32 0.5, %v317_v25 }
 0x110   : > { %v319_v27 = vsub.f32 1.5, %v318_v26 }
 0x112   : > { %v320_v29 = vmul.f32 %v503_v23, %v319_v27 }
 0x114   : > { %v324_v31 = vsel %vm323_vm4, %v503_v23, %v320_v29 }
 0x115   : > { %v325_v32 = vmul.f32 %v324_v31, %v308_v11 }
 0x117   : > { %v328_v34 = vmul.f32 %v327_v30, %v325_v32 }
 0x119   : > { %v330_v35 = vadd.f32 %v329_v33, %v328_v34 }
 0x11b   : > { %v331_v36 = vpack.c.bf16 %v330_v35, %v330_v35 }
 0x11d   : > { %472 = vmatmul.msk.bf16.vlgmr.msra.gmra.mxu0 %vm339_vm5, %v331_v36 }
 0x19a   : > { %v352_v38 = vpop.f32.mrf.mxu0 }
 0x19b   : > { %v353_v39 = vadd.f32 %v352_v38, %v338_v37 }
 0x19d   : > { %356 = vst [vmem:[%s293_s22] sm:$0x1] %v353_v39 }
 0x1a2   : > { %v354_v40 = vpop.f32.mrf.mxu0 }
 0x1a3 PF: > { %s15_s20 = sadd.s32 1, %s526_s20   ;;  %s627_s18 = smov %s522_s19 }
 0x1a4   : > { %p12_p5 = scmp.ge.s32.totalorder %s15_s20, 6   ;;  %s628_s19 = smov %s630_s21 }
 0x1a6   :  { %14 = sbr.rel (!%p12_p5) target bundleno = 2 (0x2), region = 82 }

// kernel: loss_fn.39
= control target key start
LH: loop header
LB: loop body
LE: loop exit
PB: predicated region body
PF: predicated region fallthrough
CT: control target
= control target key end

     0   :  { %s629_s18 = smov 0   ;;  %s631_s19 = smov 0   ;;  %s702_s0 = inlined_call_operand.vmem [shape: f32[4,16,32], index: 0, kind: input, shape index: {}]   ;;  %s703_s1 = inlined_call_operand.vmem [shape: f32[4,1,32], index: 1, kind: input, shape index: {}]   ;;  %s704_s2 = inlined_call_operand.vmem [shape: f32[4,1,32], index: 2, kind: input, shape index: {}]   ;;  %s705_s3 = inlined_call_operand.vmem [shape: f32[32,128], index: 3, kind: input, shape index: {}]   ;;  %s706_s4 = inlined_call_operand.vmem [shape: f32[1,128], index: 4, kind: input, shape index: {}]   ;;  %s707_s5 = inlined_call_operand.vmem [shape: f32[4,16,128], index: 5, kind: output, shape index: {}]  }
   0x1   :  { %s633_s20 = smov 0  }
   0x2 LB: > { %s27_s21 = sadd.s32 1, %s592_s19  ;;  %p531_p0 = scmp.ge.s32.totalorder %s596_s20, 1  ;;  %s596_s20 = sphi %s633_s20, %s15_s20   ;;  %s592_s19 = sphi %s631_s19, %s709_s19   ;;  %s588_s18 = sphi %s629_s18, %s708_s18  }
   0x3   : > { %p29_p1 = scmp.ge.s32.totalorder %s27_s21, 4  ;;  %p234_p2 = scmp.lt.s32.totalorder %s596_s20, 5 }
   0x5   : > { %s711_s21 = smov (%p29_p1, %s27_s21), 0  ;;  %p235_p3 = pnand %p531_p0, %p234_p2 }
   0x6   : > { %p278_p4 = scmp.lt.s32.totalorder (!%p235_p3), %s588_s18, 3 }
   0x7   : > { %238 = sbr.rel (%p235_p3) target bundleno = 431 (0x1af), region = 40 }
   0xc   : > { %s713_s18 = smov (!%p278_p4, %s588_s18), 3  ;;  %vm307_vm0 = vcmask 261120   ;;  %v598_v4 = vmov 32.0   ;;  %v375_v21 = vld [vmem:[%s705_s3 + $0x10] sm:$0xff]  ;;  %v376_v22 = vld [vmem:[%s705_s3 + $0x18] sm:$0xff]  ;;  %v373_v24 = vld [vmem:[%s705_s3] sm:$0xff] }
   0xd   : > { %s539_s22 = sshll.u32 %s713_s18, 4  ;;  %568 = vrcp.f32 %v598_v4  ;;  %s288_s28 = scalar_lea.vmem %s704_s2, %s713_s18  ;;  %v378_v23 = vpack.c.bf16 %v376_v22, %v375_v21  ;;  %v374_v25 = vld [vmem:[%s705_s3 + $0x8] sm:$0xff]  ;;  %v567_v58 = vld [vmem:[%s706_s4] ss:$0 sm:$0xff] }
   0xe   : > { %s282_s25 = scalar_lea.vmem %s702_s0, %s539_s22  ;;  %v377_v27 = vpack.c.bf16 %v374_v25, %v373_v24  ;;  %s285_s14 = scalar_lea.vmem %s703_s1, %s713_s18  ;;  %v566_v53 = vld [vmem:[%s288_s28] ss:$0 sm:$0xff] }
   0xf   : > { %v305_v0 = vld [vmem:[%s282_s25] sm:$0xff]  ;;  %v306_v2 = vld [vmem:[%s282_s25 + $0x8] sm:$0xff]  ;;  %392 = vmatpush.bf16.msra.mxu0 %v378_v23  ;;  %s303_s26 = scalar_lea.vmem %s707_s5, %s539_s22 }
  0x10   : > { %v308_v1 = vsel %vm307_vm0, %v305_v0, 0.0  ;;  %v311_v3 = vsel %vm307_vm0, %v306_v2, 0.0  ;;  %v359_v41 = vld [vmem:[%s285_s14] sm:$0x1] }
  0x11   : > { %309 = vadd.xlane.f32.xlu0 %v308_v1  ;;  %v360_v43 = vadd.f32 1.0, %v359_v41 }
  0x13   : > { %v569_v5 = vpop.eup %568  ;;  %393 = vmatpush.bf16.msra.mxu0 %v377_v27  ;;  %v362_v48 = vperm.slane %v360_v43, 0 }
  0x14   : > { %v315_v6 = vmul.f32 32.0, %v569_v5  ;;  %vm319_vm1 = vweird.f32 %v569_v5 }
  0x16   : > { %v316_v7 = vsub.f32 1.0, %v315_v6 }
  0x18   : > { %v317_v8 = vmul.f32 %v569_v5, %v316_v7 }
  0x19   : > { %312 = vadd.xlane.f32.xlu0 %v311_v3 }
  0x1a   : > { %v318_v9 = vadd.f32 %v569_v5, %v317_v8 }
  0x1c   : > { %v320_v10 = vsel %vm319_vm1, %v569_v5, %v318_v9 }
  0x84   : > { %v310_v11 = vpop.xlane.xlu0 %309 }
  0x85   : > { %v321_v12 = vmul.f32 %v320_v10, %v310_v11 }
  0x87   : > { %v323_v13 = vsub.f32 %v305_v0, %v321_v12 }
  0x89   : > { %v325_v14 = vmul.f32 %v323_v13, %v323_v13 }
  0x8b   : > { %v327_v15 = vsel %vm307_vm0, %v325_v14, 0.0 }
  0x8c   : > { %328 = vadd.xlane.f32.xlu1 %v327_v15  ;;  %v313_v16 = vpop.xlane.xlu0 %312 }
  0x8d   : > { %v322_v17 = vmul.f32 %v320_v10, %v313_v16 }
  0x8f   : > { %v324_v18 = vsub.f32 %v306_v2, %v322_v17 }
  0x91   : > { %v326_v19 = vmul.f32 %v324_v18, %v324_v18 }
  0x93   : > { %v330_v20 = vsel %vm307_vm0, %v326_v19, 0.0 }
  0x94   : > { %331 = vadd.xlane.f32.xlu1 %v330_v20 }
  0xff   : > { %v329_v26 = vpop.xlane.xlu1 %328 }
 0x100   : > { %v333_v28 = vmul.f32 %v329_v26, %v320_v10 }
 0x102   : > { %v335_v29 = vadd.f32 1e-06, %v333_v28 }
 0x104   : > { %570 = vrsqrt.f32 %v335_v29  ;;  %vm343_vm3 = vweird.f32 %v335_v29 }
 0x107   : > { %v332_v30 = vpop.xlane.xlu1 %331 }
 0x108   : > { %v334_v31 = vmul.f32 %v332_v30, %v320_v10 }
 0x10a   : > { %v571_v32 = vpop.eup %570  ;;  %v336_v33 = vadd.f32 1e-06, %v334_v31 }
 0x10b   : > { %v338_v34 = vmul.f32 %v571_v32, %v335_v29  ;;  %vm344_vm2 = vweird.f32 %v571_v32 }
 0x10c   : > { %572 = vrsqrt.f32 %v336_v33  ;;  %vm345_vm4 = vmor %vm343_vm3, %vm344_vm2  ;;  %vm353_vm6 = vweird.f32 %v336_v33 }
 0x10d   : > { %v339_v35 = vmul.f32 %v571_v32, %v338_v34 }
 0x10f   : > { %v340_v36 = vmul.f32 0.5, %v339_v35 }
 0x111   : > { %v341_v37 = vsub.f32 1.5, %v340_v36 }
 0x112   : > { %v573_v38 = vpop.eup %572 }
 0x113   : > { %v342_v39 = vmul.f32 %v571_v32, %v341_v37  ;;  %v348_v40 = vmul.f32 %v573_v38, %v336_v33  ;;  %vm354_vm5 = vweird.f32 %v573_v38 }
 0x114   : > { %vm355_vm7 = vmor %vm353_vm6, %vm354_vm5 }
 0x115   : > { %v349_v42 = vmul.f32 %v573_v38, %v348_v40  ;;  %v346_v44 = vsel %vm345_vm4, %v571_v32, %v342_v39 }
 0x116   : > { %v357_v47 = vmul.f32 %v346_v44, %v323_v13 }
 0x117   : > { %v350_v45 = vmul.f32 0.5, %v349_v42 }
 0x118   : > { %v364_v52 = vmul.f32 %v362_v48, %v357_v47 }
 0x119   : > { %v351_v46 = vsub.f32 1.5, %v350_v45 }
 0x11a   : > { %v370_v55 = vadd.f32 %v566_v53, %v364_v52 }
 0x11b   : > { %v352_v49 = vmul.f32 %v573_v38, %v351_v46 }
 0x11d   : > { %v356_v50 = vsel %vm355_vm7, %v573_v38, %v352_v49 }
 0x11e   : > { %v358_v51 = vmul.f32 %v356_v50, %v324_v18 }
 0x120   : > { %v365_v54 = vmul.f32 %v362_v48, %v358_v51 }
 0x122   : > { %v371_v56 = vadd.f32 %v566_v53, %v365_v54 }
 0x124   : > { %v372_v57 = vpack.c.bf16 %v371_v56, %v370_v55 }
 0x126   : > { %536 = vmatmul.msk.bf16.vlgmr.msra.gmra.mxu0 %vm307_vm0, %v372_v57 }
 0x1a3   : > { %v395_v59 = vpop.f32.mrf.mxu0 }
 0x1a4   : > { %v396_v60 = vadd.f32 %v567_v58, %v395_v59 }
 0x1a6   : > { %400 = vst [vmem:[%s303_s26] sm:$0xff] %v396_v60 }
 0x1ab   : > { %v397_v61 = vpop.f32.mrf.mxu0 }
 0x1ac   : > { %v398_v62 = vadd.f32 %v567_v58, %v397_v61 }
 0x1ae   : > { %401 = vst [vmem:[%s303_s26 + $0x8] sm:$0xff] %v398_v62 }
 0x1af PF: > { %s15_s20 = sadd.s32 1, %s596_s20   ;;  %s708_s18 = smov %s592_s19 }
 0x1b0   : > { %p12_p5 = scmp.ge.s32.totalorder %s15_s20, 6   ;;  %s709_s19 = smov %s711_s21 }
 0x1b2   :  { %14 = sbr.rel (!%p12_p5) target bundleno = 2 (0x2), region = 82 }

</bundles_post_ra>
